<compile_context>
chip_gen: v7x
topology: tpu7x:2x2x1
jax: 0.10.0
libtpu: 0.0.40
codegen_flags: <defaults>
</compile_context>

<pallas_src>
import functools
import math
from typing import NamedTuple

import jax
import jax.numpy as jnp
from jax.experimental import pallas as pl
from jax.experimental.pallas import tpu as pltpu


def _vmem_limit_bytes():
    # Generation-dependent VMEM budget: ~3/4 of physical capacity
    # (v5e/v6e: ~96 MiB of 128 MiB; v7x: ~48 MiB of 64 MiB).
    try:
        cap = pltpu.get_tpu_info().vmem_capacity_bytes
        return int(cap * 3 // 4)
    except Exception:
        return 48 * 1024 * 1024


VMEM_LIMIT = _vmem_limit_bytes()


def _cparams(sem):
    return pltpu.CompilerParams(dimension_semantics=sem,
                                vmem_limit_bytes=VMEM_LIMIT)


class ViTConfig(NamedTuple):
    patch: int
    hidden: int
    heads: int
    layers: int
    mlp_ratio: int
    num_labels: int
    eps: float = 1e-12          # HF ViT layernorm eps


def _round_up(n, m):
    return ((n + m - 1) // m) * m


def _tile(dim, target):
    """Largest tile <= target that evenly divides dim (falls back to full dim).
    # TODO(synk): for ViT-B (S=197) pad S to a multiple of 8 instead of relying
    # on this divisor fallback."""
    if dim <= target:
        return dim
    t = target
    while t >= 8:
        if dim % t == 0:
            return t
        t //= 2
    return dim


def _layernorm_f32(x, g, b, eps):
    mu = jnp.mean(x, axis=-1, keepdims=True)
    d = x - mu
    var = jnp.mean(d * d, axis=-1, keepdims=True)
    return d * jax.lax.rsqrt(var + eps) * g + b


# ----------------------------- Pallas kernels -----------------------------

def _linear_kernel(x_ref, w_ref, b_ref, o_ref, *, activation):
    acc = jnp.dot(x_ref[...], w_ref[...], preferred_element_type=jnp.float32)
    acc = acc + b_ref[...].astype(jnp.float32)
    if activation == "gelu":
        # TODO(synk): HF ViT default is exact erf GELU; tanh approx for safe lowering.
        acc = jax.nn.gelu(acc, approximate=True)
    o_ref[...] = acc.astype(o_ref.dtype)


def pallas_linear(x, w, b, activation=None, out_dtype=None, tm=512):
    """x:(M,K) @ w:(K,N) + b:(N,). Weight is VMEM-resident; only M is tiled."""
    M, K = x.shape
    N = w.shape[1]
    out_dtype = out_dtype if out_dtype is not None else x.dtype
    tm = _tile(M, tm)
    grid = (M // tm,)
    cost = pl.CostEstimate(
        flops=2 * M * N * K,
        transcendentals=(M * N) if activation == "gelu" else 0,
        bytes_accessed=int(M * K * x.dtype.itemsize + K * N * w.dtype.itemsize
                           + M * N * jnp.dtype(out_dtype).itemsize + N * 4))
    return pl.pallas_call(
        functools.partial(_linear_kernel, activation=activation),
        out_shape=jax.ShapeDtypeStruct((M, N), out_dtype),
        grid=grid,
        in_specs=[pl.BlockSpec((tm, K), lambda i: (i, 0)),
                  pl.BlockSpec((K, N), lambda i: (0, 0)),   # resident weight
                  pl.BlockSpec((1, N), lambda i: (0, 0))],
        out_specs=pl.BlockSpec((tm, N), lambda i: (i, 0)),
        compiler_params=_cparams(("parallel",)),
        cost_estimate=cost,
    )(x, w, b.reshape(1, N))


def _ln_linear_kernel(x_ref, g_ref, bln_ref, w_ref, b_ref, o_ref, *, eps):
    x = x_ref[...].astype(jnp.float32)
    xn = _layernorm_f32(x, g_ref[...].astype(jnp.float32),
                        bln_ref[...].astype(jnp.float32), eps)
    acc = jnp.dot(xn.astype(w_ref.dtype), w_ref[...],
                  preferred_element_type=jnp.float32)
    o_ref[...] = (acc + b_ref[...].astype(jnp.float32)).astype(o_ref.dtype)


def pallas_ln_linear(x, g, b_ln, w, b, *, eps, tm=256):
    """Fused LayerNorm(x) @ w + b. Weight resident; x read / LN computed once."""
    M, K = x.shape
    N = w.shape[1]
    tm = _tile(M, tm)
    grid = (M // tm,)
    cost = pl.CostEstimate(
        flops=2 * M * N * K, transcendentals=0,
        bytes_accessed=int(M * K * x.dtype.itemsize + K * N * w.dtype.itemsize
                           + M * N * x.dtype.itemsize))
    return pl.pallas_call(
        functools.partial(_ln_linear_kernel, eps=eps),
        out_shape=jax.ShapeDtypeStruct((M, N), x.dtype),
        grid=grid,
        in_specs=[pl.BlockSpec((tm, K), lambda i: (i, 0)),
                  pl.BlockSpec((1, K), lambda i: (0, 0)),
                  pl.BlockSpec((1, K), lambda i: (0, 0)),
                  pl.BlockSpec((K, N), lambda i: (0, 0)),   # resident weight
                  pl.BlockSpec((1, N), lambda i: (0, 0))],
        out_specs=pl.BlockSpec((tm, N), lambda i: (i, 0)),
        compiler_params=_cparams(("parallel",)),
        cost_estimate=cost,
    )(x, g.reshape(1, K), b_ln.reshape(1, K), w, b.reshape(1, N))


def _mlp_kernel(x_ref, g_ref, bln_ref, w1_ref, b1_ref, w2_ref, b2_ref, o_ref,
                *, eps):
    x = x_ref[...].astype(jnp.float32)
    xn = _layernorm_f32(x, g_ref[...].astype(jnp.float32),
                        bln_ref[...].astype(jnp.float32), eps)
    h = jnp.dot(xn.astype(w1_ref.dtype), w1_ref[...],
                preferred_element_type=jnp.float32)
    h = h + b1_ref[...].astype(jnp.float32)
    # TODO(synk): HF ViT default is exact erf GELU; tanh approx for safe lowering.
    h = jax.nn.gelu(h, approximate=True)
    y = jnp.dot(h.astype(w2_ref.dtype), w2_ref[...],
                preferred_element_type=jnp.float32)
    y = y + b2_ref[...].astype(jnp.float32)
    o_ref[...] = (x + y).astype(o_ref.dtype)


def pallas_mlp(x, g, b_ln, w1, b1, w2, b2, *, eps, tm=256):
    """Fused pre-LN MLP block: LN -> FC1 -> GELU -> FC2 -> + residual."""
    M, H = x.shape
    F = w1.shape[1]
    tm = _tile(M, tm)
    grid = (M // tm,)
    cost = pl.CostEstimate(
        flops=4 * M * H * F, transcendentals=M * F,
        bytes_accessed=int(2 * M * H * x.dtype.itemsize
                           + 2 * H * F * w1.dtype.itemsize))
    return pl.pallas_call(
        functools.partial(_mlp_kernel, eps=eps),
        out_shape=jax.ShapeDtypeStruct((M, H), x.dtype),
        grid=grid,
        in_specs=[pl.BlockSpec((tm, H), lambda i: (i, 0)),
                  pl.BlockSpec((1, H), lambda i: (0, 0)),
                  pl.BlockSpec((1, H), lambda i: (0, 0)),
                  pl.BlockSpec((H, F), lambda i: (0, 0)),   # resident weight
                  pl.BlockSpec((1, F), lambda i: (0, 0)),
                  pl.BlockSpec((F, H), lambda i: (0, 0)),   # resident weight
                  pl.BlockSpec((1, H), lambda i: (0, 0))],
        out_specs=pl.BlockSpec((tm, H), lambda i: (i, 0)),
        compiler_params=_cparams(("parallel",)),
        cost_estimate=cost,
    )(x, g.reshape(1, H), b_ln.reshape(1, H), w1, b1.reshape(1, F),
      w2, b2.reshape(1, H))


def _layernorm_kernel(x_ref, g_ref, b_ref, o_ref, *, eps):
    x = x_ref[...].astype(jnp.float32)
    xn = _layernorm_f32(x, g_ref[...].astype(jnp.float32),
                        b_ref[...].astype(jnp.float32), eps)
    o_ref[...] = xn.astype(o_ref.dtype)


def pallas_layernorm(x, gamma, beta, *, eps, tm=512):
    M, H = x.shape
    tm = _tile(M, tm)
    grid = (M // tm,)
    return pl.pallas_call(
        functools.partial(_layernorm_kernel, eps=eps),
        out_shape=jax.ShapeDtypeStruct((M, H), x.dtype),
        grid=grid,
        in_specs=[pl.BlockSpec((tm, H), lambda i: (i, 0)),
                  pl.BlockSpec((1, H), lambda i: (0, 0)),
                  pl.BlockSpec((1, H), lambda i: (0, 0))],
        out_specs=pl.BlockSpec((tm, H), lambda i: (i, 0)),
        compiler_params=_cparams(("parallel",)),
    )(x, gamma.reshape(1, H), beta.reshape(1, H))


def _attn_proj_kernel(qkv_ref, res_ref, wo_ref, bo_ref, o_ref, *, heads, scale):
    qkv = qkv_ref[0]                                  # (S, 3H), bf16
    S = qkv.shape[0]
    H = qkv.shape[1] // 3
    Dh = H // heads
    # Head-batched (heads, S, Dh) views: one relayout per tensor per grid step.
    q = pltpu.einshape("shd->hsd", qkv[:, 0 * H:1 * H].reshape(S, heads, Dh))
    k = pltpu.einshape("shd->hsd", qkv[:, 1 * H:2 * H].reshape(S, heads, Dh))
    v = pltpu.einshape("shd->hsd", qkv[:, 2 * H:3 * H].reshape(S, heads, Dh))
    s = jnp.einsum("hqd,hkd->hqk", q, k,
                   preferred_element_type=jnp.float32) * scale
    s = s - jnp.max(s, axis=-1, keepdims=True)
    p = jnp.exp(s)
    p = p * pl.reciprocal(jnp.sum(p, axis=-1, keepdims=True), approx=True)
    ctx = jnp.einsum("hqk,hkd->hqd", p.astype(v.dtype), v,
                     preferred_element_type=jnp.float32)        # (heads,S,Dh)
    attn = pltpu.einshape("hsd->shd", ctx).reshape(S, H)
    # Fused output projection + bias + residual add (all on-chip).
    out = jnp.dot(attn.astype(wo_ref.dtype), wo_ref[...],
                  preferred_element_type=jnp.float32)
    out = out + bo_ref[...].astype(jnp.float32) + res_ref[0].astype(jnp.float32)
    o_ref[0] = out.astype(o_ref.dtype)


def pallas_attn_out(qkv, residual, w_o, b_o, *, heads):
    """qkv:(B,S,3H), residual:(B,S,H) -> residual + MHA(qkv) @ w_o + b_o."""
    B, S, H3 = qkv.shape
    H = H3 // 3
    scale = 1.0 / math.sqrt(H // heads)
    cost = pl.CostEstimate(
        flops=B * (4 * S * S * H + 2 * S * H * H),
        transcendentals=B * heads * S * S,
        bytes_accessed=int(B * S * (H3 + 2 * H) * qkv.dtype.itemsize
                           + H * H * w_o.dtype.itemsize))
    return pl.pallas_call(
        functools.partial(_attn_proj_kernel, heads=heads, scale=scale),
        out_shape=jax.ShapeDtypeStruct((B, S, H), residual.dtype),
        grid=(B,),
        in_specs=[pl.BlockSpec((1, S, H3), lambda b: (b, 0, 0)),
                  pl.BlockSpec((1, S, H), lambda b: (b, 0, 0)),
                  pl.BlockSpec((H, H), lambda b: (0, 0)),    # resident weight
                  pl.BlockSpec((1, H), lambda b: (0, 0))],
        out_specs=pl.BlockSpec((1, S, H), lambda b: (b, 0, 0)),
        compiler_params=_cparams(("parallel",)),
        cost_estimate=cost,
    )(qkv, residual, w_o, b_o.reshape(1, H))


def _embed_kernel(patch_ref, mask_ref, w_ref, b_ref, cls_ref, mtok_ref, pos_ref,
                  o_ref):
    patches = patch_ref[0]                             # (N, Pd)
    emb = jnp.dot(patches, w_ref[...], preferred_element_type=jnp.float32)
    emb = emb + b_ref[...].astype(jnp.float32)
    m = mask_ref[0].astype(jnp.float32)                # (N, 1)
    emb = emb * (1.0 - m) + mtok_ref[...].astype(jnp.float32) * m
    full = jnp.concatenate([cls_ref[...].astype(jnp.float32), emb], axis=0)
    full = full + pos_ref[...].astype(jnp.float32)     # (S, H)
    o_ref[0] = full.astype(o_ref.dtype)


def pallas_patch_embed(patches, mask, w_pe, b_pe, cls_tok, mask_tok, pos_emb):
    """Fused patch embedding: matmul + mask-token substitution + CLS + pos add."""
    B, N, Pd = patches.shape
    H = w_pe.shape[1]
    S = N + 1
    mask3 = mask.astype(jnp.float32).reshape(B, N, 1)
    return pl.pallas_call(
        _embed_kernel,
        out_shape=jax.ShapeDtypeStruct((B, S, H), w_pe.dtype),
        grid=(B,),
        in_specs=[pl.BlockSpec((1, N, Pd), lambda b: (b, 0, 0)),
                  pl.BlockSpec((1, N, 1), lambda b: (b, 0, 0)),
                  pl.BlockSpec((Pd, H), lambda b: (0, 0)),   # resident weight
                  pl.BlockSpec((1, H), lambda b: (0, 0)),
                  pl.BlockSpec((1, H), lambda b: (0, 0)),
                  pl.BlockSpec((1, H), lambda b: (0, 0)),
                  pl.BlockSpec((S, H), lambda b: (0, 0))],
        out_specs=pl.BlockSpec((1, S, H), lambda b: (b, 0, 0)),
        compiler_params=_cparams(("parallel",)),
    )(patches, mask3, w_pe, b_pe.reshape(1, H), cls_tok.reshape(1, H),
      mask_tok.reshape(1, H), pos_emb)


# ----------------------------- parameter init -----------------------------

def init_params(key, *, channels, image_size, cfg: ViTConfig):
    H = cfg.hidden
    p = cfg.patch
    num_patches = (image_size // p) ** 2
    patch_dim = channels * p * p
    patch_dim_p = _round_up(patch_dim, 128)        # lane-dense decoder output
    labels_p = _round_up(cfg.num_labels, 128)      # lane-dense classifier output
    mlp_dim = H * cfg.mlp_ratio

    def nrm(k, shape, scale=0.02):
        return (scale * jax.random.normal(k, shape, jnp.float32)).astype(jnp.bfloat16)

    n_keys = 6 + 4 * cfg.layers
    keys = jax.random.split(key, n_keys)
    ki = iter(range(n_keys))

    w_dec = nrm(keys[next(ki)], (H, patch_dim))
    w_dec = jnp.pad(w_dec, ((0, 0), (0, patch_dim_p - patch_dim)))
    w_cls = nrm(keys[next(ki)], (H, cfg.num_labels))
    w_cls = jnp.pad(w_cls, ((0, 0), (0, labels_p - cfg.num_labels)))

    params = {
        "w_pe": nrm(keys[next(ki)], (patch_dim, H)),
        "b_pe": jnp.zeros((H,), jnp.float32),
        "cls_token": nrm(keys[next(ki)], (H,)),
        "mask_token": nrm(keys[next(ki)], (H,)),
        "pos_emb": nrm(keys[next(ki)], (num_patches + 1, H)),
        "lnf_g": jnp.ones((H,), jnp.float32),
        "lnf_b": jnp.zeros((H,), jnp.float32),
        "w_dec": w_dec,
        "b_dec": jnp.zeros((patch_dim_p,), jnp.float32),
        "w_cls": w_cls,
        "b_cls": jnp.zeros((labels_p,), jnp.float32),
        "layers": [],
    }
    for _ in range(cfg.layers):
        layer = {
            "ln1_g": jnp.ones((H,), jnp.float32),
            "ln1_b": jnp.zeros((H,), jnp.float32),
            "w_qkv": nrm(keys[next(ki)], (H, 3 * H)),     # [Q | K | V] columns
            "b_qkv": jnp.zeros((3 * H,), jnp.float32),
            "w_o": nrm(keys[next(ki)], (H, H)),
            "b_o": jnp.zeros((H,), jnp.float32),
            "ln2_g": jnp.ones((H,), jnp.float32),
            "ln2_b": jnp.zeros((H,), jnp.float32),
            "w_fc1": nrm(keys[next(ki)], (H, mlp_dim)),
            "b_fc1": jnp.zeros((mlp_dim,), jnp.float32),
            "w_fc2": nrm(keys[next(ki)], (mlp_dim, H)),
            "b_fc2": jnp.zeros((H,), jnp.float32),
        }
        params["layers"].append(layer)
    return params


# ----------------------------- model forward -----------------------------

def vit_backbone(params, x, mask, cfg: ViTConfig):
    """Returns (sequence_output [B,S,H], img_loss scalar)."""
    B, C, Himg, Wimg = x.shape
    p, H, heads = cfg.patch, cfg.hidden, cfg.heads
    nph, npw = Himg // p, Wimg // p
    N = nph * npw
    S = N + 1
    patch_dim = C * p * p

    # unfold into patches: (B, N, C*p*p), ordering (C, ph, pw) per patch
    patches_f32 = x.reshape(B, C, nph, p, npw, p)
    patches_f32 = patches_f32.transpose(0, 2, 4, 1, 3, 5).reshape(B, N, patch_dim)
    patches = patches_f32.astype(jnp.bfloat16)

    # fused: patch embedding + mask-token substitution + CLS concat + pos_emb add
    seq = pallas_patch_embed(patches, mask, params["w_pe"], params["b_pe"],
                             params["cls_token"], params["mask_token"],
                             params["pos_emb"])                      # (B, S, H)

    for layer in params["layers"]:
        # --- attention block (pre-LN): LN1 fused with the single (H,3H) QKV
        #     matmul; attention + W_o + residual fused in one kernel ---
        x2 = seq.reshape(B * S, H)
        qkv = pallas_ln_linear(x2, layer["ln1_g"], layer["ln1_b"],
                               layer["w_qkv"], layer["b_qkv"], eps=cfg.eps)
        seq = pallas_attn_out(qkv.reshape(B, S, 3 * H), seq,
                              layer["w_o"], layer["b_o"], heads=heads)

        # --- MLP block: LN2 + FC1 + GELU + FC2 + residual in one kernel ---
        seq = pallas_mlp(seq.reshape(B * S, H),
                         layer["ln2_g"], layer["ln2_b"],
                         layer["w_fc1"], layer["b_fc1"],
                         layer["w_fc2"], layer["b_fc2"],
                         eps=cfg.eps).reshape(B, S, H)

    seq_out = pallas_layernorm(seq.reshape(B * S, H),
                               params["lnf_g"], params["lnf_b"],
                               eps=cfg.eps).reshape(B, S, H)

    # SimMIM-style masked-image-modeling loss (mimics ViTForMaskedImageModeling).
    # TODO(synk): HF uses a pixel-level upsampled mask; patch-level normalization used here.
    recon = pallas_linear(seq_out[:, 1:, :].reshape(B * N, H),
                          params["w_dec"], params["b_dec"],
                          out_dtype=jnp.float32)[:, :patch_dim].reshape(B, N, patch_dim)
    l1 = jnp.abs(recon - patches_f32)
    mflat = mask.astype(jnp.float32)[..., None]
    img_loss = (l1 * mflat).sum() / (mflat.sum() * (p * p) + 1e-5) / C
    return seq_out, img_loss


def vit_model_forward(params, x, y, mask, *, cfg: ViTConfig):
    """Equivalent of VITModel.forward(x, y, mask) -> (logits, loss)."""
    seq_out, img_loss = vit_backbone(params, x, mask, cfg)
    cls_tok = seq_out[:, 0, :]                                           # (B, H)
    logits = pallas_linear(cls_tok, params["w_cls"], params["b_cls"],
                           out_dtype=jnp.float32)[:, :cfg.num_labels]    # (B, labels)
    # cross-entropy (mean reduction, matches nn.CrossEntropyLoss)
    logp = jax.nn.log_softmax(logits, axis=-1)
    ce_loss = -jnp.mean(jnp.take_along_axis(logp, y[:, None], axis=-1))
    loss = img_loss + ce_loss
    return logits, loss


# ----------------------------- driver -----------------------------

if __name__ == "__main__":
    B, C, IMG, PATCH = 2, 3, 16, 4
    HIDDEN, HEADS, LAYERS, MLP_RATIO = 32, 4, 2, 4
    NUM_LABELS = 5
    NUM_PATCHES = (IMG // PATCH) ** 2

    cfg = ViTConfig(patch=PATCH, hidden=HIDDEN, heads=HEADS, layers=LAYERS,
                    mlp_ratio=MLP_RATIO, num_labels=NUM_LABELS, eps=1e-12)

    root = jax.random.PRNGKey(0)
    k_par, k_x, k_y, k_m = jax.random.split(root, 4)

    params = init_params(k_par, channels=C, image_size=IMG, cfg=cfg)

    x = jax.random.normal(k_x, (B, C, IMG, IMG), dtype=jnp.float32)
    y = jax.random.randint(k_y, (B,), 0, NUM_LABELS, dtype=jnp.int32)
    mask = jax.random.bernoulli(k_m, 0.5, (B, NUM_PATCHES))   # bool_masked_pos

    fwd = jax.jit(functools.partial(vit_model_forward, cfg=cfg))
    logits, loss = fwd(params, x, y, mask)
    jax.block_until_ready((logits, loss))

    assert logits.shape == (B, NUM_LABELS)
    assert loss.shape == ()
    assert bool(jnp.isfinite(loss))
    print("KERNEL_OK")
</pallas_src>

<mosaic_0001>
module attributes {stable_mosaic.version = 11 : i64} {
  func.func @_embed_kernel(%arg0: i32, %arg1: memref<1x16x48xbf16, #tpu.memory_space<vmem>>, %arg2: memref<1x16x1xf32, #tpu.memory_space<vmem>>, %arg3: memref<48x32xbf16, #tpu.memory_space<vmem>>, %arg4: memref<1x32xf32, #tpu.memory_space<vmem>>, %arg5: memref<1x32xbf16, #tpu.memory_space<vmem>>, %arg6: memref<1x32xbf16, #tpu.memory_space<vmem>>, %arg7: memref<17x32xbf16, #tpu.memory_space<vmem>>, %arg8: memref<1x17x32xbf16, #tpu.memory_space<vmem>>) attributes {dimension_semantics = [#tpu.dimension_semantics<parallel>], iteration_bounds = array<i64: 2>, scalar_prefetch = 0 : i64, scratch_operands = 0 : i64, tpu.core_type = #tpu.core_type<tc>, window_params = [{transform_indices = @transform_0, window_bounds = array<i64: 1, 16, 48>}, {transform_indices = @transform_1, window_bounds = array<i64: 1, 16, 1>}, {pipeline_mode = #tpu.pipeline_mode<synchronous>, transform_indices = @transform_2, window_bounds = array<i64: 48, 32>}, {pipeline_mode = #tpu.pipeline_mode<synchronous>, transform_indices = @transform_3, window_bounds = array<i64: 1, 32>}, {pipeline_mode = #tpu.pipeline_mode<synchronous>, transform_indices = @transform_4, window_bounds = array<i64: 1, 32>}, {pipeline_mode = #tpu.pipeline_mode<synchronous>, transform_indices = @transform_5, window_bounds = array<i64: 1, 32>}, {pipeline_mode = #tpu.pipeline_mode<synchronous>, transform_indices = @transform_6, window_bounds = array<i64: 17, 32>}, {transform_indices = @transform_7, window_bounds = array<i64: 1, 17, 32>}]} {
    %c0 = arith.constant 0 : index
    %c0_0 = arith.constant 0 : index
    %c0_1 = arith.constant 0 : index
    %0 = vector.load %arg1[%c0, %c0_0, %c0_1] : memref<1x16x48xbf16, #tpu.memory_space<vmem>>, vector<1x16x48xbf16>
    %1 = vector.shape_cast %0 : vector<1x16x48xbf16> to vector<16x48xbf16>
    %c0_2 = arith.constant 0 : index
    %c0_3 = arith.constant 0 : index
    %2 = vector.load %arg3[%c0_2, %c0_3] : memref<48x32xbf16, #tpu.memory_space<vmem>>, vector<48x32xbf16>
    %cst = arith.constant dense<0.000000e+00> : vector<16x32xf32>
    %3 = tpu.matmul %1, %2, %cst {dimension_numbers = #tpu.dot_dimension_numbers<[1], [0], [0], [1], [0, 0, 1, 1], [], []>} : vector<16x48xbf16>, vector<48x32xbf16>, vector<16x32xf32> -> vector<16x32xf32>
    %c0_4 = arith.constant 0 : index
    %c0_5 = arith.constant 0 : index
    %4 = vector.load %arg4[%c0_4, %c0_5] : memref<1x32xf32, #tpu.memory_space<vmem>>, vector<1x32xf32>
    %5 = vector.broadcast %4 : vector<1x32xf32> to vector<16x32xf32>
    %6 = arith.addf %3, %5 : vector<16x32xf32>
    %c0_6 = arith.constant 0 : index
    %c0_7 = arith.constant 0 : index
    %c0_8 = arith.constant 0 : index
    %7 = vector.load %arg2[%c0_6, %c0_7, %c0_8] : memref<1x16x1xf32, #tpu.memory_space<vmem>>, vector<1x16x1xf32>
    %8 = vector.shape_cast %7 : vector<1x16x1xf32> to vector<16x1xf32>
    %cst_9 = arith.constant 1.000000e+00 : f32
    %9 = vector.broadcast %cst_9 : f32 to vector<16x1xf32>
    %10 = arith.subf %9, %8 : vector<16x1xf32>
    %11 = vector.broadcast %10 : vector<16x1xf32> to vector<16x32xf32>
    %12 = arith.mulf %6, %11 : vector<16x32xf32>
    %c0_10 = arith.constant 0 : index
    %c0_11 = arith.constant 0 : index
    %13 = vector.load %arg6[%c0_10, %c0_11] : memref<1x32xbf16, #tpu.memory_space<vmem>>, vector<1x32xbf16>
    %14 = arith.extf %13 : vector<1x32xbf16> to vector<1x32xf32>
    %15 = vector.broadcast %14 : vector<1x32xf32> to vector<16x32xf32>
    %16 = vector.broadcast %8 : vector<16x1xf32> to vector<16x32xf32>
    %17 = arith.mulf %15, %16 : vector<16x32xf32>
    %18 = arith.addf %12, %17 : vector<16x32xf32>
    %c0_12 = arith.constant 0 : index
    %c0_13 = arith.constant 0 : index
    %19 = vector.load %arg5[%c0_12, %c0_13] : memref<1x32xbf16, #tpu.memory_space<vmem>>, vector<1x32xbf16>
    %20 = arith.extf %19 : vector<1x32xbf16> to vector<1x32xf32>
    %21 = tpu.concatenate %20, %18 in 0 : vector<1x32xf32>, vector<16x32xf32> -> vector<17x32xf32>
    %c0_14 = arith.constant 0 : index
    %c0_15 = arith.constant 0 : index
    %22 = vector.load %arg7[%c0_14, %c0_15] : memref<17x32xbf16, #tpu.memory_space<vmem>>, vector<17x32xbf16>
    %23 = arith.extf %22 : vector<17x32xbf16> to vector<17x32xf32>
    %24 = arith.addf %21, %23 : vector<17x32xf32>
    %25 = arith.truncf %24 : vector<17x32xf32> to vector<17x32xbf16>
    %c0_16 = arith.constant 0 : index
    %c0_17 = arith.constant 0 : index
    %c0_18 = arith.constant 0 : index
    %26 = vector.load %arg8[%c0_16, %c0_17, %c0_18] : memref<1x17x32xbf16, #tpu.memory_space<vmem>>, vector<1x17x32xbf16>
    %27 = vector.shape_cast %26 : vector<1x17x32xbf16> to vector<17x32xbf16>
    %28 = vector.shape_cast %25 : vector<17x32xbf16> to vector<1x17x32xbf16>
    tpu.vector_store %arg8[%c0_16, %c0_17, %c0_18], %28 {strides = array<i32>} : memref<1x17x32xbf16, #tpu.memory_space<vmem>>, vector<1x17x32xbf16>,
    return
  }
  func.func @transform_0(%arg0: i32) -> (i32, i32, i32) {
    %c0_i32 = arith.constant 0 : i32
    %c0_i32_0 = arith.constant 0 : i32
    %c0_i32_1 = arith.constant 0 : i32
    return %arg0, %c0_i32, %c0_i32_0 : i32, i32, i32
  }
  func.func @transform_1(%arg0: i32) -> (i32, i32, i32) {
    %c0_i32 = arith.constant 0 : i32
    %c0_i32_0 = arith.constant 0 : i32
    %c0_i32_1 = arith.constant 0 : i32
    return %arg0, %c0_i32, %c0_i32_0 : i32, i32, i32
  }
  func.func @transform_2(%arg0: i32) -> (i32, i32) {
    %c0_i32 = arith.constant 0 : i32
    %c0_i32_0 = arith.constant 0 : i32
    %c0_i32_1 = arith.constant 0 : i32
    return %c0_i32, %c0_i32_0 : i32, i32
  }
  func.func @transform_3(%arg0: i32) -> (i32, i32) {
    %c0_i32 = arith.constant 0 : i32
    %c0_i32_0 = arith.constant 0 : i32
    %c0_i32_1 = arith.constant 0 : i32
    return %c0_i32, %c0_i32_0 : i32, i32
  }
  func.func @transform_4(%arg0: i32) -> (i32, i32) {
    %c0_i32 = arith.constant 0 : i32
    %c0_i32_0 = arith.constant 0 : i32
    %c0_i32_1 = arith.constant 0 : i32
    return %c0_i32, %c0_i32_0 : i32, i32
  }
  func.func @transform_5(%arg0: i32) -> (i32, i32) {
    %c0_i32 = arith.constant 0 : i32
    %c0_i32_0 = arith.constant 0 : i32
    %c0_i32_1 = arith.constant 0 : i32
    return %c0_i32, %c0_i32_0 : i32, i32
  }
  func.func @transform_6(%arg0: i32) -> (i32, i32) {
    %c0_i32 = arith.constant 0 : i32
    %c0_i32_0 = arith.constant 0 : i32
    %c0_i32_1 = arith.constant 0 : i32
    return %c0_i32, %c0_i32_0 : i32, i32
  }
  func.func @transform_7(%arg0: i32) -> (i32, i32, i32) {
    %c0_i32 = arith.constant 0 : i32
    %c0_i32_0 = arith.constant 0 : i32
    %c0_i32_1 = arith.constant 0 : i32
    return %arg0, %c0_i32, %c0_i32_0 : i32, i32, i32
  }
}

module attributes {stable_mosaic.version = 11 : i64} {
  func.func @_ln_linear_kernel(%arg0: i32, %arg1: memref<34x32xbf16, #tpu.memory_space<vmem>>, %arg2: memref<1x32xf32, #tpu.memory_space<vmem>>, %arg3: memref<1x32xf32, #tpu.memory_space<vmem>>, %arg4: memref<32x96xbf16, #tpu.memory_space<vmem>>, %arg5: memref<1x96xf32, #tpu.memory_space<vmem>>, %arg6: memref<34x96xbf16, #tpu.memory_space<vmem>>) attributes {dimension_semantics = [#tpu.dimension_semantics<parallel>], iteration_bounds = array<i64: 1>, scalar_prefetch = 0 : i64, scratch_operands = 0 : i64, tpu.core_type = #tpu.core_type<tc>, window_params = [{transform_indices = @transform_0, window_bounds = array<i64: 34, 32>}, {pipeline_mode = #tpu.pipeline_mode<synchronous>, transform_indices = @transform_1, window_bounds = array<i64: 1, 32>}, {pipeline_mode = #tpu.pipeline_mode<synchronous>, transform_indices = @transform_2, window_bounds = array<i64: 1, 32>}, {pipeline_mode = #tpu.pipeline_mode<synchronous>, transform_indices = @transform_3, window_bounds = array<i64: 32, 96>}, {pipeline_mode = #tpu.pipeline_mode<synchronous>, transform_indices = @transform_4, window_bounds = array<i64: 1, 96>}, {transform_indices = @transform_5, window_bounds = array<i64: 34, 96>}]} {
    %c0 = arith.constant 0 : index
    %c0_0 = arith.constant 0 : index
    %0 = vector.load %arg1[%c0, %c0_0] : memref<34x32xbf16, #tpu.memory_space<vmem>>, vector<34x32xbf16>
    %1 = arith.extf %0 : vector<34x32xbf16> to vector<34x32xf32>
    %c0_1 = arith.constant 0 : index
    %c0_2 = arith.constant 0 : index
    %2 = vector.load %arg2[%c0_1, %c0_2] : memref<1x32xf32, #tpu.memory_space<vmem>>, vector<1x32xf32>
    %c0_3 = arith.constant 0 : index
    %c0_4 = arith.constant 0 : index
    %3 = vector.load %arg3[%c0_3, %c0_4] : memref<1x32xf32, #tpu.memory_space<vmem>>, vector<1x32xf32>
    %cst = arith.constant dense<0.000000e+00> : vector<34xf32>
    %4 = vector.multi_reduction <add>, %1, %cst [1] : vector<34x32xf32> to vector<34xf32>
    %5 = vector.shape_cast %4 : vector<34xf32> to vector<34x1xf32>
    %cst_5 = arith.constant 3.200000e+01 : f32
    %6 = vector.broadcast %cst_5 : f32 to vector<34x1xf32>
    %7 = arith.divf %5, %6 : vector<34x1xf32>
    %8 = vector.broadcast %7 : vector<34x1xf32> to vector<34x32xf32>
    %9 = arith.subf %1, %8 : vector<34x32xf32>
    %10 = arith.mulf %9, %9 : vector<34x32xf32>
    %cst_6 = arith.constant dense<0.000000e+00> : vector<34xf32>
    %11 = vector.multi_reduction <add>, %10, %cst_6 [1] : vector<34x32xf32> to vector<34xf32>
    %12 = vector.shape_cast %11 : vector<34xf32> to vector<34x1xf32>
    %cst_7 = arith.constant 3.200000e+01 : f32
    %13 = vector.broadcast %cst_7 : f32 to vector<34x1xf32>
    %14 = arith.divf %12, %13 : vector<34x1xf32>
    %cst_8 = arith.constant 9.99999996E-13 : f32
    %15 = vector.broadcast %cst_8 : f32 to vector<34x1xf32>
    %16 = arith.addf %14, %15 : vector<34x1xf32>
    %17 = math.rsqrt %16 : vector<34x1xf32>
    %18 = vector.broadcast %17 : vector<34x1xf32> to vector<34x32xf32>
    %19 = arith.mulf %9, %18 : vector<34x32xf32>
    %20 = vector.broadcast %2 : vector<1x32xf32> to vector<34x32xf32>
    %21 = arith.mulf %19, %20 : vector<34x32xf32>
    %22 = vector.broadcast %3 : vector<1x32xf32> to vector<34x32xf32>
    %23 = arith.addf %21, %22 : vector<34x32xf32>
    %24 = arith.truncf %23 : vector<34x32xf32> to vector<34x32xbf16>
    %c0_9 = arith.constant 0 : index
    %c0_10 = arith.constant 0 : index
    %25 = vector.load %arg4[%c0_9, %c0_10] : memref<32x96xbf16, #tpu.memory_space<vmem>>, vector<32x96xbf16>
    %cst_11 = arith.constant dense<0.000000e+00> : vector<34x96xf32>
    %26 = tpu.matmul %24, %25, %cst_11 {dimension_numbers = #tpu.dot_dimension_numbers<[1], [0], [0], [1], [0, 0, 1, 1], [], []>} : vector<34x32xbf16>, vector<32x96xbf16>, vector<34x96xf32> -> vector<34x96xf32>
    %c0_12 = arith.constant 0 : index
    %c0_13 = arith.constant 0 : index
    %27 = vector.load %arg5[%c0_12, %c0_13] : memref<1x96xf32, #tpu.memory_space<vmem>>, vector<1x96xf32>
    %28 = vector.broadcast %27 : vector<1x96xf32> to vector<34x96xf32>
    %29 = arith.addf %26, %28 : vector<34x96xf32>
    %30 = arith.truncf %29 : vector<34x96xf32> to vector<34x96xbf16>
    %c0_14 = arith.constant 0 : index
    %c0_15 = arith.constant 0 : index
    %31 = vector.load %arg6[%c0_14, %c0_15] : memref<34x96xbf16, #tpu.memory_space<vmem>>, vector<34x96xbf16>
    tpu.vector_store %arg6[%c0_14, %c0_15], %30 {strides = array<i32>} : memref<34x96xbf16, #tpu.memory_space<vmem>>, vector<34x96xbf16>,
    return
  }
  func.func @transform_0(%arg0: i32) -> (i32, i32) {
    %c0_i32 = arith.constant 0 : i32
    %c0_i32_0 = arith.constant 0 : i32
    return %arg0, %c0_i32 : i32, i32
  }
  func.func @transform_1(%arg0: i32) -> (i32, i32) {
    %c0_i32 = arith.constant 0 : i32
    %c0_i32_0 = arith.constant 0 : i32
    %c0_i32_1 = arith.constant 0 : i32
    return %c0_i32, %c0_i32_0 : i32, i32
  }
  func.func @transform_2(%arg0: i32) -> (i32, i32) {
    %c0_i32 = arith.constant 0 : i32
    %c0_i32_0 = arith.constant 0 : i32
    %c0_i32_1 = arith.constant 0 : i32
    return %c0_i32, %c0_i32_0 : i32, i32
  }
  func.func @transform_3(%arg0: i32) -> (i32, i32) {
    %c0_i32 = arith.constant 0 : i32
    %c0_i32_0 = arith.constant 0 : i32
    %c0_i32_1 = arith.constant 0 : i32
    return %c0_i32, %c0_i32_0 : i32, i32
  }
  func.func @transform_4(%arg0: i32) -> (i32, i32) {
    %c0_i32 = arith.constant 0 : i32
    %c0_i32_0 = arith.constant 0 : i32
    %c0_i32_1 = arith.constant 0 : i32
    return %c0_i32, %c0_i32_0 : i32, i32
  }
  func.func @transform_5(%arg0: i32) -> (i32, i32) {
    %c0_i32 = arith.constant 0 : i32
    %c0_i32_0 = arith.constant 0 : i32
    return %arg0, %c0_i32 : i32, i32
  }
}

module attributes {stable_mosaic.version = 11 : i64} {
  func.func @_mlp_kernel(%arg0: i32, %arg1: memref<34x32xbf16, #tpu.memory_space<vmem>>, %arg2: memref<1x32xf32, #tpu.memory_space<vmem>>, %arg3: memref<1x32xf32, #tpu.memory_space<vmem>>, %arg4: memref<32x128xbf16, #tpu.memory_space<vmem>>, %arg5: memref<1x128xf32, #tpu.memory_space<vmem>>, %arg6: memref<128x32xbf16, #tpu.memory_space<vmem>>, %arg7: memref<1x32xf32, #tpu.memory_space<vmem>>, %arg8: memref<34x32xbf16, #tpu.memory_space<vmem>>) attributes {dimension_semantics = [#tpu.dimension_semantics<parallel>], iteration_bounds = array<i64: 1>, scalar_prefetch = 0 : i64, scratch_operands = 0 : i64, tpu.core_type = #tpu.core_type<tc>, window_params = [{transform_indices = @transform_0, window_bounds = array<i64: 34, 32>}, {pipeline_mode = #tpu.pipeline_mode<synchronous>, transform_indices = @transform_1, window_bounds = array<i64: 1, 32>}, {pipeline_mode = #tpu.pipeline_mode<synchronous>, transform_indices = @transform_2, window_bounds = array<i64: 1, 32>}, {pipeline_mode = #tpu.pipeline_mode<synchronous>, transform_indices = @transform_3, window_bounds = array<i64: 32, 128>}, {pipeline_mode = #tpu.pipeline_mode<synchronous>, transform_indices = @transform_4, window_bounds = array<i64: 1, 128>}, {pipeline_mode = #tpu.pipeline_mode<synchronous>, transform_indices = @transform_5, window_bounds = array<i64: 128, 32>}, {pipeline_mode = #tpu.pipeline_mode<synchronous>, transform_indices = @transform_6, window_bounds = array<i64: 1, 32>}, {transform_indices = @transform_7, window_bounds = array<i64: 34, 32>}]} {
    %c0 = arith.constant 0 : index
    %c0_0 = arith.constant 0 : index
    %0 = vector.load %arg1[%c0, %c0_0] : memref<34x32xbf16, #tpu.memory_space<vmem>>, vector<34x32xbf16>
    %1 = arith.extf %0 : vector<34x32xbf16> to vector<34x32xf32>
    %c0_1 = arith.constant 0 : index
    %c0_2 = arith.constant 0 : index
    %2 = vector.load %arg2[%c0_1, %c0_2] : memref<1x32xf32, #tpu.memory_space<vmem>>, vector<1x32xf32>
    %c0_3 = arith.constant 0 : index
    %c0_4 = arith.constant 0 : index
    %3 = vector.load %arg3[%c0_3, %c0_4] : memref<1x32xf32, #tpu.memory_space<vmem>>, vector<1x32xf32>
    %cst = arith.constant dense<0.000000e+00> : vector<34xf32>
    %4 = vector.multi_reduction <add>, %1, %cst [1] : vector<34x32xf32> to vector<34xf32>
    %5 = vector.shape_cast %4 : vector<34xf32> to vector<34x1xf32>
    %cst_5 = arith.constant 3.200000e+01 : f32
    %6 = vector.broadcast %cst_5 : f32 to vector<34x1xf32>
    %7 = arith.divf %5, %6 : vector<34x1xf32>
    %8 = vector.broadcast %7 : vector<34x1xf32> to vector<34x32xf32>
    %9 = arith.subf %1, %8 : vector<34x32xf32>
    %10 = arith.mulf %9, %9 : vector<34x32xf32>
    %cst_6 = arith.constant dense<0.000000e+00> : vector<34xf32>
    %11 = vector.multi_reduction <add>, %10, %cst_6 [1] : vector<34x32xf32> to vector<34xf32>
    %12 = vector.shape_cast %11 : vector<34xf32> to vector<34x1xf32>
    %cst_7 = arith.constant 3.200000e+01 : f32
    %13 = vector.broadcast %cst_7 : f32 to vector<34x1xf32>
    %14 = arith.divf %12, %13 : vector<34x1xf32>
    %cst_8 = arith.constant 9.99999996E-13 : f32
    %15 = vector.broadcast %cst_8 : f32 to vector<34x1xf32>
    %16 = arith.addf %14, %15 : vector<34x1xf32>
    %17 = math.rsqrt %16 : vector<34x1xf32>
    %18 = vector.broadcast %17 : vector<34x1xf32> to vector<34x32xf32>
    %19 = arith.mulf %9, %18 : vector<34x32xf32>
    %20 = vector.broadcast %2 : vector<1x32xf32> to vector<34x32xf32>
    %21 = arith.mulf %19, %20 : vector<34x32xf32>
    %22 = vector.broadcast %3 : vector<1x32xf32> to vector<34x32xf32>
    %23 = arith.addf %21, %22 : vector<34x32xf32>
    %24 = arith.truncf %23 : vector<34x32xf32> to vector<34x32xbf16>
    %c0_9 = arith.constant 0 : index
    %c0_10 = arith.constant 0 : index
    %25 = vector.load %arg4[%c0_9, %c0_10] : memref<32x128xbf16, #tpu.memory_space<vmem>>, vector<32x128xbf16>
    %cst_11 = arith.constant dense<0.000000e+00> : vector<34x128xf32>
    %26 = tpu.matmul %24, %25, %cst_11 {dimension_numbers = #tpu.dot_dimension_numbers<[1], [0], [0], [1], [0, 0, 1, 1], [], []>} : vector<34x32xbf16>, vector<32x128xbf16>, vector<34x128xf32> -> vector<34x128xf32>
    %c0_12 = arith.constant 0 : index
    %c0_13 = arith.constant 0 : index
    %27 = vector.load %arg5[%c0_12, %c0_13] : memref<1x128xf32, #tpu.memory_space<vmem>>, vector<1x128xf32>
    %28 = vector.broadcast %27 : vector<1x128xf32> to vector<34x128xf32>
    %29 = arith.addf %26, %28 : vector<34x128xf32>
    %30 = arith.mulf %29, %29 : vector<34x128xf32>
    %31 = arith.mulf %29, %30 : vector<34x128xf32>
    %cst_14 = arith.constant 4.471500e-02 : f32
    %32 = vector.broadcast %cst_14 : f32 to vector<34x128xf32>
    %33 = arith.mulf %32, %31 : vector<34x128xf32>
    %34 = arith.addf %29, %33 : vector<34x128xf32>
    %cst_15 = arith.constant 0.797884583 : f32
    %35 = vector.broadcast %cst_15 : f32 to vector<34x128xf32>
    %36 = arith.mulf %35, %34 : vector<34x128xf32>
    %37 = math.tanh %36 : vector<34x128xf32>
    %cst_16 = arith.constant 1.000000e+00 : f32
    %38 = vector.broadcast %cst_16 : f32 to vector<34x128xf32>
    %39 = arith.addf %38, %37 : vector<34x128xf32>
    %cst_17 = arith.constant 5.000000e-01 : f32
    %40 = vector.broadcast %cst_17 : f32 to vector<34x128xf32>
    %41 = arith.mulf %40, %39 : vector<34x128xf32>
    %42 = arith.mulf %29, %41 : vector<34x128xf32>
    %43 = arith.truncf %42 : vector<34x128xf32> to vector<34x128xbf16>
    %c0_18 = arith.constant 0 : index
    %c0_19 = arith.constant 0 : index
    %44 = vector.load %arg6[%c0_18, %c0_19] : memref<128x32xbf16, #tpu.memory_space<vmem>>, vector<128x32xbf16>
    %cst_20 = arith.constant dense<0.000000e+00> : vector<34x32xf32>
    %45 = tpu.matmul %43, %44, %cst_20 {dimension_numbers = #tpu.dot_dimension_numbers<[1], [0], [0], [1], [0, 0, 1, 1], [], []>} : vector<34x128xbf16>, vector<128x32xbf16>, vector<34x32xf32> -> vector<34x32xf32>
    %c0_21 = arith.constant 0 : index
    %c0_22 = arith.constant 0 : index
    %46 = vector.load %arg7[%c0_21, %c0_22] : memref<1x32xf32, #tpu.memory_space<vmem>>, vector<1x32xf32>
    %47 = vector.broadcast %46 : vector<1x32xf32> to vector<34x32xf32>
    %48 = arith.addf %45, %47 : vector<34x32xf32>
    %49 = arith.addf %1, %48 : vector<34x32xf32>
    %50 = arith.truncf %49 : vector<34x32xf32> to vector<34x32xbf16>
    %c0_23 = arith.constant 0 : index
    %c0_24 = arith.constant 0 : index
    %51 = vector.load %arg8[%c0_23, %c0_24] : memref<34x32xbf16, #tpu.memory_space<vmem>>, vector<34x32xbf16>
    tpu.vector_store %arg8[%c0_23, %c0_24], %50 {strides = array<i32>} : memref<34x32xbf16, #tpu.memory_space<vmem>>, vector<34x32xbf16>,
    return
  }
  func.func @transform_0(%arg0: i32) -> (i32, i32) {
    %c0_i32 = arith.constant 0 : i32
    %c0_i32_0 = arith.constant 0 : i32
    return %arg0, %c0_i32 : i32, i32
  }
  func.func @transform_1(%arg0: i32) -> (i32, i32) {
    %c0_i32 = arith.constant 0 : i32
    %c0_i32_0 = arith.constant 0 : i32
    %c0_i32_1 = arith.constant 0 : i32
    return %c0_i32, %c0_i32_0 : i32, i32
  }
  func.func @transform_2(%arg0: i32) -> (i32, i32) {
    %c0_i32 = arith.constant 0 : i32
    %c0_i32_0 = arith.constant 0 : i32
    %c0_i32_1 = arith.constant 0 : i32
    return %c0_i32, %c0_i32_0 : i32, i32
  }
  func.func @transform_3(%arg0: i32) -> (i32, i32) {
    %c0_i32 = arith.constant 0 : i32
    %c0_i32_0 = arith.constant 0 : i32
    %c0_i32_1 = arith.constant 0 : i32
    return %c0_i32, %c0_i32_0 : i32, i32
  }
  func.func @transform_4(%arg0: i32) -> (i32, i32) {
    %c0_i32 = arith.constant 0 : i32
    %c0_i32_0 = arith.constant 0 : i32
    %c0_i32_1 = arith.constant 0 : i32
    return %c0_i32, %c0_i32_0 : i32, i32
  }
  func.func @transform_5(%arg0: i32) -> (i32, i32) {
    %c0_i32 = arith.constant 0 : i32
    %c0_i32_0 = arith.constant 0 : i32
    %c0_i32_1 = arith.constant 0 : i32
    return %c0_i32, %c0_i32_0 : i32, i32
  }
  func.func @transform_6(%arg0: i32) -> (i32, i32) {
    %c0_i32 = arith.constant 0 : i32
    %c0_i32_0 = arith.constant 0 : i32
    %c0_i32_1 = arith.constant 0 : i32
    return %c0_i32, %c0_i32_0 : i32, i32
  }
  func.func @transform_7(%arg0: i32) -> (i32, i32) {
    %c0_i32 = arith.constant 0 : i32
    %c0_i32_0 = arith.constant 0 : i32
    return %arg0, %c0_i32 : i32, i32
  }
}

module attributes {stable_mosaic.version = 11 : i64} {
  func.func @_attn_proj_kernel(%arg0: i32, %arg1: memref<1x17x96xbf16, #tpu.memory_space<vmem>>, %arg2: memref<1x17x32xbf16, #tpu.memory_space<vmem>>, %arg3: memref<32x32xbf16, #tpu.memory_space<vmem>>, %arg4: memref<1x32xf32, #tpu.memory_space<vmem>>, %arg5: memref<1x17x32xbf16, #tpu.memory_space<vmem>>) attributes {dimension_semantics = [#tpu.dimension_semantics<parallel>], iteration_bounds = array<i64: 2>, scalar_prefetch = 0 : i64, scratch_operands = 0 : i64, tpu.core_type = #tpu.core_type<tc>, window_params = [{transform_indices = @transform_0, window_bounds = array<i64: 1, 17, 96>}, {transform_indices = @transform_1, window_bounds = array<i64: 1, 17, 32>}, {pipeline_mode = #tpu.pipeline_mode<synchronous>, transform_indices = @transform_2, window_bounds = array<i64: 32, 32>}, {pipeline_mode = #tpu.pipeline_mode<synchronous>, transform_indices = @transform_3, window_bounds = array<i64: 1, 32>}, {transform_indices = @transform_4, window_bounds = array<i64: 1, 17, 32>}]} {
    %c0 = arith.constant 0 : index
    %c0_0 = arith.constant 0 : index
    %c0_1 = arith.constant 0 : index
    %0 = vector.load %arg1[%c0, %c0_0, %c0_1] : memref<1x17x96xbf16, #tpu.memory_space<vmem>>, vector<1x17x96xbf16>
    %1 = vector.shape_cast %0 : vector<1x17x96xbf16> to vector<17x96xbf16>
    %2 = vector.extract_strided_slice %1 {offsets = [0, 0], sizes = [17, 32], strides = [1, 1]} : vector<17x96xbf16> to vector<17x32xbf16>
    %3 = vector.shape_cast %2 : vector<17x32xbf16> to vector<17x4x8xbf16>
    %4 = tpu.transpose %3, [1, 0, 2] : vector<17x4x8xbf16> -> vector<4x17x8xbf16>
    %5 = vector.extract_strided_slice %1 {offsets = [0, 32], sizes = [17, 32], strides = [1, 1]} : vector<17x96xbf16> to vector<17x32xbf16>
    %6 = vector.shape_cast %5 : vector<17x32xbf16> to vector<17x4x8xbf16>
    %7 = tpu.transpose %6, [1, 0, 2] : vector<17x4x8xbf16> -> vector<4x17x8xbf16>
    %8 = vector.extract_strided_slice %1 {offsets = [0, 64], sizes = [17, 32], strides = [1, 1]} : vector<17x96xbf16> to vector<17x32xbf16>
    %9 = vector.shape_cast %8 : vector<17x32xbf16> to vector<17x4x8xbf16>
    %10 = tpu.transpose %9, [1, 0, 2] : vector<17x4x8xbf16> -> vector<4x17x8xbf16>
    "tpu.trace_start"() <{level = 10 : i32, message = "hqd,hkd->hqk"}> : () -> ()
    %cst = arith.constant dense<0.000000e+00> : vector<4x17x17xf32>
    %11 = tpu.matmul %4, %7, %cst {dimension_numbers = #tpu.dot_dimension_numbers<[2], [2], [1], [1], [0, 0, 0, 1, 1, 1], [0], [0]>} : vector<4x17x8xbf16>, vector<4x17x8xbf16>, vector<4x17x17xf32> -> vector<4x17x17xf32>
    "tpu.trace_stop"() : () -> ()
    %cst_2 = arith.constant 0.353553385 : f32
    %12 = vector.broadcast %cst_2 : f32 to vector<4x17x17xf32>
    %13 = arith.mulf %11, %12 : vector<4x17x17xf32>
    %cst_3 = arith.constant dense<0xFF800000> : vector<4x17xf32>
    %14 = vector.multi_reduction <maximumf>, %13, %cst_3 [2] : vector<4x17x17xf32> to vector<4x17xf32>
    %15 = vector.shape_cast %14 : vector<4x17xf32> to vector<4x17x1xf32>
    %16 = vector.broadcast %15 : vector<4x17x1xf32> to vector<4x17x17xf32>
    %17 = arith.subf %13, %16 : vector<4x17x17xf32>
    %18 = math.exp %17 : vector<4x17x17xf32>
    %cst_4 = arith.constant dense<0.000000e+00> : vector<4x17xf32>
    %19 = vector.multi_reduction <add>, %18, %cst_4 [2] : vector<4x17x17xf32> to vector<4x17xf32>
    %20 = vector.shape_cast %19 : vector<4x17xf32> to vector<4x17x1xf32>
    %21 = tpu.reciprocal %20 {approx = true} : vector<4x17x1xf32> -> vector<4x17x1xf32>
    %22 = vector.broadcast %21 : vector<4x17x1xf32> to vector<4x17x17xf32>
    %23 = arith.mulf %18, %22 : vector<4x17x17xf32>
    %24 = arith.truncf %23 : vector<4x17x17xf32> to vector<4x17x17xbf16>
    "tpu.trace_start"() <{level = 10 : i32, message = "hqk,hkd->hqd"}> : () -> ()
    %cst_5 = arith.constant dense<0.000000e+00> : vector<4x17x8xf32>
    %25 = tpu.matmul %24, %10, %cst_5 {dimension_numbers = #tpu.dot_dimension_numbers<[2], [1], [1], [2], [0, 0, 0, 1, 1, 2], [0], [0]>} : vector<4x17x17xbf16>, vector<4x17x8xbf16>, vector<4x17x8xf32> -> vector<4x17x8xf32>
    "tpu.trace_stop"() : () -> ()
    %26 = tpu.transpose %25, [1, 0, 2] : vector<4x17x8xf32> -> vector<17x4x8xf32>
    %27 = vector.shape_cast %26 : vector<17x4x8xf32> to vector<17x32xf32>
    %28 = arith.truncf %27 : vector<17x32xf32> to vector<17x32xbf16>
    %c0_6 = arith.constant 0 : index
    %c0_7 = arith.constant 0 : index
    %29 = vector.load %arg3[%c0_6, %c0_7] : memref<32x32xbf16, #tpu.memory_space<vmem>>, vector<32x32xbf16>
    %cst_8 = arith.constant dense<0.000000e+00> : vector<17x32xf32>
    %30 = tpu.matmul %28, %29, %cst_8 {dimension_numbers = #tpu.dot_dimension_numbers<[1], [0], [0], [1], [0, 0, 1, 1], [], []>} : vector<17x32xbf16>, vector<32x32xbf16>, vector<17x32xf32> -> vector<17x32xf32>
    %c0_9 = arith.constant 0 : index
    %c0_10 = arith.constant 0 : index
    %31 = vector.load %arg4[%c0_9, %c0_10] : memref<1x32xf32, #tpu.memory_space<vmem>>, vector<1x32xf32>
    %32 = vector.broadcast %31 : vector<1x32xf32> to vector<17x32xf32>
    %33 = arith.addf %30, %32 : vector<17x32xf32>
    %c0_11 = arith.constant 0 : index
    %c0_12 = arith.constant 0 : index
    %c0_13 = arith.constant 0 : index
    %34 = vector.load %arg2[%c0_11, %c0_12, %c0_13] : memref<1x17x32xbf16, #tpu.memory_space<vmem>>, vector<1x17x32xbf16>
    %35 = vector.shape_cast %34 : vector<1x17x32xbf16> to vector<17x32xbf16>
    %36 = arith.extf %35 : vector<17x32xbf16> to vector<17x32xf32>
    %37 = arith.addf %33, %36 : vector<17x32xf32>
    %38 = arith.truncf %37 : vector<17x32xf32> to vector<17x32xbf16>
    %c0_14 = arith.constant 0 : index
    %c0_15 = arith.constant 0 : index
    %c0_16 = arith.constant 0 : index
    %39 = vector.load %arg5[%c0_14, %c0_15, %c0_16] : memref<1x17x32xbf16, #tpu.memory_space<vmem>>, vector<1x17x32xbf16>
    %40 = vector.shape_cast %39 : vector<1x17x32xbf16> to vector<17x32xbf16>
    %41 = vector.shape_cast %38 : vector<17x32xbf16> to vector<1x17x32xbf16>
    tpu.vector_store %arg5[%c0_14, %c0_15, %c0_16], %41 {strides = array<i32>} : memref<1x17x32xbf16, #tpu.memory_space<vmem>>, vector<1x17x32xbf16>,
    return
  }
  func.func @transform_0(%arg0: i32) -> (i32, i32, i32) {
    %c0_i32 = arith.constant 0 : i32
    %c0_i32_0 = arith.constant 0 : i32
    %c0_i32_1 = arith.constant 0 : i32
    return %arg0, %c0_i32, %c0_i32_0 : i32, i32, i32
  }
  func.func @transform_1(%arg0: i32) -> (i32, i32, i32) {
    %c0_i32 = arith.constant 0 : i32
    %c0_i32_0 = arith.constant 0 : i32
    %c0_i32_1 = arith.constant 0 : i32
    return %arg0, %c0_i32, %c0_i32_0 : i32, i32, i32
  }
  func.func @transform_2(%arg0: i32) -> (i32, i32) {
    %c0_i32 = arith.constant 0 : i32
    %c0_i32_0 = arith.constant 0 : i32
    %c0_i32_1 = arith.constant 0 : i32
    return %c0_i32, %c0_i32_0 : i32, i32
  }
  func.func @transform_3(%arg0: i32) -> (i32, i32) {
    %c0_i32 = arith.constant 0 : i32
    %c0_i32_0 = arith.constant 0 : i32
    %c0_i32_1 = arith.constant 0 : i32
    return %c0_i32, %c0_i32_0 : i32, i32
  }
  func.func @transform_4(%arg0: i32) -> (i32, i32, i32) {
    %c0_i32 = arith.constant 0 : i32
    %c0_i32_0 = arith.constant 0 : i32
    %c0_i32_1 = arith.constant 0 : i32
    return %arg0, %c0_i32, %c0_i32_0 : i32, i32, i32
  }
}

module attributes {stable_mosaic.version = 11 : i64} {
  func.func @_layernorm_kernel(%arg0: i32, %arg1: memref<34x32xbf16, #tpu.memory_space<vmem>>, %arg2: memref<1x32xf32, #tpu.memory_space<vmem>>, %arg3: memref<1x32xf32, #tpu.memory_space<vmem>>, %arg4: memref<34x32xbf16, #tpu.memory_space<vmem>>) attributes {dimension_semantics = [#tpu.dimension_semantics<parallel>], iteration_bounds = array<i64: 1>, scalar_prefetch = 0 : i64, scratch_operands = 0 : i64, tpu.core_type = #tpu.core_type<tc>, window_params = [{transform_indices = @transform_0, window_bounds = array<i64: 34, 32>}, {pipeline_mode = #tpu.pipeline_mode<synchronous>, transform_indices = @transform_1, window_bounds = array<i64: 1, 32>}, {pipeline_mode = #tpu.pipeline_mode<synchronous>, transform_indices = @transform_2, window_bounds = array<i64: 1, 32>}, {transform_indices = @transform_3, window_bounds = array<i64: 34, 32>}]} {
    %c0 = arith.constant 0 : index
    %c0_0 = arith.constant 0 : index
    %0 = vector.load %arg1[%c0, %c0_0] : memref<34x32xbf16, #tpu.memory_space<vmem>>, vector<34x32xbf16>
    %1 = arith.extf %0 : vector<34x32xbf16> to vector<34x32xf32>
    %c0_1 = arith.constant 0 : index
    %c0_2 = arith.constant 0 : index
    %2 = vector.load %arg2[%c0_1, %c0_2] : memref<1x32xf32, #tpu.memory_space<vmem>>, vector<1x32xf32>
    %c0_3 = arith.constant 0 : index
    %c0_4 = arith.constant 0 : index
    %3 = vector.load %arg3[%c0_3, %c0_4] : memref<1x32xf32, #tpu.memory_space<vmem>>, vector<1x32xf32>
    %cst = arith.constant dense<0.000000e+00> : vector<34xf32>
    %4 = vector.multi_reduction <add>, %1, %cst [1] : vector<34x32xf32> to vector<34xf32>
    %5 = vector.shape_cast %4 : vector<34xf32> to vector<34x1xf32>
    %cst_5 = arith.constant 3.200000e+01 : f32
    %6 = vector.broadcast %cst_5 : f32 to vector<34x1xf32>
    %7 = arith.divf %5, %6 : vector<34x1xf32>
    %8 = vector.broadcast %7 : vector<34x1xf32> to vector<34x32xf32>
    %9 = arith.subf %1, %8 : vector<34x32xf32>
    %10 = arith.mulf %9, %9 : vector<34x32xf32>
    %cst_6 = arith.constant dense<0.000000e+00> : vector<34xf32>
    %11 = vector.multi_reduction <add>, %10, %cst_6 [1] : vector<34x32xf32> to vector<34xf32>
    %12 = vector.shape_cast %11 : vector<34xf32> to vector<34x1xf32>
    %cst_7 = arith.constant 3.200000e+01 : f32
    %13 = vector.broadcast %cst_7 : f32 to vector<34x1xf32>
    %14 = arith.divf %12, %13 : vector<34x1xf32>
    %cst_8 = arith.constant 9.99999996E-13 : f32
    %15 = vector.broadcast %cst_8 : f32 to vector<34x1xf32>
    %16 = arith.addf %14, %15 : vector<34x1xf32>
    %17 = math.rsqrt %16 : vector<34x1xf32>
    %18 = vector.broadcast %17 : vector<34x1xf32> to vector<34x32xf32>
    %19 = arith.mulf %9, %18 : vector<34x32xf32>
    %20 = vector.broadcast %2 : vector<1x32xf32> to vector<34x32xf32>
    %21 = arith.mulf %19, %20 : vector<34x32xf32>
    %22 = vector.broadcast %3 : vector<1x32xf32> to vector<34x32xf32>
    %23 = arith.addf %21, %22 : vector<34x32xf32>
    %24 = arith.truncf %23 : vector<34x32xf32> to vector<34x32xbf16>
    %c0_9 = arith.constant 0 : index
    %c0_10 = arith.constant 0 : index
    %25 = vector.load %arg4[%c0_9, %c0_10] : memref<34x32xbf16, #tpu.memory_space<vmem>>, vector<34x32xbf16>
    tpu.vector_store %arg4[%c0_9, %c0_10], %24 {strides = array<i32>} : memref<34x32xbf16, #tpu.memory_space<vmem>>, vector<34x32xbf16>,
    return
  }
  func.func @transform_0(%arg0: i32) -> (i32, i32) {
    %c0_i32 = arith.constant 0 : i32
    %c0_i32_0 = arith.constant 0 : i32
    return %arg0, %c0_i32 : i32, i32
  }
  func.func @transform_1(%arg0: i32) -> (i32, i32) {
    %c0_i32 = arith.constant 0 : i32
    %c0_i32_0 = arith.constant 0 : i32
    %c0_i32_1 = arith.constant 0 : i32
    return %c0_i32, %c0_i32_0 : i32, i32
  }
  func.func @transform_2(%arg0: i32) -> (i32, i32) {
    %c0_i32 = arith.constant 0 : i32
    %c0_i32_0 = arith.constant 0 : i32
    %c0_i32_1 = arith.constant 0 : i32
    return %c0_i32, %c0_i32_0 : i32, i32
  }
  func.func @transform_3(%arg0: i32) -> (i32, i32) {
    %c0_i32 = arith.constant 0 : i32
    %c0_i32_0 = arith.constant 0 : i32
    return %arg0, %c0_i32 : i32, i32
  }
}

module attributes {stable_mosaic.version = 11 : i64} {
  func.func @_linear_kernel(%arg0: i32, %arg1: memref<2x32xbf16, #tpu.memory_space<vmem>>, %arg2: memref<32x128xbf16, #tpu.memory_space<vmem>>, %arg3: memref<1x128xf32, #tpu.memory_space<vmem>>, %arg4: memref<2x128xf32, #tpu.memory_space<vmem>>) attributes {dimension_semantics = [#tpu.dimension_semantics<parallel>], iteration_bounds = array<i64: 1>, scalar_prefetch = 0 : i64, scratch_operands = 0 : i64, tpu.core_type = #tpu.core_type<tc>, window_params = [{transform_indices = @transform_0, window_bounds = array<i64: 2, 32>}, {pipeline_mode = #tpu.pipeline_mode<synchronous>, transform_indices = @transform_1, window_bounds = array<i64: 32, 128>}, {pipeline_mode = #tpu.pipeline_mode<synchronous>, transform_indices = @transform_2, window_bounds = array<i64: 1, 128>}, {transform_indices = @transform_3, window_bounds = array<i64: 2, 128>}]} {
    %c0 = arith.constant 0 : index
    %c0_0 = arith.constant 0 : index
    %0 = vector.load %arg1[%c0, %c0_0] : memref<2x32xbf16, #tpu.memory_space<vmem>>, vector<2x32xbf16>
    %c0_1 = arith.constant 0 : index
    %c0_2 = arith.constant 0 : index
    %1 = vector.load %arg2[%c0_1, %c0_2] : memref<32x128xbf16, #tpu.memory_space<vmem>>, vector<32x128xbf16>
    %cst = arith.constant dense<0.000000e+00> : vector<2x128xf32>
    %2 = tpu.matmul %0, %1, %cst {dimension_numbers = #tpu.dot_dimension_numbers<[1], [0], [0], [1], [0, 0, 1, 1], [], []>} : vector<2x32xbf16>, vector<32x128xbf16>, vector<2x128xf32> -> vector<2x128xf32>
    %c0_3 = arith.constant 0 : index
    %c0_4 = arith.constant 0 : index
    %3 = vector.load %arg3[%c0_3, %c0_4] : memref<1x128xf32, #tpu.memory_space<vmem>>, vector<1x128xf32>
    %4 = vector.broadcast %3 : vector<1x128xf32> to vector<2x128xf32>
    %5 = arith.addf %2, %4 : vector<2x128xf32>
    %c0_5 = arith.constant 0 : index
    %c0_6 = arith.constant 0 : index
    %6 = vector.load %arg4[%c0_5, %c0_6] : memref<2x128xf32, #tpu.memory_space<vmem>>, vector<2x128xf32>
    tpu.vector_store %arg4[%c0_5, %c0_6], %5 {strides = array<i32>} : memref<2x128xf32, #tpu.memory_space<vmem>>, vector<2x128xf32>,
    return
  }
  func.func @transform_0(%arg0: i32) -> (i32, i32) {
    %c0_i32 = arith.constant 0 : i32
    %c0_i32_0 = arith.constant 0 : i32
    return %arg0, %c0_i32 : i32, i32
  }
  func.func @transform_1(%arg0: i32) -> (i32, i32) {
    %c0_i32 = arith.constant 0 : i32
    %c0_i32_0 = arith.constant 0 : i32
    %c0_i32_1 = arith.constant 0 : i32
    return %c0_i32, %c0_i32_0 : i32, i32
  }
  func.func @transform_2(%arg0: i32) -> (i32, i32) {
    %c0_i32 = arith.constant 0 : i32
    %c0_i32_0 = arith.constant 0 : i32
    %c0_i32_1 = arith.constant 0 : i32
    return %c0_i32, %c0_i32_0 : i32, i32
  }
  func.func @transform_3(%arg0: i32) -> (i32, i32) {
    %c0_i32 = arith.constant 0 : i32
    %c0_i32_0 = arith.constant 0 : i32
    return %arg0, %c0_i32 : i32, i32
  }
}

module attributes {stable_mosaic.version = 11 : i64} {
  func.func @_linear_kernel(%arg0: i32, %arg1: memref<32x32xbf16, #tpu.memory_space<vmem>>, %arg2: memref<32x128xbf16, #tpu.memory_space<vmem>>, %arg3: memref<1x128xf32, #tpu.memory_space<vmem>>, %arg4: memref<32x128xf32, #tpu.memory_space<vmem>>) attributes {dimension_semantics = [#tpu.dimension_semantics<parallel>], iteration_bounds = array<i64: 1>, scalar_prefetch = 0 : i64, scratch_operands = 0 : i64, tpu.core_type = #tpu.core_type<tc>, window_params = [{transform_indices = @transform_0, window_bounds = array<i64: 32, 32>}, {pipeline_mode = #tpu.pipeline_mode<synchronous>, transform_indices = @transform_1, window_bounds = array<i64: 32, 128>}, {pipeline_mode = #tpu.pipeline_mode<synchronous>, transform_indices = @transform_2, window_bounds = array<i64: 1, 128>}, {transform_indices = @transform_3, window_bounds = array<i64: 32, 128>}]} {
    %c0 = arith.constant 0 : index
    %c0_0 = arith.constant 0 : index
    %0 = vector.load %arg1[%c0, %c0_0] : memref<32x32xbf16, #tpu.memory_space<vmem>>, vector<32x32xbf16>
    %c0_1 = arith.constant 0 : index
    %c0_2 = arith.constant 0 : index
    %1 = vector.load %arg2[%c0_1, %c0_2] : memref<32x128xbf16, #tpu.memory_space<vmem>>, vector<32x128xbf16>
    %cst = arith.constant dense<0.000000e+00> : vector<32x128xf32>
    %2 = tpu.matmul %0, %1, %cst {dimension_numbers = #tpu.dot_dimension_numbers<[1], [0], [0], [1], [0, 0, 1, 1], [], []>} : vector<32x32xbf16>, vector<32x128xbf16>, vector<32x128xf32> -> vector<32x128xf32>
    %c0_3 = arith.constant 0 : index
    %c0_4 = arith.constant 0 : index
    %3 = vector.load %arg3[%c0_3, %c0_4] : memref<1x128xf32, #tpu.memory_space<vmem>>, vector<1x128xf32>
    %4 = vector.broadcast %3 : vector<1x128xf32> to vector<32x128xf32>
    %5 = arith.addf %2, %4 : vector<32x128xf32>
    %c0_5 = arith.constant 0 : index
    %c0_6 = arith.constant 0 : index
    %6 = vector.load %arg4[%c0_5, %c0_6] : memref<32x128xf32, #tpu.memory_space<vmem>>, vector<32x128xf32>
    tpu.vector_store %arg4[%c0_5, %c0_6], %5 {strides = array<i32>} : memref<32x128xf32, #tpu.memory_space<vmem>>, vector<32x128xf32>,
    return
  }
  func.func @transform_0(%arg0: i32) -> (i32, i32) {
    %c0_i32 = arith.constant 0 : i32
    %c0_i32_0 = arith.constant 0 : i32
    return %arg0, %c0_i32 : i32, i32
  }
  func.func @transform_1(%arg0: i32) -> (i32, i32) {
    %c0_i32 = arith.constant 0 : i32
    %c0_i32_0 = arith.constant 0 : i32
    %c0_i32_1 = arith.constant 0 : i32
    return %c0_i32, %c0_i32_0 : i32, i32
  }
  func.func @transform_2(%arg0: i32) -> (i32, i32) {
    %c0_i32 = arith.constant 0 : i32
    %c0_i32_0 = arith.constant 0 : i32
    %c0_i32_1 = arith.constant 0 : i32
    return %c0_i32, %c0_i32_0 : i32, i32
  }
  func.func @transform_3(%arg0: i32) -> (i32, i32) {
    %c0_i32 = arith.constant 0 : i32
    %c0_i32_0 = arith.constant 0 : i32
    return %arg0, %c0_i32 : i32, i32
  }
}

</mosaic_0001>

<bundles_post_ra>
// kernel: vit_model_forward.11
= control target key start
LH: loop header
LB: loop body
LE: loop exit
PB: predicated region body
PF: predicated region fallthrough
CT: control target
= control target key end

     0   :  { %vm33_vm0 = vcmask 261120   ;;  %vm46_vm1 = vcmask 254976   ;;  %v312_v39 = vmov 0.0   ;;  %vm313_vm2 = vmmov 0   ;;  %s418_s0 = inlined_call_operand.vmem [shape: bf16[34,32], index: 0, kind: input, shape index: {}]   ;;  %s419_s3 = inlined_call_operand.vmem [shape: bf16[32,96], index: 3, kind: input, shape index: {}]   ;;  %s420_s1 = inlined_call_operand.vmem [shape: f32[1,32], index: 1, kind: input, shape index: {}]   ;;  %s421_s2 = inlined_call_operand.vmem [shape: f32[1,32], index: 2, kind: input, shape index: {}]   ;;  %s422_s4 = inlined_call_operand.vmem [shape: f32[1,96], index: 4, kind: input, shape index: {}]   ;;  %s423_s5 = inlined_call_operand.vmem [shape: bf16[34,96], index: 5, kind: output, shape index: {}]  }
   0x1   :  { %v272_v0 = vld [vmem:[%s418_s0 + $0x8] sm:$0xff]   ;;  %v265_v1 = vld [vmem:[%s418_s0] sm:$0xff]   ;;  %v25_v5 = vld [vmem:[%s418_s0 + $0x10] sm:$0x1]  ;;  %294 = vmatprep.subr.bf16.mxu1 %v312_v39  ;;  %278 = vmatprep.subr.bf16.mxu0 %v312_v39  ;;  %vm235_vm3 = vcmask 781312   ;;  %vm240_vm4 = vcmask 778240  }
   0x2   :  { %v270_v2 = vunpack.c.l.bf16 %v272_v0  ;;  %v271_v3 = vunpack.c.h.bf16 %v272_v0  ;;  %v266_v4 = vunpack.c.l.bf16 %v265_v1  ;;  %v267_v6 = vunpack.c.h.bf16 %v265_v1  ;;  %v300_v38 = vld [vmem:[%s419_s3] sm:$0xff]   ;;  %v301_v40 = vld [vmem:[%s419_s3 + $0x8] sm:$0xff]   ;;  %286 = vmatprep.mubr.msk.bf16.mxu1 %vm313_vm2, %v312_v39  ;;  %282 = vmatprep.mubr.msk.bf16.mxu0 %vm313_vm2, %v312_v39 }
   0x3   :  { %v30_v10 = vunpack.c.l.bf16 %v25_v5  ;;  %296 = vmatpush3.bf16.msra.mxu1 %v300_v38  ;;  %279 = vmatpush3.bf16.msra.mxu0 %v300_v38  ;;  %v246_v58 = vld [vmem:[%s420_s1] ss:$0 sm:$0xff] }
   0x4   :  { %v40_v7 = vsel %vm33_vm0, %v270_v2, 0.0  ;;  %v34_v8 = vsel %vm33_vm0, %v266_v4, 0.0  ;;  %v43_v9 = vsel %vm33_vm0, %v271_v3, 0.0  ;;  %v37_v11 = vsel %vm33_vm0, %v267_v6, 0.0  ;;  %295 = vmatprep.subr.bf16.mxu1 %v312_v39  ;;  %280 = vmatprep.subr.bf16.mxu0 %v312_v39  ;;  %v247_v0 = vld [vmem:[%s421_s2] ss:$0 sm:$0xff] }
   0x5   :  { %41 = vadd.xlane.f32.xlu0 %v40_v7  ;;  %35 = vadd.xlane.f32.xlu1 %v34_v8  ;;  %v47_v12 = vsel %vm46_vm1, %v30_v10, 0.0 }
   0x7   :  { %297 = vmatpush3.bf16.msra.mxu1 %v301_v40  ;;  %281 = vmatpush3.bf16.msra.mxu0 %v301_v40 }
   0x9   :  { %44 = vadd.xlane.f32.xlu0 %v43_v9  ;;  %38 = vadd.xlane.f32.xlu1 %v37_v11 }
   0xd   :  { %48 = vadd.xlane.f32.xlu0 %v47_v12 }
  0x92   :  { %v42_v13 = vpop.xlane.xlu0 %41  ;;  %v36_v14 = vpop.xlane.xlu1 %35 }
  0x93   :  { %v53_v15 = vmul.f32 0.03125, %v42_v13  ;;  %v51_v16 = vmul.f32 0.03125, %v36_v14 }
  0x95   :  { %v358_v17 = vsub.f32 %v270_v2, %v53_v15  ;;  %v360_v18 = vsub.f32 %v266_v4, %v51_v16 }
  0x96   :  { %v45_v19 = vpop.xlane.xlu0 %44  ;;  %v39_v20 = vpop.xlane.xlu1 %38 }
  0x97   :  { %v54_v21 = vmul.f32 0.03125, %v45_v19  ;;  %v63_v22 = vmul.f32 %v358_v17, %v358_v17  ;;  %v52_v23 = vmul.f32 0.03125, %v39_v20  ;;  %v61_v24 = vmul.f32 %v360_v18, %v360_v18 }
  0x99   :  { %v59_v25 = vsub.f32 %v271_v3, %v54_v21  ;;  %v72_v26 = vsel %vm33_vm0, %v63_v22, 0.0  ;;  %v367_v27 = vsub.f32 %v267_v6, %v52_v23  ;;  %v66_v31 = vsel %vm33_vm0, %v61_v24, 0.0 }
  0x9a   :  { %v49_v28 = vpop.xlane.xlu0 %48  ;;  %73 = vadd.xlane.f32.xlu1 %v72_v26 }
  0x9b   :  { %v55_v29 = vmul.f32 0.03125, %v49_v28  ;;  %v64_v30 = vmul.f32 %v59_v25, %v59_v25  ;;  %v62_v32 = vmul.f32 %v367_v27, %v367_v27 }
  0x9d   :  { %v60_v33 = vsub.f32 %v30_v10, %v55_v29  ;;  %v75_v34 = vsel %vm33_vm0, %v64_v30, 0.0  ;;  %v69_v36 = vsel %vm33_vm0, %v62_v32, 0.0 }
  0x9e   :  { %76 = vadd.xlane.f32.xlu0 %v75_v34  ;;  %67 = vadd.xlane.f32.xlu1 %v66_v31 }
  0x9f   :  { %v65_v35 = vmul.f32 %v60_v33, %v60_v33 }
  0xa1   :  { %v78_v37 = vsel %vm46_vm1, %v65_v35, 0.0 }
  0xa2   :  { %79 = vadd.xlane.f32.xlu1 %v78_v37  ;;  %70 = vadd.xlane.f32.xlu0 %v69_v36 }
 0x127   :  { %v74_v41 = vpop.xlane.xlu1 %73 }
 0x128   :  { %v83_v42 = vmul.f32 0.03125, %v74_v41 }
 0x12a   :  { %v88_v43 = vadd.f32 1e-12, %v83_v42 }
 0x12b   :  { %v77_v44 = vpop.xlane.xlu0 %76  ;;  %v68_v45 = vpop.xlane.xlu1 %67 }
 0x12c   :  { %302 = vrsqrt.f32 %v88_v43  ;;  %v84_v46 = vmul.f32 0.03125, %v77_v44  ;;  %v81_v47 = vmul.f32 0.03125, %v68_v45 }
 0x12e   :  { %v89_v48 = vadd.f32 1e-12, %v84_v46  ;;  %v86_v49 = vadd.f32 1e-12, %v81_v47 }
 0x12f   :  { %v71_v50 = vpop.xlane.xlu0 %70  ;;  %v80_v51 = vpop.xlane.xlu1 %79 }
 0x130   :  { %304 = vrsqrt.f32 %v89_v48  ;;  %v82_v52 = vmul.f32 0.03125, %v71_v50  ;;  %v85_v53 = vmul.f32 0.03125, %v80_v51 }
 0x131   :  { %306 = vrsqrt.f32 %v86_v49 }
 0x132   :  { %v87_v54 = vadd.f32 1e-12, %v82_v52  ;;  %v90_v55 = vadd.f32 1e-12, %v85_v53 }
 0x134   :  { %308 = vrsqrt.f32 %v87_v54 }
 0x135   :  { %310 = vrsqrt.f32 %v90_v55 }
 0x136   :  { %v303_v56 = vpop.eup %302 }
 0x137   :  { %v98_v57 = vmul.f32 %v303_v56, %v358_v17  ;;  %v248_v17 = vld [vmem:[%s422_s4] ss:$0 sm:$0xff] }
 0x139   :  { %v109_v62 = vmul.f32 %v246_v58, %v98_v57 }
 0x13a   :  { %v305_v59 = vpop.eup %304 }
 0x13b   :  { %v307_v60 = vpop.eup %306  ;;  %v99_v61 = vmul.f32 %v305_v59, %v59_v25  ;;  %v120_v5 = vadd.f32 %v247_v0, %v109_v62 }
 0x13c   :  { %v96_v63 = vmul.f32 %v307_v60, %v360_v18 }
 0x13d   :  { %v110_v1 = vmul.f32 %v246_v58, %v99_v61 }
 0x13e   :  { %v309_v2 = vpop.eup %308  ;;  %v107_v7 = vmul.f32 %v246_v58, %v96_v63 }
 0x13f   :  { %v311_v3 = vpop.eup %310  ;;  %v97_v4 = vmul.f32 %v309_v2, %v367_v27  ;;  %v121_v6 = vadd.f32 %v247_v0, %v110_v1 }
 0x140   :  { %v100_v8 = vmul.f32 %v311_v3, %v60_v33  ;;  %v118_v12 = vadd.f32 %v247_v0, %v107_v7 }
 0x141   :  { %v124_v9 = vpack.c.bf16 %v121_v6, %v120_v5  ;;  %v108_v10 = vmul.f32 %v246_v58, %v97_v4 }
 0x142   :  { %v111_v11 = vmul.f32 %v246_v58, %v100_v8 }
 0x143   :  { %287 = vmatmul.mubr.msk.bf16.vlgmr.msra.gmra.mrb[0].mxu1 %vm33_vm0, %v124_v9  ;;  %v119_v13 = vadd.f32 %v247_v0, %v108_v10 }
 0x144   :  { %290 = vmatprep.mubr.msk.bf16.mxu1 %vm313_vm2, %v312_v39  ;;  %v122_v15 = vadd.f32 %v247_v0, %v111_v11 }
 0x145   :  { %v123_v14 = vpack.c.bf16 %v119_v13, %v118_v12 }
 0x146   :  { %v125_v16 = vpack.c.bf16 %v122_v15, %v122_v15 }
 0x147   :  { %283 = vmatmul.mubr.msk.bf16.vlgmr.msra.gmra.mrb[0].mxu0 %vm33_vm0, %v123_v14 }
 0x14b   :  { %291 = vmatmul.mubr.msk.bf16.gmra.mrb[4].mxu1 %vm33_vm0, %v125_v16 }
 0x216   :  { %v200_v18 = vpop.f32.mrb[0].mxu1 }
 0x217   :  { %v201_v19 = vadd.f32 %v248_v17, %v200_v18  ;;  %v288_v20 = vpop.f32.mrb[1].mxu1 }
 0x218   :  { %v203_v21 = vpop.f32.mrb[2].mxu1 }
 0x219   :  { %v261_v22 = vpack.c.bf16 %v201_v19, %v201_v19  ;;  %v204_v23 = vadd.f32 %v248_v17, %v203_v21  ;;  %v289_v24 = vpop.f32.mrb[3].mxu1 }
 0x21a   :  { %v192_v25 = vpop.f32.mrb[0].mxu0 }
 0x21b   :  { %238 = vst.msk [vmem:[%s423_s5 + $0x8] sm:$0xf] %vm235_vm3, %v261_v22  ;;  %v262_v26 = vpack.c.bf16 %v204_v23, %v204_v23  ;;  %v193_v27 = vadd.f32 %v248_v17, %v192_v25  ;;  %v284_v28 = vpop.f32.mrb[1].mxu0 }
 0x21c   :  { %v195_v29 = vpop.f32.mrb[2].mxu0 }
 0x21d   :  { %239 = vst.msk [vmem:[%s423_s5 + $0xc] sm:$0xf] %vm235_vm3, %v262_v26  ;;  %v259_v30 = vpack.c.bf16 %v193_v27, %v193_v27  ;;  %v196_v31 = vadd.f32 %v248_v17, %v195_v29  ;;  %v285_v32 = vpop.f32.mrb[3].mxu0 }
 0x21e   :  { %v208_v33 = vpop.f32.mrb[4].mxu1 }
 0x21f   :  { %236 = vst.msk [vmem:[%s423_s5] sm:$0xf] %vm235_vm3, %v259_v30  ;;  %v260_v34 = vpack.c.bf16 %v196_v31, %v196_v31  ;;  %v209_v35 = vadd.f32 %v248_v17, %v208_v33  ;;  %v292_v36 = vpop.f32.mrb[5].mxu1 }
 0x220   :  { %v211_v37 = vpop.f32.mrb[6].mxu1 }
 0x221   :  { %237 = vst.msk [vmem:[%s423_s5 + $0x4] sm:$0xf] %vm235_vm3, %v260_v34  ;;  %v263_v38 = vpack.c.bf16 %v209_v35, %v209_v35  ;;  %v293_v39 = vpop.f32.mrb[7].mxu1 }
 0x223   :  { %241 = vst.msk [vmem:[%s423_s5 + $0x10] sm:$0x1] %vm240_vm4, %v263_v38 }

// kernel: vit_model_forward.10
= control target key start
LH: loop header
LB: loop body
LE: loop exit
PB: predicated region body
PF: predicated region fallthrough
CT: control target
= control target key end

     0   :  { %s642_s24 = smov 0   ;;  %s691_s0 = inlined_call_operand.vmem [shape: bf16[2,16,48], index: 0, kind: input, shape index: {}]   ;;  %s692_s1 = inlined_call_operand.vmem [shape: f32[2,16,1], index: 1, kind: input, shape index: {}]   ;;  %s693_s2 = inlined_call_operand.vmem [shape: bf16[48,32], index: 2, kind: input, shape index: {}]   ;;  %s694_s3 = inlined_call_operand.vmem [shape: f32[1,32], index: 3, kind: input, shape index: {}]   ;;  %s695_s4 = inlined_call_operand.vmem [shape: bf16[1,32], index: 4, kind: input, shape index: {}]   ;;  %s696_s5 = inlined_call_operand.vmem [shape: bf16[1,32], index: 5, kind: input, shape index: {}]   ;;  %s697_s6 = inlined_call_operand.vmem [shape: bf16[17,32], index: 6, kind: input, shape index: {}]   ;;  %s698_s7 = inlined_call_operand.vmem [shape: bf16[2,17,32], index: 7, kind: output, shape index: {}]  }
   0x1 LB: > { %s529_s25 = sadd.s32 4294967295, %s597_s24   ;;  %p533_p0 = scmp.ge.s32.totalorder %s597_s24, 1  ;;  %s597_s24 = sphi %s642_s24, %s17_s24  }
   0x2   : > { %p247_p1 = scmp.lt.s32.totalorder %s597_s24, 3 }
   0x4   : > { %p248_p2 = pnand %p533_p0, %p247_p1 }
   0x5   : > { %v587_v0 = vld [vmem:[%s693_s2] sm:$0xff] (!%p248_p2)   ;;  %v599_v1 = vmov (!%p248_p2), 0.0   ;;  %v588_v2 = vld [vmem:[%s693_s2 + $0x8] sm:$0xff] (!%p248_p2)   ;;  %vm600_vm0 = vmmov (!%p248_p2), 0   ;;  %p284_p3 = scmp.lt.s32.totalorder (!%p248_p2), %s529_s25, 1  ;;  %v601_v3 = vmov (!%p248_p2), 0   ;;  %v401_v10 = vlaneseq (!%p248_p2) }
   0x6   : > { %251 = sbr.rel (%p248_p2) target bundleno = 246 (0xf6), region = 48  ;;  %563 = vmatprep.subr.bf16.mxu0 (!%p248_p2), %v599_v1  ;;  %569 = vmatprep.mubr.msk.bf16.mxu0 (!%p248_p2), %vm600_vm0, %v599_v1  ;;  %v589_v4 = vld [vmem:[%s693_s2 + $0x10] sm:$0xff] (!%p248_p2)   ;;  %vm338_vm1 = vcmask (!%p248_p2), 392192   ;;  %v399_v12 = vld [vmem:[%s696_s5] sm:$0x1] (!%p248_p2)  ;;  %vm423_vm2 = vcmask (!%p248_p2), 1040384  }
   0x7   : > { %564 = vmatpush3.bf16.msra.mxu0 (!%p248_p2), %v587_v0  ;;  %586 = vset.pattern.permute.xlu1 (!%p248_p2), %v601_v3  ;;  %v402_v11 = vshrl.u32 (!%p248_p2), %v401_v10, 7  ;;  %v400_v13 = vunpack.c.l.bf16 (!%p248_p2), %v399_v12  ;;  %v539_v17 = vld [vmem:[%s694_s3] ss:$0 sm:$0xff] (!%p248_p2)  ;;  %v433_v31 = vld [vmem:[%s697_s6 + $0x8] sm:$0x1] (!%p248_p2)  ;;  %vm456_vm3 = vcmask (!%p248_p2), 253952  }
   0x8   : > { %565 = vmatprep.subr.bf16.mxu0 (!%p248_p2), %v599_v1  ;;  %585 = vset.pattern.permute.xlu0 (!%p248_p2), %v601_v3  ;;  %v419_v23 = vld [vmem:[%s695_s4] sm:$0x1] (!%p248_p2)  ;;  %v436_v39 = vunpack.c.l.bf16 (!%p248_p2), %v433_v31  ;;  %vm457_vm4 = vsmask.f32 (!%p248_p2), 256  ;;  %vm453_vm5 = vcmask (!%p248_p2), 257024  }
   0x9   : > { %v403_v14 = vsub.s32 (!%p248_p2), 0, %v402_v11  ;;  %v556_v27 = vld [vmem:[%s697_s6] sm:$0xff] (!%p248_p2)   ;;  %v420_v34 = vunpack.c.l.bf16 (!%p248_p2), %v419_v23  ;;  %vm458_vm6 = vmand (!%p248_p2), %vm456_vm3, %vm457_vm4 }
   0xa   : > { %v557_v36 = vunpack.c.l.bf16 (!%p248_p2), %v556_v27  ;;  %v558_v40 = vunpack.c.h.bf16 (!%p248_p2), %v556_v27 }
   0xb   : > { %566 = vmatpush3.bf16.msra.mxu0 (!%p248_p2), %v588_v2  ;;  %v404_v18 = vrot.slane (!%p248_p2), %v400_v13, %v403_v14 }
   0xc   : > { %567 = vmatprep.subr.bf16.mxu0 (!%p248_p2), %v599_v1 }
   0xd   : > { %s700_s25 = smov (!%p284_p3, %s529_s25), 1 }
   0xe   : > { %s550_s9 = sshll.u32 %s700_s25, 3  ;;  %s551_s13 = sshll.u32 %s700_s25, 4 }
   0xf   : > { %s288_s12 = scalar_lea.vmem %s691_s0, %s550_s9  ;;  %s293_s16 = scalar_lea.vmem %s692_s1, %s551_s13  ;;  %568 = vmatpush3.bf16.msra.mxu0 %v589_v4 }
  0x10   : > { %v590_v5 = vld [vmem:[%s288_s12] sm:$0xff]   ;;  %v384_v7 = vld [vmem:[%s293_s16 + $0x8] sm:$0xff]  ;;  %s573_s29 = smul.u32 12, %s700_s25 }
  0x11   : > { %v383_v6 = vld [vmem:[%s293_s16] sm:$0xff]  ;;  %v386_v9 = vsub.f32 1.0, %v384_v7 }
  0x12   : > { %407 = vperm.xlu1 %586, %v383_v6   ;;  %v385_v8 = vsub.f32 1.0, %v383_v6  ;;  %570 = vmatmul.mubr.msk.bf16.vlgmr.msra.gmra.mrb[0].mxu0 %vm338_vm1, %v590_v5  ;;  %s298_s9 = scalar_lea.vmem %s698_s7, %s573_s29 }
  0x13   : > { %v459_v48 = vld [vmem:[%s298_s9 + $0x8] sm:$0x1] }
  0x14   : > { %389 = vperm.xlu0 %585, %v385_v8  }
  0x16   : > { %412 = vperm.xlu1 %586, %v384_v7  }
  0x18   : > { %394 = vperm.xlu0 %585, %v386_v9  }
  0x91   : > { %v408_v15 = vpop.permute.xlu1 %407 }
  0x92   : > { %v415_v25 = vmul.f32 %v408_v15, %v404_v18 }
  0x93   : > { %v390_v16 = vpop.permute.xlu0 %389 }
  0x95   : > { %v413_v22 = vpop.permute.xlu1 %412 }
  0x96   : > { %v416_v32 = vmul.f32 %v413_v22, %v404_v18 }
  0x97   : > { %v395_v30 = vpop.permute.xlu0 %394 }
  0xe5   : > { %v376_v19 = vpop.f32.mrb[0].mxu0 }
  0xe6   : > { %v377_v20 = vadd.f32 %v539_v17, %v376_v19  ;;  %v571_v21 = vpop.f32.mrb[1].mxu0 }
  0xe7   : > { %v379_v24 = vpop.f32.mrb[2].mxu0 }
  0xe8   : > { %v397_v26 = vmul.f32 %v390_v16, %v377_v20  ;;  %v380_v28 = vadd.f32 %v539_v17, %v379_v24  ;;  %v572_v29 = vpop.f32.mrb[3].mxu0 }
  0xea   : > { %v417_v33 = vadd.f32 %v415_v25, %v397_v26  ;;  %v398_v35 = vmul.f32 %v395_v30, %v380_v28 }
  0xec   : > { %v424_v37 = vrot.slane %v417_v33, 7  ;;  %v418_v38 = vadd.f32 %v416_v32, %v398_v35 }
  0xee   : > { %v430_v41 = vsel %vm423_vm2, %v420_v34, %v424_v37  ;;  %v425_v42 = vrot.slane %v418_v38, 7 }
  0xef   : > { %v437_v43 = vadd.f32 %v557_v36, %v430_v41 }
  0xf0   : > { %v426_v44 = vsel %vm423_vm2, %v424_v37, %v425_v42  ;;  %v439_v45 = vadd.f32 %v436_v39, %v425_v42 }
  0xf1   : > { %v552_v46 = vpack.c.bf16 %v437_v43, %v437_v43  ;;  %v438_v47 = vadd.f32 %v558_v40, %v426_v44 }
  0xf2   : > { %v554_v49 = vpack.c.bf16 %v439_v45, %v439_v45 }
  0xf3   : > { %454 = vst.msk [vmem:[%s298_s9] sm:$0xf] %vm453_vm5, %v552_v46  ;;  %v553_v50 = vpack.c.bf16 %v438_v47, %v438_v47 }
  0xf4   : > { %v460_v51 = vsel %vm458_vm6, %v554_v49, %v459_v48 }
  0xf5   : > { %455 = vst.msk [vmem:[%s298_s9 + $0x4] sm:$0xf] %vm453_vm5, %v553_v50  ;;  %461 = vst [vmem:[%s298_s9 + $0x8] sm:$0x1] %v460_v51 }
  0xf6 PF: > { %s17_s24 = sadd.s32 1, %s597_s24  }
  0xf7   : > { %p14_p4 = scmp.ge.s32.totalorder %s17_s24, 4  }
  0xf9   :  { %16 = sbr.rel (!%p14_p4) target bundleno = 1 (0x1), region = 81 }

// kernel: vit_model_forward.13
= control target key start
LH: loop header
LB: loop body
LE: loop exit
PB: predicated region body
PF: predicated region fallthrough
CT: control target
= control target key end

     0   :  { %vm39_vm0 = vcmask 261120   ;;  %vm52_vm1 = vcmask 254976   ;;  %v576_v39 = vmov 0.0   ;;  %vm577_vm2 = vmmov 0   ;;  %s771_s0 = inlined_call_operand.vmem [shape: bf16[34,32], index: 0, kind: input, shape index: {}]   ;;  %s772_s3 = inlined_call_operand.vmem [shape: bf16[32,128], index: 3, kind: input, shape index: {}]   ;;  %s773_s1 = inlined_call_operand.vmem [shape: f32[1,32], index: 1, kind: input, shape index: {}]   ;;  %s774_s2 = inlined_call_operand.vmem [shape: f32[1,32], index: 2, kind: input, shape index: {}]   ;;  %s775_s5 = inlined_call_operand.vmem [shape: bf16[128,32], index: 5, kind: input, shape index: {}]   ;;  %s776_s4 = inlined_call_operand.vmem [shape: f32[1,128], index: 4, kind: input, shape index: {}]   ;;  %s777_s6 = inlined_call_operand.vmem [shape: f32[1,32], index: 6, kind: input, shape index: {}]   ;;  %s778_s7 = inlined_call_operand.vmem [shape: bf16[34,32], index: 7, kind: output, shape index: {}]  }
   0x1   :  { %v460_v0 = vld [vmem:[%s771_s0] sm:$0xff]   ;;  %v467_v1 = vld [vmem:[%s771_s0 + $0x8] sm:$0xff]   ;;  %v31_v6 = vld [vmem:[%s771_s0 + $0x10] sm:$0x1]  ;;  %484 = vmatprep.subr.bf16.mxu0 %v576_v39  ;;  %528 = vmatprep.subr.bf16.mxu1 %v576_v39  ;;  %vm421_vm3 = vcmask 257024   ;;  %vm426_vm4 = vcmask 253952  }
   0x2   :  { %v624_v2 = vunpack.c.l.bf16 %v460_v0  ;;  %v626_v3 = vunpack.c.l.bf16 %v467_v1  ;;  %v628_v4 = vunpack.c.h.bf16 %v460_v0  ;;  %v630_v5 = vunpack.c.h.bf16 %v467_v1  ;;  %v546_v38 = vld [vmem:[%s772_s3] sm:$0xff]   ;;  %v547_v40 = vld [vmem:[%s772_s3 + $0x8] sm:$0xff]   ;;  %488 = vmatprep.mubr.msk.bf16.mxu0 %vm577_vm2, %v576_v39  ;;  %520 = vmatprep.mubr.msk.bf16.mxu1 %vm577_vm2, %v576_v39 }
   0x3   :  { %v643_v11 = vunpack.c.l.bf16 %v31_v6  ;;  %485 = vmatpush3.bf16.msra.mxu0 %v546_v38  ;;  %v432_v58 = vld [vmem:[%s773_s1] ss:$0 sm:$0xff] }
   0x4   :  { %v40_v7 = vsel %vm39_vm0, %v624_v2, 0.0  ;;  %v46_v8 = vsel %vm39_vm0, %v626_v3, 0.0  ;;  %v43_v9 = vsel %vm39_vm0, %v628_v4, 0.0  ;;  %v49_v10 = vsel %vm39_vm0, %v630_v5, 0.0  ;;  %486 = vmatprep.subr.bf16.mxu0 %v576_v39  ;;  %v433_v63 = vld [vmem:[%s774_s2] ss:$0 sm:$0xff] }
   0x5   :  { %41 = vadd.xlane.f32.xlu0 %v40_v7  ;;  %47 = vadd.xlane.f32.xlu1 %v46_v8  ;;  %v53_v12 = vsel %vm52_vm1, %v643_v11, 0.0 }
   0x7   :  { %487 = vmatpush3.bf16.msra.mxu0 %v547_v40 }
   0x8   :  { %500 = vmatprep.subr.bf16.mxu0 %v576_v39 }
   0x9   :  { %44 = vadd.xlane.f32.xlu0 %v43_v9  ;;  %50 = vadd.xlane.f32.xlu1 %v49_v10 }
   0xd   :  { %54 = vadd.xlane.f32.xlu0 %v53_v12 }
  0x92   :  { %v42_v13 = vpop.xlane.xlu0 %41  ;;  %v48_v14 = vpop.xlane.xlu1 %47 }
  0x93   :  { %v57_v15 = vmul.f32 0.03125, %v42_v13  ;;  %v59_v16 = vmul.f32 0.03125, %v48_v14 }
  0x95   :  { %v62_v17 = vsub.f32 %v624_v2, %v57_v15  ;;  %v649_v18 = vsub.f32 %v626_v3, %v59_v16 }
  0x96   :  { %v45_v19 = vpop.xlane.xlu0 %44  ;;  %v51_v20 = vpop.xlane.xlu1 %50 }
  0x97   :  { %v58_v21 = vmul.f32 0.03125, %v45_v19  ;;  %v60_v22 = vmul.f32 0.03125, %v51_v20  ;;  %v67_v23 = vmul.f32 %v62_v17, %v62_v17  ;;  %v69_v24 = vmul.f32 %v649_v18, %v649_v18 }
  0x99   :  { %v63_v25 = vsub.f32 %v628_v4, %v58_v21  ;;  %v655_v26 = vsub.f32 %v630_v5, %v60_v22  ;;  %v72_v27 = vsel %vm39_vm0, %v67_v23, 0.0  ;;  %v78_v30 = vsel %vm39_vm0, %v69_v24, 0.0  ;;  %v548_v22 = vld [vmem:[%s775_s5] sm:$0xff]   ;;  %v549_v23 = vld [vmem:[%s775_s5 + $0x8] sm:$0xff]   ;;  %v550_v24 = vld [vmem:[%s775_s5 + $0x10] sm:$0xff]  }
  0x9a   :  { %73 = vadd.xlane.f32.xlu1 %v72_v27  ;;  %v55_v28 = vpop.xlane.xlu0 %54  ;;  %536 = vmatpush3.bf16.msra.mxu1 %v548_v22  ;;  %v553_v27 = vld [vmem:[%s775_s5 + $0x28] sm:$0xff]  }
  0x9b   :  { %v61_v29 = vmul.f32 0.03125, %v55_v28  ;;  %v68_v31 = vmul.f32 %v63_v25, %v63_v25  ;;  %v70_v32 = vmul.f32 %v655_v26, %v655_v26  ;;  %529 = vmatprep.subr.bf16.mxu1 %v576_v39  ;;  %v554_v28 = vld [vmem:[%s775_s5 + $0x30] sm:$0xff]  }
  0x9d   :  { %v662_v33 = vsub.f32 %v643_v11, %v61_v29  ;;  %v75_v34 = vsel %vm39_vm0, %v68_v31, 0.0  ;;  %v81_v35 = vsel %vm39_vm0, %v70_v32, 0.0  ;;  %v555_v29 = vld [vmem:[%s775_s5 + $0x38] sm:$0xff]  }
  0x9e   :  { %79 = vadd.xlane.f32.xlu1 %v78_v30  ;;  %76 = vadd.xlane.f32.xlu0 %v75_v34  ;;  %v434_v30 = vld [vmem:[%s776_s4] ss:$0 sm:$0xff] }
  0x9f   :  { %v71_v36 = vmul.f32 %v662_v33, %v662_v33  ;;  %537 = vmatpush3.bf16.msra.mxu1 %v549_v23 }
  0xa0   :  { %530 = vmatprep.subr.bf16.mxu1 %v576_v39 }
  0xa1   :  { %v84_v37 = vsel %vm52_vm1, %v71_v36, 0.0 }
  0xa2   :  { %82 = vadd.xlane.f32.xlu0 %v81_v35  ;;  %85 = vadd.xlane.f32.xlu1 %v84_v37 }
  0xa3   :  { %538 = vmatpush3.bf16.msra.mxu1 %v550_v24 }
  0xa4   :  { %531 = vmatprep.subr.bf16.mxu1 %v576_v39 }
 0x127   :  { %v74_v41 = vpop.xlane.xlu1 %73 }
 0x128   :  { %v87_v42 = vmul.f32 0.03125, %v74_v41 }
 0x12a   :  { %v92_v43 = vadd.f32 1e-12, %v87_v42 }
 0x12b   :  { %v80_v44 = vpop.xlane.xlu1 %79  ;;  %v77_v45 = vpop.xlane.xlu0 %76 }
 0x12c   :  { %556 = vrsqrt.f32 %v92_v43  ;;  %v89_v46 = vmul.f32 0.03125, %v80_v44  ;;  %v88_v47 = vmul.f32 0.03125, %v77_v45 }
 0x12e   :  { %v93_v48 = vadd.f32 1e-12, %v88_v47  ;;  %v94_v49 = vadd.f32 1e-12, %v89_v46 }
 0x12f   :  { %v86_v50 = vpop.xlane.xlu1 %85  ;;  %v83_v51 = vpop.xlane.xlu0 %82 }
 0x130   :  { %v90_v52 = vmul.f32 0.03125, %v83_v51  ;;  %558 = vrsqrt.f32 %v93_v48  ;;  %v91_v53 = vmul.f32 0.03125, %v86_v50 }
 0x131   :  { %560 = vrsqrt.f32 %v94_v49 }
 0x132   :  { %v95_v54 = vadd.f32 1e-12, %v90_v52  ;;  %v96_v55 = vadd.f32 1e-12, %v91_v53 }
 0x134   :  { %562 = vrsqrt.f32 %v95_v54 }
 0x135   :  { %564 = vrsqrt.f32 %v96_v55 }
 0x136   :  { %v557_v56 = vpop.eup %556 }
 0x137   :  { %v102_v57 = vmul.f32 %v557_v56, %v62_v17 }
 0x139   :  { %v113_v61 = vmul.f32 %v432_v58, %v102_v57 }
 0x13a   :  { %v559_v59 = vpop.eup %558 }
 0x13b   :  { %v103_v60 = vmul.f32 %v559_v59, %v63_v25  ;;  %v561_v62 = vpop.eup %560  ;;  %v124_v8 = vadd.f32 %v433_v63, %v113_v61  ;;  %v551_v25 = vld [vmem:[%s775_s5 + $0x18] sm:$0xff]  }
 0x13c   :  { %v104_v6 = vmul.f32 %v561_v62, %v649_v18  ;;  %539 = vmatpush3.bf16.msra.mxu1 %v551_v25 }
 0x13d   :  { %v114_v0 = vmul.f32 %v432_v58, %v103_v60  ;;  %532 = vmatprep.subr.bf16.mxu1 %v576_v39 }
 0x13e   :  { %v563_v1 = vpop.eup %562  ;;  %v115_v14 = vmul.f32 %v432_v58, %v104_v6 }
 0x13f   :  { %v105_v7 = vmul.f32 %v563_v1, %v655_v26  ;;  %v125_v9 = vadd.f32 %v433_v63, %v114_v0  ;;  %v565_v13 = vpop.eup %564  ;;  %v552_v26 = vld [vmem:[%s775_s5 + $0x20] sm:$0xff]  }
 0x140   :  { %v106_v15 = vmul.f32 %v565_v13, %v662_v33  ;;  %v126_v17 = vadd.f32 %v433_v63, %v115_v14  ;;  %540 = vmatpush3.bf16.msra.mxu1 %v552_v26 }
 0x141   :  { %v129_v10 = vpack.c.bf16 %v125_v9, %v124_v8  ;;  %v116_v12 = vmul.f32 %v432_v58, %v105_v7  ;;  %533 = vmatprep.subr.bf16.mxu1 %v576_v39 }
 0x142   :  { %v117_v20 = vmul.f32 %v432_v58, %v106_v15 }
 0x143   :  { %489 = vmatmul.mubr.msk.bf16.vlgmr.msra.gmra.mrb[0].mxu0 %vm39_vm0, %v129_v10  ;;  %v127_v16 = vadd.f32 %v433_v63, %v116_v12 }
 0x144   :  { %492 = vmatprep.mubr.msk.bf16.mxu0 %vm577_vm2, %v576_v39  ;;  %v128_v18 = vadd.f32 %v433_v63, %v117_v20  ;;  %501 = vmatpush3.bf16.msra.mxu0 %v548_v22 }
 0x145   :  { %v130_v19 = vpack.c.bf16 %v127_v16, %v126_v17  ;;  %502 = vmatprep.subr.bf16.mxu0 %v576_v39  ;;  %541 = vmatpush3.bf16.msra.mxu1 %v553_v27 }
 0x146   :  { %v131_v21 = vpack.c.bf16 %v128_v18, %v128_v18  ;;  %534 = vmatprep.subr.bf16.mxu1 %v576_v39 }
 0x148   :  { %503 = vmatpush3.bf16.msra.mxu0 %v549_v23 }
 0x149   :  { %504 = vmatprep.subr.bf16.mxu0 %v576_v39  ;;  %542 = vmatpush3.bf16.msra.mxu1 %v554_v28 }
 0x14a   :  { %535 = vmatprep.subr.bf16.mxu1 %v576_v39 }
 0x14b   :  { %493 = vmatmul.mubr.msk.bf16.gmra.mrb[4].mxu0 %vm39_vm0, %v130_v19 }
 0x14c   :  { %496 = vmatprep.mubr.msk.bf16.mxu0 %vm577_vm2, %v576_v39  ;;  %505 = vmatpush3.bf16.msra.mxu0 %v550_v24 }
 0x14d   :  { %506 = vmatprep.subr.bf16.mxu0 %v576_v39  ;;  %543 = vmatpush3.bf16.msra.mxu1 %v555_v29 }
 0x150   :  { %507 = vmatpush3.bf16.msra.mxu0 %v551_v25 }
 0x151   :  { %508 = vmatprep.subr.bf16.mxu0 %v576_v39 }
 0x153   :  { %497 = vmatmul.mubr.msk.bf16.gmra.mrb[8].mxu0 %vm39_vm0, %v131_v21 }
 0x154   :  { %516 = vmatprep.mubr.msk.bf16.mxu0 %vm577_vm2, %v576_v39  ;;  %509 = vmatpush3.bf16.msra.mxu0 %v552_v26 }
 0x155   :  { %510 = vmatprep.subr.bf16.mxu0 %v576_v39 }
 0x158   :  { %511 = vmatpush3.bf16.msra.mxu0 %v553_v27 }
 0x159   :  { %512 = vmatprep.subr.bf16.mxu0 %v576_v39 }
 0x15c   :  { %513 = vmatpush3.bf16.msra.mxu0 %v554_v28 }
 0x15d   :  { %514 = vmatprep.subr.bf16.mxu0 %v576_v39 }
 0x160   :  { %515 = vmatpush3.bf16.msra.mxu0 %v555_v29 }
 0x216   :  { %v198_v31 = vpop.f32.mrb[0].mxu0 }
 0x217   :  { %v199_v32 = vadd.f32 %v434_v30, %v198_v31  ;;  %v490_v33 = vpop.f32.mrb[1].mxu0 }
 0x218   :  { %v201_v34 = vpop.f32.mrb[2].mxu0 }
 0x219   :  { %v220_v35 = vmul.f32 %v199_v32, %v199_v32  ;;  %v202_v36 = vadd.f32 %v434_v30, %v201_v34  ;;  %v491_v37 = vpop.f32.mrb[3].mxu0 }
 0x21b   :  { %v225_v38 = vmul.f32 %v220_v35, %v199_v32  ;;  %v221_v40 = vmul.f32 %v202_v36, %v202_v36 }
 0x21d   :  { %v230_v41 = vmul.f32 0.044715, %v225_v38  ;;  %v226_v42 = vmul.f32 %v221_v40, %v202_v36  ;;  %v440_v38 = vld [vmem:[%s777_s6] ss:$0 sm:$0xff] }
 0x21e   :  { %v206_v43 = vpop.f32.mrb[4].mxu0 }
 0x21f   :  { %v235_v44 = vadd.f32 %v230_v41, %v199_v32  ;;  %v231_v45 = vmul.f32 0.044715, %v226_v42  ;;  %v207_v46 = vadd.f32 %v434_v30, %v206_v43  ;;  %v494_v47 = vpop.f32.mrb[5].mxu0 }
 0x220   :  { %v209_v48 = vpop.f32.mrb[6].mxu0 }
 0x221   :  { %v240_v49 = vmul.f32 0.7978846, %v235_v44  ;;  %v236_v50 = vadd.f32 %v231_v45, %v202_v36  ;;  %v222_v51 = vmul.f32 %v207_v46, %v207_v46  ;;  %v210_v52 = vadd.f32 %v434_v30, %v209_v48  ;;  %v495_v53 = vpop.f32.mrb[7].mxu0 }
 0x223   :  { %566 = vtanh.f32 %v240_v49  ;;  %v241_v54 = vmul.f32 0.7978846, %v236_v50  ;;  %v227_v55 = vmul.f32 %v222_v51, %v207_v46  ;;  %v223_v56 = vmul.f32 %v210_v52, %v210_v52 }
 0x225   :  { %568 = vtanh.f32 %v241_v54  ;;  %v232_v57 = vmul.f32 0.044715, %v227_v55  ;;  %v228_v58 = vmul.f32 %v223_v56, %v210_v52 }
 0x226   :  { %v214_v59 = vpop.f32.mrb[8].mxu0 }
 0x227   :  { %v237_v60 = vadd.f32 %v232_v57, %v207_v46  ;;  %v233_v61 = vmul.f32 0.044715, %v228_v58  ;;  %v215_v62 = vadd.f32 %v434_v30, %v214_v59  ;;  %v498_v63 = vpop.f32.mrb[9].mxu0 }
 0x228   :  { %v217_v0 = vpop.f32.mrb[10].mxu0 }
 0x229   :  { %v242_v1 = vmul.f32 0.7978846, %v237_v60  ;;  %v238_v6 = vadd.f32 %v233_v61, %v210_v52  ;;  %v224_v7 = vmul.f32 %v215_v62, %v215_v62  ;;  %v499_v8 = vpop.f32.mrb[11].mxu0 }
 0x22b   :  { %570 = vtanh.f32 %v242_v1  ;;  %v243_v9 = vmul.f32 0.7978846, %v238_v6  ;;  %v229_v10 = vmul.f32 %v224_v7, %v215_v62 }
 0x22d   :  { %v567_v12 = vpop.eup %566  ;;  %572 = vtanh.f32 %v243_v9  ;;  %v234_v13 = vmul.f32 0.044715, %v229_v10 }
 0x22e   :  { %v250_v14 = vadd.f32 1.0, %v567_v12 }
 0x22f   :  { %v569_v15 = vpop.eup %568  ;;  %v239_v16 = vadd.f32 %v234_v13, %v215_v62 }
 0x230   :  { %v255_v17 = vmul.f32 0.5, %v250_v14  ;;  %v251_v19 = vadd.f32 1.0, %v569_v15 }
 0x231   :  { %v244_v20 = vmul.f32 0.7978846, %v239_v16 }
 0x232   :  { %v256_v18 = vmul.f32 0.5, %v251_v19  ;;  %v260_v21 = vmul.f32 %v255_v17, %v199_v32 }
 0x233   :  { %574 = vtanh.f32 %v244_v20 }
 0x234   :  { %v261_v22 = vmul.f32 %v256_v18, %v202_v36 }
 0x235   :  { %v571_v23 = vpop.eup %570 }
 0x236   :  { %v265_v24 = vpack.c.bf16 %v261_v22, %v260_v21  ;;  %v252_v25 = vadd.f32 1.0, %v571_v23 }
 0x237   :  { %v573_v26 = vpop.eup %572 }
 0x238   :  { %517 = vmatmul.mubr.bf16.vlgmr.msra.gmra.mrb[12].mxu0 %v265_v24  ;;  %v253_v27 = vadd.f32 1.0, %v573_v26  ;;  %v257_v28 = vmul.f32 0.5, %v252_v25 }
 0x23a   :  { %v258_v29 = vmul.f32 0.5, %v253_v27  ;;  %v262_v30 = vmul.f32 %v257_v28, %v207_v46 }
 0x23c   :  { %v263_v31 = vmul.f32 %v258_v29, %v210_v52 }
 0x23d   :  { %v575_v33 = vpop.eup %574 }
 0x23e   :  { %v266_v34 = vpack.c.bf16 %v263_v31, %v262_v30  ;;  %v254_v35 = vadd.f32 1.0, %v575_v33 }
 0x240   :  { %521 = vmatmul.mubr.bf16.vlgmr.msra.gmra.mrb[0].mxu1 %v266_v34  ;;  %v259_v37 = vmul.f32 0.5, %v254_v35 }
 0x241   :  { %524 = vmatprep.mubr.msk.bf16.mxu1 %vm577_vm2, %v576_v39 }
 0x242   :  { %v264_v32 = vmul.f32 %v259_v37, %v215_v62 }
 0x244   :  { %v267_v36 = vpack.c.bf16 %v264_v32, %v264_v32 }
 0x248   :  { %525 = vmatmul.mubr.bf16.gmra.mrb[4].mxu1 %v267_v36 }
 0x30b   :  { %v373_v40 = vpop.f32.mrb[12].mxu0 }
 0x30c   :  { %v374_v41 = vadd.f32 %v440_v38, %v373_v40  ;;  %v518_v42 = vpop.f32.mrb[13].mxu0 }
 0x30d   :  { %v376_v43 = vpop.f32.mrb[14].mxu0 }
 0x30e   :  { %v395_v44 = vadd.f32 %v624_v2, %v374_v41  ;;  %v377_v45 = vadd.f32 %v440_v38, %v376_v43  ;;  %v519_v46 = vpop.f32.mrb[15].mxu0 }
 0x310   :  { %v454_v47 = vpack.c.bf16 %v395_v44, %v395_v44  ;;  %v396_v48 = vadd.f32 %v628_v4, %v377_v45 }
 0x312   :  { %422 = vst.msk [vmem:[%s778_s7] sm:$0xf] %vm421_vm3, %v454_v47  ;;  %v455_v39 = vpack.c.bf16 %v396_v48, %v396_v48 }
 0x313   :  { %v381_v49 = vpop.f32.mrb[0].mxu1 }
 0x314   :  { %423 = vst.msk [vmem:[%s778_s7 + $0x4] sm:$0xf] %vm421_vm3, %v455_v39  ;;  %v382_v50 = vadd.f32 %v440_v38, %v381_v49  ;;  %v522_v2 = vpop.f32.mrb[1].mxu1 }
 0x315   :  { %v384_v51 = vpop.f32.mrb[2].mxu1 }
 0x316   :  { %v397_v52 = vadd.f32 %v626_v3, %v382_v50  ;;  %v385_v53 = vadd.f32 %v440_v38, %v384_v51  ;;  %v523_v54 = vpop.f32.mrb[3].mxu1 }
 0x318   :  { %v456_v4 = vpack.c.bf16 %v397_v52, %v397_v52  ;;  %v398_v55 = vadd.f32 %v630_v5, %v385_v53 }
 0x31a   :  { %424 = vst.msk [vmem:[%s778_s7 + $0x8] sm:$0xf] %vm421_vm3, %v456_v4  ;;  %v457_v56 = vpack.c.bf16 %v398_v55, %v398_v55 }
 0x31b   :  { %v389_v57 = vpop.f32.mrb[4].mxu1 }
 0x31c   :  { %425 = vst.msk [vmem:[%s778_s7 + $0xc] sm:$0xf] %vm421_vm3, %v457_v56  ;;  %v390_v58 = vadd.f32 %v440_v38, %v389_v57  ;;  %v526_v59 = vpop.f32.mrb[5].mxu1 }
 0x31d   :  { %v392_v3 = vpop.f32.mrb[6].mxu1 }
 0x31e   :  { %v399_v60 = vadd.f32 %v390_v58, %v643_v11  ;;  %v527_v61 = vpop.f32.mrb[7].mxu1 }
 0x320   :  { %v458_v5 = vpack.c.bf16 %v399_v60, %v399_v60 }
 0x322   :  { %427 = vst.msk [vmem:[%s778_s7 + $0x10] sm:$0x1] %vm426_vm4, %v458_v5 }

// kernel: vit_model_forward.12
= control target key start
LH: loop header
LB: loop body
LE: loop exit
PB: predicated region body
PF: predicated region fallthrough
CT: control target
= control target key end

     0   :  { %s2934_s15 = smov 0   ;;  %s3462_s0 = inlined_call_operand.vmem [shape: bf16[2,17,96], index: 0, kind: input, shape index: {}]   ;;  %s3463_s1 = inlined_call_operand.vmem [shape: bf16[2,17,32], index: 1, kind: input, shape index: {}]   ;;  %s3464_s2 = inlined_call_operand.vmem [shape: bf16[32,32], index: 2, kind: input, shape index: {}]   ;;  %s3465_s3 = inlined_call_operand.vmem [shape: f32[1,32], index: 3, kind: input, shape index: {}]   ;;  %s3466_s4 = inlined_call_operand.vmem [shape: bf16[2,17,32], index: 4, kind: output, shape index: {}]  }
   0x1 LB: > { %s2617_s16 = sadd.s32 4294967295, %s2895_s15   ;;  %p2621_p0 = scmp.ge.s32.totalorder %s2895_s15, 1  ;;  %s2895_s15 = sphi %s2934_s15, %s14_s15  }
   0x2   : > { %p172_p1 = scmp.lt.s32.totalorder %s2895_s15, 3 }
   0x4   : > { %p173_p2 = pnand %p2621_p0, %p172_p1 }
   0x5   : > { %p203_p3 = scmp.lt.s32.totalorder (!%p173_p2), %s2617_s16, 1  ;;  %s2897_s21 = smov (!%p173_p2), 112   ;;  %v2901_v3 = vmov (!%p173_p2), 1983009808   ;;  %v246_v5 = vlaneseq (!%p173_p2)  ;;  %v2902_v8 = vmov (!%p173_p2), 1934713408  }
   0x6   : > { %176 = sbr.rel (%p173_p2) target bundleno = 1475 (0x5c3), region = 36  ;;  %s2898_s22 = smov (!%p173_p2), 120   ;;  %v244_v4 = vunpack.c.l.s4 (!%p173_p2), %v2901_v3  ;;  %v261_v9 = vunpack.c.l.s4 (!%p173_p2), %v2902_v8  ;;  %v2903_v30 = vmov (!%p173_p2), 0   ;;  %vm1392_vm0 = vcmask (!%p173_p2), 64512  }
   0x7   : > { %s2899_s23 = smov (!%p173_p2), 104   ;;  %s2900_s24 = smov (!%p173_p2), 96   ;;  %v247_v7 = vshrl.u32 (!%p173_p2), %v246_v5, 7  ;;  %vm1682_vm1 = vcmask (!%p173_p2), 131072   ;;  %vm1675_vm2 = vcmask (!%p173_p2), 138240   ;;  %vm1829_vm3 = vcmask (!%p173_p2), 1040384  }
   0x8   : > { %v245_v6 = vunpack.c.0.s8 (!%p173_p2), %v244_v4  ;;  %v262_v11 = vunpack.c.0.s8 (!%p173_p2), %v261_v9  ;;  %s2904_s25 = smov (!%p173_p2), 64   ;;  %s2906_s28 = smov (!%p173_p2), 8   ;;  %vm2431_vm4 = vcmask (!%p173_p2), 130048   ;;  %vm2435_vm5 = vcmask (!%p173_p2), 195584  }
   0x9   : > { %s2907_s29 = smov (!%p173_p2), 16   ;;  %s2908_s6 = smov (!%p173_p2), 24   ;;  %vm2464_vm6 = vcmask (!%p173_p2), 261120   ;;  %vm2544_vm7 = vcmask (!%p173_p2), 253952   ;;  %vm2545_vm8 = vsmask.f32 (!%p173_p2), 256 }
   0xa   : > { %v2972_v10 = vsub.s32 (!%p173_p2), %v245_v6, %v247_v7  ;;  %v2980_v15 = vsub.s32 (!%p173_p2), %v262_v11, %v247_v7  ;;  %vm2546_vm9 = vmand (!%p173_p2), %vm2544_vm7, %vm2545_vm8  ;;  %vm2541_vm10 = vcmask (!%p173_p2), 257024  }
   0xd   : > { %s3468_s16 = smov (!%p203_p3, %s2617_s16), 1 }
   0xe   : > { %s2942_s17 = smul.u32 12, %s3468_s16 }
  0x10   : > { %s2948_s20 = scalar_lea.vmem %s3462_s0, %s2942_s17  ;;  %s212_s9 = scalar_lea.vmem %s3463_s1, %s2942_s17 }
  0x11   : > { %v2951_v0 = vld [vmem:[%s2948_s20] sm:$0xf]  ;;  %v2956_v1 = vld [vmem:[%s2948_s20 + $0x4] sm:$0xf]  ;;  %v2963_v2 = vld [vmem:[%s2948_s20 + $0x8] sm:$0x1]  ;;  %s217_s14 = scalar_lea.vmem %s3466_s4, %s2942_s17 }
  0x12   : > { %231 = vrot.lane.b32.xlu1 %v2951_v0, %s2897_s21  ;;  %225 = vrot.lane.b32.xlu0 %v2951_v0, %s2898_s22  ;;  %v249_v12 = vrot.slane %v2951_v0, %v2972_v10  ;;  %v316_v19 = vrot.slane %v2956_v1, %v2972_v10 }
  0x16   : > { %233 = vrot.lane.b32.xlu1 %v2956_v1, %s2897_s21  ;;  %227 = vrot.lane.b32.xlu0 %v2956_v1, %s2898_s22 }
  0x1a   : > { %239 = vrot.lane.b32.xlu1 %v2956_v1, %s2899_s23  ;;  %237 = vrot.lane.b32.xlu0 %v2951_v0, %s2899_s23 }
  0x1e   : > { %235 = vrot.lane.b32.xlu1 %v2963_v2, %s2897_s21  ;;  %229 = vrot.lane.b32.xlu0 %v2963_v2, %s2898_s22 }
  0x22   : > { %241 = vrot.lane.b32.xlu0 %v2963_v2, %s2899_s23  ;;  %606 = vrot.lane.b32.xlu1 %v2951_v0, %s2900_s24 }
  0x26   : > { %608 = vrot.lane.b32.xlu0 %v2956_v1, %s2900_s24 }
  0x84   : > { %v2976_v13 = vpop.permute.xlu1 %231  ;;  %v2978_v14 = vpop.permute.xlu0 %225 }
  0x85   : > { %v257_v16 = vrot.slane %v2976_v13, %v2972_v10  ;;  %612 = vrot.lane.b32.xlu1 %v2978_v14, %s2900_s24  ;;  %v283_v25 = vrot.slane %v2978_v14, %v2972_v10 }
  0x87   : > { %v258_v17 = vcombine.low %v249_v12, %v257_v16  ;;  %v259_v18 = vcombine.high %v249_v12, %v257_v16 }
  0x88   : > { %v2988_v20 = vpop.permute.xlu1 %233  ;;  %v2990_v21 = vpop.permute.xlu0 %227 }
  0x89   : > { %v2993_v22 = vrot.slane %v258_v17, %v2980_v15  ;;  %v324_v23 = vrot.slane %v2988_v20, %v2972_v10  ;;  %618 = vrot.lane.b32.xlu1 %v2976_v13, %s2900_s24  ;;  %v3000_v24 = vrot.slane %v259_v18, %v2980_v15  ;;  %614 = vrot.lane.b32.xlu0 %v2990_v21, %s2900_s24 }
  0x8a   : > { %v350_v32 = vrot.slane %v2990_v21, %v2972_v10 }
  0x8b   : > { %v325_v26 = vcombine.low %v316_v19, %v324_v23  ;;  %v326_v27 = vcombine.high %v316_v19, %v324_v23  ;;  %v3012_v31 = vcombine.high %v2993_v22, %v2903_v30  ;;  %v275_v35 = vcombine.high %v3000_v24, %v2903_v30 }
  0x8c   : > { %v3006_v28 = vpop.permute.xlu1 %239  ;;  %v3008_v29 = vpop.permute.xlu0 %237  ;;  %v400_v36 = vshrl.u32 %v2993_v22, 16  ;;  %v416_v43 = vshrl.u32 %v3000_v24, 16 }
  0x8d   : > { %v358_v33 = vrot.slane %v3006_v28, %v2972_v10  ;;  %v291_v34 = vrot.slane %v3008_v29, %v2972_v10  ;;  %624 = vrot.lane.b32.xlu1 %v3008_v29, %s2900_s24  ;;  %v333_v37 = vrot.slane %v325_v26, %v2980_v15  ;;  %v340_v38 = vrot.slane %v326_v27, %v2980_v15 }
  0x8e   : > { %620 = vrot.lane.b32.xlu0 %v2988_v20, %s2900_s24  ;;  %v408_v52 = vshrl.u32 %v3012_v31, 16  ;;  %v424_v53 = vshrl.u32 %v275_v35, 16 }
  0x8f   : > { %v359_v39 = vcombine.low %v350_v32, %v358_v33  ;;  %v360_v40 = vcombine.high %v350_v32, %v358_v33  ;;  %v292_v41 = vcombine.low %v283_v25, %v291_v34  ;;  %v293_v42 = vcombine.high %v283_v25, %v291_v34 }
  0x90   : > { %v341_v44 = vcombine.high %v333_v37, %v2903_v30  ;;  %v342_v45 = vcombine.high %v340_v38, %v2903_v30  ;;  %v432_v46 = vshrl.u32 %v333_v37, 16  ;;  %v3038_v51 = vpop.permute.xlu0 %229  ;;  %v448_v55 = vshrl.u32 %v340_v38, 16  ;;  %v3043_v56 = vpop.permute.xlu1 %235 }
  0x91   : > { %v367_v47 = vrot.slane %v359_v39, %v2980_v15  ;;  %v374_v48 = vrot.slane %v360_v40, %v2980_v15  ;;  %v300_v49 = vrot.slane %v292_v41, %v2980_v15  ;;  %v307_v50 = vrot.slane %v293_v42, %v2980_v15  ;;  %610 = vrot.lane.b32.xlu1 %v2963_v2, %s2900_s24 }
  0x92   : > { %v440_v54 = vshrl.u32 %v341_v44, 16  ;;  %626 = vrot.lane.b32.xlu0 %v3006_v28, %s2900_s24  ;;  %v456_v57 = vshrl.u32 %v342_v45, 16 }
  0x93   : > { %v375_v58 = vcombine.high %v367_v47, %v2903_v30  ;;  %v376_v59 = vcombine.high %v374_v48, %v2903_v30  ;;  %v433_v60 = vshrl.u32 %v367_v47, 16  ;;  %v430_v61 = vpack.i.b16 %v367_v47, %v333_v37 }
  0x94   : > { %v449_v62 = vshrl.u32 %v374_v48, 16  ;;  %v308_v63 = vcombine.high %v300_v49, %v2903_v30  ;;  %v309_v3 = vcombine.high %v307_v50, %v2903_v30  ;;  %v446_v7 = vpack.i.b16 %v374_v48, %v340_v38  ;;  %v3056_v23 = vpop.permute.xlu0 %241 }
  0x95   : > { %v434_v4 = vpack.i.b16 %v433_v60, %v432_v46  ;;  %v438_v5 = vpack.i.b16 %v375_v58, %v341_v44  ;;  %v441_v6 = vshrl.u32 %v375_v58, 16  ;;  %622 = vrot.lane.b32.xlu1 %v3043_v56, %s2900_s24  ;;  %v454_v8 = vpack.i.b16 %v376_v59, %v342_v45 }
  0x96   : > { %v457_v9 = vshrl.u32 %v376_v59, 16  ;;  %v398_v11 = vpack.i.b16 %v300_v49, %v2993_v22  ;;  %v401_v12 = vshrl.u32 %v300_v49, 16  ;;  %616 = vrot.lane.b32.xlu0 %v3038_v51, %s2900_s24  ;;  %v406_v16 = vpack.i.b16 %v308_v63, %v3012_v31 }
  0x97   : > { %v409_v17 = vshrl.u32 %v308_v63, 16  ;;  %v414_v18 = vpack.i.b16 %v307_v50, %v3000_v24  ;;  %v417_v19 = vshrl.u32 %v307_v50, 16  ;;  %v450_v25 = vpack.i.b16 %v449_v62, %v448_v55 }
  0x98   : > { %v402_v26 = vpack.i.b16 %v401_v12, %v400_v36  ;;  %v422_v27 = vpack.i.b16 %v309_v3, %v275_v35  ;;  %v425_v32 = vshrl.u32 %v309_v3, 16  ;;  %v442_v34 = vpack.i.b16 %v441_v6, %v440_v54 }
  0x99   : > { %v418_v33 = vpack.i.b16 %v417_v19, %v416_v43  ;;  %996 = vrot.lane.b32.xlu1 %v2956_v1, %s2904_s25  ;;  %v410_v22 = vpack.i.b16 %v409_v17, %v408_v52  ;;  %v458_v37 = vpack.i.b16 %v457_v9, %v456_v57  ;;  %v463_v24 = vcombine.low %v398_v11, %v414_v18 }
  0x9a   : > { %628 = vrot.lane.b32.xlu0 %v3056_v23, %s2900_s24  ;;  %v426_v31 = vpack.i.b16 %v425_v32, %v424_v53  ;;  %v471_v38 = vcombine.low %v406_v16, %v422_v27  ;;  %v513_v40 = vcombine.low %v430_v61, %v446_v7  ;;  %v521_v41 = vcombine.low %v438_v5, %v454_v8  ;;  %v609_v27 = vpop.permute.xlu0 %608 }
  0x9b   : > { %v488_v39 = vcombine.low %v402_v26, %v418_v33  ;;  %v470_v35 = vrot.slane %v463_v24, %v2972_v10  ;;  %v538_v43 = vcombine.low %v434_v4, %v450_v25  ;;  %v546_v48 = vcombine.low %v442_v34, %v458_v37  ;;  %v607_v26 = vpop.permute.xlu1 %606 }
  0x9c   : > { %v478_v36 = vrot.slane %v471_v38, %v2972_v10  ;;  %v496_v42 = vcombine.low %v410_v22, %v426_v31  ;;  %v520_v1 = vrot.slane %v513_v40, %v2972_v10  ;;  %v528_v44 = vrot.slane %v521_v41, %v2972_v10 }
  0x9d   : > { %1000 = vrot.lane.b32.xlu1 %v2978_v14, %s2904_s25  ;;  %v495_v46 = vrot.slane %v488_v39, %v2972_v10  ;;  %v545_v53 = vrot.slane %v538_v43, %v2972_v10  ;;  %v553_v14 = vrot.slane %v546_v48, %v2972_v10  ;;  %v378_v22 = vcombine.low %v2963_v2, %v3043_v56 }
  0x9e   : > { %994 = vrot.lane.b32.xlu0 %v2951_v0, %s2904_s25  ;;  %v479_v45 = vcombine.low %v470_v35, %v478_v36  ;;  %v503_v47 = vrot.slane %v496_v42, %v2972_v10  ;;  %v529_v49 = vcombine.low %v520_v1, %v528_v44  ;;  %v388_v34 = vcombine.low %v3038_v51, %v3056_v23 }
  0x9f   : > { %v554_v55 = vcombine.low %v545_v53, %v553_v14  ;;  %v385_v40 = vrot.slane %v378_v22, %v2980_v15  ;;  %v705_v43 = vrot.slane %v609_v27, %v2972_v10 }
  0xa0   : > { %v486_v50 = vrot.slane %v479_v45, %v2980_v15  ;;  %v504_v52 = vcombine.low %v495_v46, %v503_v47  ;;  %v536_v54 = vrot.slane %v529_v49, %v2980_v15  ;;  %v395_v41 = vrot.slane %v388_v34, %v2980_v15 }
  0xa1   : > { %1006 = vrot.lane.b32.xlu1 %v2976_v13, %s2904_s25  ;;  %v561_v60 = vrot.slane %v554_v55, %v2980_v15 }
  0xa2   : > { %1002 = vrot.lane.b32.xlu0 %v2990_v21, %s2904_s25  ;;  %v511_v0 = vrot.slane %v504_v52, %v2980_v15  ;;  %v575_v57 = vshrl.u32 %v486_v50, 16  ;;  %v487_v58 = vcombine.high %v486_v50, %v2903_v30  ;;  %v537_v59 = vcombine.high %v536_v54, %v2903_v30 }
  0xa3   : > { %v587_v13 = vshrl.u32 %v536_v54, 16  ;;  %v586_v21 = vpack.i.b16 %v561_v60, %v536_v54  ;;  %v588_v4 = vshrl.u32 %v561_v60, 16  ;;  %v562_v5 = vcombine.high %v561_v60, %v2903_v30 }
  0xa4   : > { %v574_v61 = vpack.i.b16 %v511_v0, %v486_v50  ;;  %v576_v62 = vshrl.u32 %v511_v0, 16  ;;  %v512_v63 = vcombine.high %v511_v0, %v2903_v30  ;;  %v581_v7 = vshrl.u32 %v487_v58, 16 }
  0xa5   : > { %1012 = vrot.lane.b32.xlu1 %v3008_v29, %s2904_s25  ;;  %v593_v9 = vshrl.u32 %v537_v59, 16  ;;  %v589_v12 = vpack.i.b16 %v588_v4, %v587_v13  ;;  %v592_v16 = vpack.i.b16 %v562_v5, %v537_v59  ;;  %v594_v17 = vshrl.u32 %v562_v5, 16 }
  0xa6   : > { %1008 = vrot.lane.b32.xlu0 %v2988_v20, %s2904_s25  ;;  %v577_v3 = vpack.i.b16 %v576_v62, %v575_v57  ;;  %v580_v6 = vpack.i.b16 %v512_v63, %v487_v58  ;;  %v582_v8 = vshrl.u32 %v512_v63, 16  ;;  %v2625_v11 = vcombine.low %v574_v61, %v586_v21 }
  0xa7   : > { %v3097_v19 = vpack.i.b16 %v594_v17, %v593_v9  ;;  %v462_v50 = vpack.i.b16 %v395_v41, %v385_v40 }
  0xa8   : > { %v3090_v18 = vpack.i.b16 %v582_v8, %v581_v7  ;;  %2726 = vmatprep.mubr.msk.bf16.mxu0 %vm1392_vm0, %v2625_v11  ;;  %v2631_v29 = vcombine.low %v577_v3, %v589_v12  ;;  %v3095_v20 = vcombine.low %v580_v6, %v592_v16 }
  0xa9   : > { %v3131_v27 = vrot.slane %v462_v50, %v2980_v15 }
  0xaa   : > { %1014 = vrot.lane.b32.xlu0 %v3006_v28, %s2904_s25  ;;  %2734 = vmatprep.mubr.msk.bf16.mxu1 %vm1392_vm0, %v2631_v29  ;;  %v2643_v25 = vcombine.low %v3090_v18, %v3097_v19  ;;  %v637_v28 = vrot.slane %v607_v26, %v2972_v10 }
  0xf7   : > { %v613_v32 = vpop.permute.xlu1 %612 }
  0xf8   : > { %v671_v42 = vrot.slane %v613_v32, %v2972_v10 }
  0xfb   : > { %v619_v33 = vpop.permute.xlu1 %618  ;;  %v615_v37 = vpop.permute.xlu0 %614 }
  0xfc   : > { %v645_v31 = vrot.slane %v619_v33, %v2972_v10  ;;  %v739_v54 = vrot.slane %v615_v37, %v2972_v10 }
  0xfe   : > { %v646_v24 = vcombine.low %v637_v28, %v645_v31  ;;  %v647_v38 = vcombine.high %v637_v28, %v645_v31 }
  0xff   : > { %v625_v39 = vpop.permute.xlu1 %624 }
 0x100   : > { %v654_v35 = vrot.slane %v646_v24, %v2980_v15  ;;  %v679_v36 = vrot.slane %v625_v39, %v2972_v10  ;;  %v621_v2 = vpop.permute.xlu0 %620  ;;  %v661_v1 = vrot.slane %v647_v38, %v2980_v15 }
 0x101   : > { %v713_v44 = vrot.slane %v621_v2, %v2972_v10 }
 0x102   : > { %v662_v45 = vcombine.high %v654_v35, %v2903_v30  ;;  %v680_v46 = vcombine.low %v671_v42, %v679_v36  ;;  %v681_v47 = vcombine.high %v671_v42, %v679_v36  ;;  %v663_v14 = vcombine.high %v661_v1, %v2903_v30 }
 0x103   : > { %v714_v48 = vcombine.low %v705_v43, %v713_v44  ;;  %v611_v49 = vpop.permute.xlu1 %610  ;;  %v715_v52 = vcombine.high %v705_v43, %v713_v44  ;;  %v790_v57 = vshrl.u32 %v654_v35, 16  ;;  %v806_v59 = vshrl.u32 %v661_v1, 16 }
 0x104   : > { %v627_v53 = vpop.permute.xlu0 %626  ;;  %v688_v0 = vrot.slane %v680_v46, %v2980_v15  ;;  %v695_v55 = vrot.slane %v681_v47, %v2980_v15  ;;  %v798_v58 = vshrl.u32 %v662_v45, 16  ;;  %v814_v8 = vshrl.u32 %v663_v14, 16 }
 0x105   : > { %v3122_v60 = vrot.slane %v714_v48, %v2980_v15  ;;  %v729_v5 = vrot.slane %v715_v52, %v2980_v15  ;;  %v747_v6 = vrot.slane %v627_v53, %v2972_v10 }
 0x106   : > { %v696_v61 = vcombine.high %v688_v0, %v2903_v30  ;;  %v697_v62 = vcombine.high %v695_v55, %v2903_v30  ;;  %v788_v63 = vpack.i.b16 %v688_v0, %v654_v35  ;;  %v791_v13 = vshrl.u32 %v688_v0, 16 }
 0x107   : > { %v623_v21 = vpop.permute.xlu1 %622  ;;  %v804_v3 = vpack.i.b16 %v695_v55, %v661_v1  ;;  %v807_v4 = vshrl.u32 %v695_v55, 16  ;;  %v730_v26 = vcombine.high %v3122_v60, %v2903_v30  ;;  %v731_v31 = vcombine.high %v729_v5, %v2903_v30 }
 0x108   : > { %v617_v7 = vpop.permute.xlu0 %616  ;;  %v796_v9 = vpack.i.b16 %v696_v61, %v662_v45  ;;  %v799_v11 = vshrl.u32 %v696_v61, 16  ;;  %v812_v12 = vpack.i.b16 %v697_v62, %v663_v14  ;;  %v792_v16 = vpack.i.b16 %v791_v13, %v790_v57 }
 0x109   : > { %v808_v17 = vpack.i.b16 %v807_v4, %v806_v59  ;;  %v815_v29 = vshrl.u32 %v697_v62, 16  ;;  %v853_v32 = vcombine.low %v788_v63, %v804_v3  ;;  %v748_v37 = vcombine.low %v739_v54, %v747_v6 }
 0x10a   : > { %v861_v33 = vcombine.low %v796_v9, %v812_v12  ;;  %v800_v34 = vpack.i.b16 %v799_v11, %v798_v58  ;;  %v822_v38 = vshrl.u32 %v3122_v60, 16  ;;  %v749_v39 = vcombine.high %v739_v54, %v747_v6 }
 0x10b   : > { %v997_v22 = vpop.permute.xlu1 %996  ;;  %v816_v28 = vpack.i.b16 %v815_v29, %v814_v8  ;;  %v768_v40 = vcombine.low %v611_v49, %v623_v21  ;;  %v878_v35 = vcombine.low %v792_v16, %v808_v17  ;;  %v830_v36 = vshrl.u32 %v730_v26, 16 }
 0x10c   : > { %v629_v24 = vpop.permute.xlu0 %628  ;;  %v838_v2 = vshrl.u32 %v729_v5, 16  ;;  %v756_v42 = vrot.slane %v748_v37, %v2980_v15  ;;  %v763_v43 = vrot.slane %v749_v39, %v2980_v15  ;;  %v860_v45 = vrot.slane %v853_v32, %v2972_v10 }
 0x10d   : > { %v778_v41 = vcombine.low %v617_v7, %v629_v24  ;;  %v775_v1 = vrot.slane %v768_v40, %v2980_v15  ;;  %v868_v46 = vrot.slane %v861_v33, %v2972_v10  ;;  %v886_v52 = vcombine.low %v800_v34, %v816_v28 }
 0x10e   : > { %v764_v47 = vcombine.high %v756_v42, %v2903_v30  ;;  %v823_v48 = vshrl.u32 %v756_v42, 16  ;;  %v765_v53 = vcombine.high %v763_v43, %v2903_v30  ;;  %v820_v14 = vpack.i.b16 %v756_v42, %v3122_v60 }
 0x10f   : > { %v1001_v44 = vpop.permute.xlu1 %1000  ;;  %v785_v49 = vrot.slane %v778_v41, %v2980_v15  ;;  %v836_v54 = vpack.i.b16 %v763_v43, %v729_v5  ;;  %v839_v0 = vshrl.u32 %v763_v43, 16  ;;  %v846_v61 = vshrl.u32 %v731_v31, 16 }
 0x110   : > { %v995_v50 = vpop.permute.xlu0 %994  ;;  %v824_v55 = vpack.i.b16 %v823_v48, %v822_v38  ;;  %v828_v57 = vpack.i.b16 %v764_v47, %v730_v26  ;;  %v831_v58 = vshrl.u32 %v764_v47, 16  ;;  %v844_v63 = vpack.i.b16 %v765_v53, %v731_v31 }
 0x111   : > { %v1025_v59 = vrot.slane %v995_v50, %v2972_v10  ;;  %v840_v62 = vpack.i.b16 %v839_v0, %v838_v2  ;;  %v847_v13 = vshrl.u32 %v765_v53, 16  ;;  %v1093_v4 = vrot.slane %v997_v22, %v2972_v10 }
 0x112   : > { %v832_v3 = vpack.i.b16 %v831_v58, %v830_v36  ;;  %v869_v8 = vcombine.low %v860_v45, %v868_v46  ;;  %v903_v5 = vcombine.low %v820_v14, %v836_v54  ;;  %v911_v9 = vcombine.low %v828_v57, %v844_v63 }
 0x113   : > { %v1007_v21 = vpop.permute.xlu1 %1006  ;;  %v848_v60 = vpack.i.b16 %v847_v13, %v846_v61  ;;  %v852_v11 = vpack.i.b16 %v785_v49, %v775_v1  ;;  %v928_v12 = vcombine.low %v824_v55, %v840_v62  ;;  %v893_v29 = vrot.slane %v886_v52, %v2972_v10 }
 0x114   : > { %v1033_v6 = vrot.slane %v1007_v21, %v2972_v10  ;;  %v1003_v7 = vpop.permute.xlu0 %1002  ;;  %v1059_v26 = vrot.slane %v1001_v44, %v2972_v10  ;;  %v3150_v33 = vrot.slane %v869_v8, %v2980_v15  ;;  %v885_v22 = vrot.slane %v878_v35, %v2972_v10 }
 0x115   : > { %v918_v34 = vrot.slane %v911_v9, %v2972_v10  ;;  %v936_v38 = vcombine.low %v832_v3, %v848_v60  ;;  %v3158_v39 = vrot.slane %v852_v11, %v2980_v15  ;;  %v1127_v40 = vrot.slane %v1003_v7, %v2972_v10 }
 0x116   : > { %v1034_v16 = vcombine.low %v1025_v59, %v1033_v6  ;;  %v1035_v17 = vcombine.high %v1025_v59, %v1033_v6  ;;  %v894_v36 = vcombine.low %v885_v22, %v893_v29  ;;  %v910_v42 = vrot.slane %v903_v5, %v2972_v10 }
 0x117   : > { %v1013_v32 = vpop.permute.xlu1 %1012  ;;  %v935_v43 = vrot.slane %v928_v12, %v2972_v10  ;;  %v943_v49 = vrot.slane %v936_v38, %v2972_v10  ;;  %v965_v50 = vshrl.u32 %v3150_v33, 16 }
 0x118   : > { %v1042_v28 = vrot.slane %v1034_v16, %v2980_v15  ;;  %v1049_v31 = vrot.slane %v1035_v17, %v2980_v15  ;;  %v1067_v37 = vrot.slane %v1013_v32, %v2972_v10  ;;  %v1009_v24 = vpop.permute.xlu0 %1008  ;;  %v919_v48 = vcombine.low %v910_v42, %v918_v34 }
 0x119   : > { %v1101_v41 = vrot.slane %v1009_v24, %v2972_v10  ;;  %v901_v54 = vrot.slane %v894_v36, %v2980_v15  ;;  %v944_v60 = vcombine.low %v935_v43, %v943_v49 }
 0x11a   : > { %v3163_v35 = vcombine.high %v1042_v28, %v2903_v30  ;;  %v3166_v2 = vcombine.high %v1049_v31, %v2903_v30  ;;  %v1068_v1 = vcombine.low %v1059_v26, %v1067_v37  ;;  %v1069_v44 = vcombine.high %v1059_v26, %v1067_v37 }
 0x11b   : > { %v1102_v45 = vcombine.low %v1093_v4, %v1101_v41  ;;  %v1103_v46 = vcombine.high %v1093_v4, %v1101_v41  ;;  %v1178_v47 = vshrl.u32 %v1042_v28, 16  ;;  %v1194_v55 = vshrl.u32 %v1049_v31, 16 }
 0x11c   : > { %v1076_v52 = vrot.slane %v1068_v1, %v2980_v15  ;;  %v1083_v53 = vrot.slane %v1069_v44, %v2980_v15  ;;  %v1186_v0 = vshrl.u32 %v3163_v35, 16  ;;  %v1202_v57 = vshrl.u32 %v3166_v2, 16  ;;  %v1015_v59 = vpop.permute.xlu0 %1014 }
 0x11d   : > { %v1110_v14 = vrot.slane %v1102_v45, %v2980_v15  ;;  %v1117_v58 = vrot.slane %v1103_v46, %v2980_v15  ;;  %v3185_v6 = vrot.slane %v919_v48, %v2980_v15  ;;  %v1135_v8 = vrot.slane %v1015_v59, %v2972_v10 }
 0x11e   : > { %v1084_v61 = vcombine.high %v1076_v52, %v2903_v30  ;;  %v1085_v62 = vcombine.high %v1083_v53, %v2903_v30  ;;  %v1176_v63 = vpack.i.b16 %v1076_v52, %v1042_v28  ;;  %v1179_v13 = vshrl.u32 %v1076_v52, 16 }
 0x11f   : > { %v1192_v21 = vpack.i.b16 %v1083_v53, %v1049_v31  ;;  %v1195_v3 = vshrl.u32 %v1083_v53, 16  ;;  %v3182_v4 = vcombine.high %v1110_v14, %v2903_v30  ;;  %v964_v5 = vpack.i.b16 %v901_v54, %v3150_v33 }
 0x120   : > { %v1187_v7 = vshrl.u32 %v1084_v61, 16  ;;  %v3189_v9 = vpack.i.b16 %v1179_v13, %v1178_v47  ;;  %v1203_v11 = vshrl.u32 %v1085_v62, 16  ;;  %v1119_v12 = vcombine.high %v1117_v58, %v2903_v30 }
 0x121   : > { %v966_v16 = vshrl.u32 %v901_v54, 16  ;;  %v1184_v17 = vpack.i.b16 %v1084_v61, %v3163_v35  ;;  %v3193_v29 = vpack.i.b16 %v1195_v3, %v1194_v55  ;;  %v1200_v26 = vpack.i.b16 %v1085_v62, %v3166_v2 }
 0x122   : > { %v3196_v32 = vcombine.low %v1176_v63, %v1192_v21  ;;  %v3198_v22 = vpack.i.b16 %v1187_v7, %v1186_v0  ;;  %v1210_v34 = vshrl.u32 %v1110_v14, 16  ;;  %v1218_v28 = vshrl.u32 %v3182_v4, 16 }
 0x123   : > { %v1226_v31 = vshrl.u32 %v1117_v58, 16  ;;  %v1204_v37 = vpack.i.b16 %v1203_v11, %v1202_v57  ;;  %v1136_v24 = vcombine.low %v1127_v40, %v1135_v8  ;;  %v1137_v38 = vcombine.high %v1127_v40, %v1135_v8 }
 0x124   : > { %v951_v41 = vrot.slane %v944_v60, %v2980_v15  ;;  %v1234_v36 = vshrl.u32 %v1119_v12, 16  ;;  %v967_v42 = vpack.i.b16 %v966_v16, %v965_v50  ;;  %v987_v35 = vpack.i.b16 %v2903_v30, %v3158_v39 }
 0x125   : > { %v988_v2 = vshrl.u32 %v3158_v39, 16  ;;  %v1144_v43 = vrot.slane %v1136_v24, %v2980_v15  ;;  %v1151_v1 = vrot.slane %v1137_v38, %v2980_v15  ;;  %v977_v46 = vshrl.u32 %v3185_v6, 16 }
 0x126   : > { %v976_v44 = vpack.i.b16 %v951_v41, %v3185_v6  ;;  %v978_v45 = vshrl.u32 %v951_v41, 16  ;;  %v2628_v47 = vcombine.low %v987_v35, %v987_v35  ;;  %v902_v48 = vcombine.high %v901_v54, %v2903_v30 }
 0x127   : > { %v989_v40 = vpack.i.b16 %v2903_v30, %v988_v2  ;;  %v1152_v49 = vcombine.high %v1144_v43, %v2903_v30  ;;  %v1153_v50 = vcombine.high %v1151_v1, %v2903_v30  ;;  %v1208_v52 = vpack.i.b16 %v1144_v43, %v1110_v14 }
 0x128   : > { %v1211_v53 = vshrl.u32 %v1144_v43, 16  ;;  %v1224_v0 = vpack.i.b16 %v1151_v1, %v1117_v58  ;;  %v1227_v55 = vshrl.u32 %v1151_v1, 16  ;;  %v2627_v57 = vcombine.low %v964_v5, %v976_v44 }
 0x129   : > { %v979_v59 = vpack.i.b16 %v978_v45, %v977_v46  ;;  %v1216_v62 = vpack.i.b16 %v1152_v49, %v3182_v4  ;;  %v1219_v63 = vshrl.u32 %v1152_v49, 16  ;;  %v1232_v13 = vpack.i.b16 %v1153_v50, %v1119_v12 }
 0x12a   : > { %v1212_v61 = vpack.i.b16 %v1211_v53, %v1210_v34  ;;  %v1228_v21 = vpack.i.b16 %v1227_v55, %v1226_v31  ;;  %v1235_v3 = vshrl.u32 %v1153_v50, 16  ;;  %v1291_v7 = vcombine.low %v1208_v52, %v1224_v0  ;;  %2794 = vmatprep.subr.msk.bf16.mxu0 %vm1392_vm0, %v2627_v57 }
 0x12b   : > { %v1400_v54 = vsel %vm1392_vm0, %v2627_v57, 0  ;;  %v1249_v8 = vcombine.low %v1184_v17, %v1200_v26  ;;  %v1266_v14 = vcombine.low %v3189_v9, %v3193_v29  ;;  %v2633_v58 = vcombine.low %v967_v42, %v979_v59 }
 0x12c   : > { %2723 = vmatpush3.bf16.xpose.msra.mxu0 %v1400_v54  ;;  %v2634_v60 = vcombine.low %v989_v40, %v989_v40  ;;  %v1274_v5 = vcombine.low %v3198_v22, %v1204_v37  ;;  %v1220_v11 = vpack.i.b16 %v1219_v63, %v1218_v28  ;;  %v1236_v4 = vpack.i.b16 %v1235_v3, %v1234_v36 }
 0x12d   : > { %2795 = vmatprep.subr.msk.bf16.mxu0 %vm1392_vm0, %v2628_v47  ;;  %v877_v12 = vcombine.high %v3150_v33, %v2903_v30  ;;  %v1248_v16 = vrot.slane %v3196_v32, %v2972_v10  ;;  %2796 = vmatprep.subr.msk.bf16.mxu1 %vm1392_vm0, %v2633_v58  ;;  %v1470_v17 = vsel %vm1392_vm0, %v2633_v58, 0  ;;  %v927_v9 = vcombine.high %v3185_v6, %v2903_v30 }
 0x12e   : > { %v952_v29 = vcombine.high %v951_v41, %v2903_v30  ;;  %v1298_v26 = vrot.slane %v1291_v7, %v2972_v10  ;;  %v1299_v22 = vcombine.low %v1216_v62, %v1232_v13  ;;  %v1316_v34 = vcombine.low %v1212_v61, %v1228_v21  ;;  %2731 = vmatpush3.bf16.xpose.msra.mxu1 %v1470_v17 }
 0x12f   : > { %v970_v28 = vpack.i.b16 %v902_v48, %v877_v12  ;;  %2797 = vmatprep.subr.msk.bf16.mxu1 %vm1392_vm0, %v2634_v60  ;;  %v972_v31 = vshrl.u32 %v902_v48, 16  ;;  %v983_v32 = vshrl.u32 %v927_v9, 16  ;;  %v1324_v24 = vcombine.low %v1220_v11, %v1236_v4 }
 0x130   : > { %v982_v33 = vpack.i.b16 %v952_v29, %v927_v9  ;;  %v984_v37 = vshrl.u32 %v952_v29, 16  ;;  %v1256_v38 = vrot.slane %v1249_v8, %v2972_v10  ;;  %v1273_v36 = vrot.slane %v1266_v14, %v2972_v10 }
 0x131   : > { %v1281_v6 = vrot.slane %v1274_v5, %v2972_v10  ;;  %v1403_v41 = vsel %vm1392_vm0, %v2628_v47, 0  ;;  %v971_v42 = vshrl.u32 %v877_v12, 16  ;;  %v961_v2 = vcombine.high %v3158_v39, %v2903_v30 }
 0x132   : > { %v985_v35 = vpack.i.b16 %v984_v37, %v983_v32  ;;  %v2639_v43 = vcombine.low %v970_v28, %v982_v33  ;;  %v1257_v1 = vcombine.low %v1248_v16, %v1256_v38  ;;  %v1306_v45 = vrot.slane %v1299_v22, %v2972_v10 }
 0x133   : > { %v1282_v44 = vcombine.low %v1273_v36, %v1281_v6  ;;  %v973_v46 = vpack.i.b16 %v972_v31, %v971_v42  ;;  %v598_v40 = vpack.i.b16 %v2903_v30, %v3131_v27  ;;  %v599_v48 = vshrl.u32 %v3131_v27, 16 }
 0x134   : > { %2725 = vmatpush3.bf16.xpose.msra.mxu0 %v1403_v41  ;;  %v1323_v49 = vrot.slane %v1316_v34, %v2972_v10  ;;  %v1264_v47 = vrot.slane %v1257_v1, %v2980_v15  ;;  %v1307_v50 = vcombine.low %v1298_v26, %v1306_v45  ;;  %v1331_v52 = vrot.slane %v1324_v24, %v2972_v10 }
 0x135   : > { %2798 = vmatprep.subr.msk.bf16.mxu0 %vm1392_vm0, %v2639_v43  ;;  %v1289_v39 = vrot.slane %v1282_v44, %v2980_v15  ;;  %v1473_v53 = vsel %vm1392_vm0, %v2634_v60, 0  ;;  %v2645_v0 = vcombine.low %v973_v46, %v985_v35  ;;  %v992_v55 = vshrl.u32 %v961_v2, 16 }
 0x136   : > { %2733 = vmatpush3.bf16.xpose.msra.mxu1 %v1473_v53  ;;  %v991_v57 = vpack.i.b16 %v2903_v30, %v961_v2  ;;  %v1314_v59 = vrot.slane %v1307_v50, %v2980_v15  ;;  %v1332_v61 = vcombine.low %v1323_v49, %v1331_v52  ;;  %v601_v62 = vpack.i.b16 %v2903_v30, %v599_v48 }
 0x137   : > { %2800 = vmatprep.subr.msk.bf16.mxu1 %vm1392_vm0, %v2645_v0  ;;  %v1265_v63 = vcombine.high %v1264_v47, %v2903_v30  ;;  %v1290_v13 = vcombine.high %v1289_v39, %v2903_v30  ;;  %v2626_v21 = vcombine.low %v598_v40, %v598_v40  ;;  %v993_v54 = vpack.i.b16 %v2903_v30, %v992_v55 }
 0x138   : > { %v1339_v3 = vrot.slane %v1332_v61, %v2980_v15  ;;  %v1315_v7 = vcombine.high %v1314_v59, %v2903_v30  ;;  %v1540_v60 = vsel %vm1392_vm0, %v2639_v43, 0  ;;  %v2640_v5 = vcombine.low %v991_v57, %v991_v57 }
 0x139   : > { %v1358_v8 = vpack.i.b16 %v1290_v13, %v1265_v63  ;;  %v1359_v14 = vshrl.u32 %v1265_v63, 16  ;;  %v1360_v58 = vshrl.u32 %v1290_v13, 16  ;;  %v2632_v4 = vcombine.low %v601_v62, %v601_v62 }
 0x13a   : > { %v1340_v11 = vcombine.high %v1339_v3, %v2903_v30  ;;  %v1371_v17 = vshrl.u32 %v1315_v7, 16  ;;  %v1610_v29 = vsel %vm1392_vm0, %v2645_v0, 0  ;;  %v2646_v26 = vcombine.low %v993_v54, %v993_v54 }
 0x13b   : > { %2727 = vmatmul.mubr.msk.bf16.vlgmr.msra.gmra.mrb[0].mxu0 %vm1392_vm0, %v2626_v21  ;;  %v1361_v12 = vpack.i.b16 %v1360_v58, %v1359_v14  ;;  %v1366_v22 = vshrl.u32 %v1339_v3, 16  ;;  %v571_v33 = vcombine.high %v3131_v27, %v2903_v30  ;;  %v1354_v31 = vshrl.u32 %v1289_v39, 16 }
 0x13c   : > { %2739 = vmatpush3.bf16.xpose.msra.mxu0 %v1540_v60  ;;  %2742 = vmatprep.mubr.msk.bf16.mxu0 %vm1392_vm0, %v3095_v20  ;;  %v1370_v16 = vpack.i.b16 %v1340_v11, %v1315_v7  ;;  %v1372_v9 = vshrl.u32 %v1340_v11, 16  ;;  %v1364_v20 = vpack.i.b16 %v1339_v3, %v1314_v59  ;;  %v1365_v32 = vshrl.u32 %v1314_v59, 16 }
 0x13d   : > { %2799 = vmatprep.subr.msk.bf16.mxu0 %vm1392_vm0, %v2640_v5  ;;  %2735 = vmatmul.mubr.msk.bf16.vlgmr.msra.gmra.mrb[0].mxu1 %vm1392_vm0, %v2632_v4  ;;  %v1352_v37 = vpack.i.b16 %v1289_v39, %v1264_v47  ;;  %v1353_v38 = vshrl.u32 %v1264_v47, 16  ;;  %v1543_v18 = vsel %vm1392_vm0, %v2640_v5, 0  ;;  %v604_v6 = vshrl.u32 %v571_v33, 16 }
 0x13e   : > { %2747 = vmatpush3.bf16.xpose.msra.mxu1 %v1610_v29  ;;  %2750 = vmatprep.mubr.msk.bf16.mxu1 %vm1392_vm0, %v2643_v25  ;;  %v3268_v34 = vcombine.low %v1358_v8, %v1370_v16  ;;  %v1373_v28 = vpack.i.b16 %v1372_v9, %v1371_v17  ;;  %v1367_v36 = vpack.i.b16 %v1366_v22, %v1365_v32  ;;  %v1613_v27 = vsel %vm1392_vm0, %v2646_v26, 0 }
 0x13f   : > { %2801 = vmatprep.subr.msk.bf16.mxu1 %vm1392_vm0, %v2646_v26  ;;  %v2649_v19 = vcombine.low %v1352_v37, %v1364_v20  ;;  %v1355_v25 = vpack.i.b16 %v1354_v31, %v1353_v38  ;;  %v603_v41 = vpack.i.b16 %v2903_v30, %v571_v33  ;;  %v605_v35 = vpack.i.b16 %v2903_v30, %v604_v6  ;;  %v2888_v33 = vld [vmem:[%s2948_s20 + $0x8] sm:$0x1] }
 0x140   : > { %v3273_v24 = vcombine.low %v1361_v12, %v1373_v28 }
 0x141   : > { %v2653_v42 = vcombine.low %v1355_v25, %v1367_v36  ;;  %v2638_v2 = vcombine.low %v603_v41, %v603_v41  ;;  %v2644_v43 = vcombine.low %v605_v35, %v605_v35 }
 0x144   : > { %2741 = vmatpush3.bf16.xpose.msra.mxu0 %v1543_v18 }
 0x145   : > { %2754 = vmatprep.subr.bf16.mxu0 %v2649_v19 }
 0x146   : > { %2749 = vmatpush3.bf16.xpose.msra.mxu1 %v1613_v27 }
 0x147   : > { %2762 = vmatprep.subr.bf16.mxu1 %v2653_v42 }
 0x14b   : > { %2743 = vmatmul.mubr.msk.bf16.vlgmr.msra.gmra.mrb[4].mxu0 %vm1392_vm0, %v2638_v2 }
 0x14c   : > { %2755 = vmatpush3.bf16.msra.mxu0 %v2649_v19 }
 0x14d   : > { %2751 = vmatmul.mubr.msk.bf16.vlgmr.msra.gmra.mrb[4].mxu1 %vm1392_vm0, %v2644_v43 }
 0x14e   : > { %2763 = vmatpush3.bf16.msra.mxu1 %v2653_v42 }
 0x20e   : > { %v2728_v1 = vpop.f32.mrb[0].mxu0 }
 0x20f   : > { %v1665_v44 = vmul.f32 0.35355338, %v2728_v1  ;;  %v1439_v45 = vpop.f32.mrb[1].mxu0 }
 0x210   : > { %v1663_v46 = vmul.f32 0.35355338, %v1439_v45  ;;  %v2729_v40 = vpop.f32.mrb[2].mxu0  ;;  %v2736_v48 = vpop.f32.mrb[0].mxu1 }
 0x211   : > { %v1442_v49 = vpop.f32.mrb[3].mxu0  ;;  %v1683_v47 = vsel %vm1682_vm1, %v1665_v44, -inf  ;;  %v1668_v39 = vmul.f32 0.35355338, %v2736_v48  ;;  %v1509_v52 = vpop.f32.mrb[1].mxu1 }
 0x212   : > { %v1664_v50 = vmul.f32 0.35355338, %v1442_v49  ;;  %1684 = vmax.xlane.f32.xlu0 %v1683_v47  ;;  %v1676_v53 = vsel %vm1675_vm2, %v1663_v46, -inf  ;;  %v2737_v0 = vpop.f32.mrb[2].mxu1  ;;  %v1666_v59 = vmul.f32 0.35355338, %v1509_v52 }
 0x213   : > { %1677 = vmax.xlane.f32.xlu1 %v1676_v53  ;;  %v1512_v55 = vpop.f32.mrb[3].mxu1  ;;  %v1692_v62 = vsel %vm1682_vm1, %v1668_v39, -inf }
 0x214   : > { %v1679_v57 = vsel %vm1675_vm2, %v1664_v50, -inf  ;;  %v1667_v61 = vmul.f32 0.35355338, %v1512_v55  ;;  %v1686_v63 = vsel %vm1675_vm2, %v1666_v59, -inf }
 0x216   : > { %1680 = vmax.xlane.f32.xlu0 %v1679_v57  ;;  %v1689_v13 = vsel %vm1675_vm2, %v1667_v61, -inf }
 0x217   : > { %1693 = vmax.xlane.f32.xlu1 %v1692_v62 }
 0x21a   : > { %1687 = vmax.xlane.f32.xlu0 %v1686_v63 }
 0x21b   : > { %1690 = vmax.xlane.f32.xlu1 %v1689_v13 }
 0x21e   : > { %v2744_v21 = vpop.f32.mrb[4].mxu0 }
 0x21f   : > { %v1671_v3 = vmul.f32 0.35355338, %v2744_v21  ;;  %v1579_v7 = vpop.f32.mrb[5].mxu0 }
 0x220   : > { %v2745_v54 = vpop.f32.mrb[6].mxu0  ;;  %v3287_v8 = vmul.f32 0.35355338, %v1579_v7  ;;  %v2752_v14 = vpop.f32.mrb[4].mxu1 }
 0x221   : > { %v1582_v58 = vpop.f32.mrb[7].mxu0  ;;  %v1701_v60 = vsel %vm1682_vm1, %v1671_v3, -inf  ;;  %v3290_v5 = vmul.f32 0.35355338, %v2752_v14  ;;  %v1649_v11 = vpop.f32.mrb[5].mxu1 }
 0x222   : > { %1702 = vmax.xlane.f32.xlu0 %v1701_v60  ;;  %v2753_v4 = vpop.f32.mrb[6].mxu1  ;;  %v3292_v12 = vmul.f32 0.35355338, %v1582_v58  ;;  %v3296_v9 = vmul.f32 0.35355338, %v1649_v11  ;;  %v1695_v29 = vsel %vm1675_vm2, %v3287_v8, -inf }
 0x223   : > { %v1652_v16 = vpop.f32.mrb[7].mxu1  ;;  %v1710_v17 = vsel %vm1682_vm1, %v3290_v5, -inf }
 0x224   : > { %1711 = vmax.xlane.f32.xlu1 %v1710_v17  ;;  %v3300_v26 = vmul.f32 0.35355338, %v1652_v16  ;;  %v1698_v22 = vsel %vm1675_vm2, %v3292_v12, -inf  ;;  %v1704_v20 = vsel %vm1675_vm2, %v3296_v9, -inf }
 0x226   : > { %1696 = vmax.xlane.f32.xlu0 %v1695_v29  ;;  %v1707_v28 = vsel %vm1675_vm2, %v3300_v26, -inf }
 0x228   : > { %1699 = vmax.xlane.f32.xlu1 %v1698_v22 }
 0x22a   : > { %1705 = vmax.xlane.f32.xlu0 %v1704_v20 }
 0x22c   : > { %1708 = vmax.xlane.f32.xlu1 %v1707_v28 }
 0x23d   : > { %1004 = vrot.lane.b32.xlu1 %v3038_v51, %s2904_s25 }
 0x240   : > { %998 = vrot.lane.b32.xlu0 %v2888_v33, %s2904_s25 }
 0x29f   : > { %v1685_v31 = vpop.xlane.xlu0 %1684 }
 0x2a0   : > { %v1715_v32 = vsub.f32 %v1665_v44, %v1685_v31  ;;  %v1678_v37 = vpop.xlane.xlu1 %1677 }
 0x2a1   : > { %v1713_v38 = vsub.f32 %v1663_v46, %v1678_v37 }
 0x2a2   : > { %v1729_v36 = vmul.f32 1.442695, %v1715_v32 }
 0x2a3   : > { %v1725_v18 = vmul.f32 1.442695, %v1713_v38  ;;  %v1681_v19 = vpop.xlane.xlu0 %1680 }
 0x2a4   : > { %2840 = vpow2.f32 %v1729_v36  ;;  %v1714_v25 = vsub.f32 %v1664_v50, %v1681_v19  ;;  %v1694_v6 = vpop.xlane.xlu1 %1693 }
 0x2a5   : > { %2842 = vpow2.f32 %v1725_v18  ;;  %v1718_v41 = vsub.f32 %v1668_v39, %v1694_v6 }
 0x2a6   : > { %v1727_v27 = vmul.f32 1.442695, %v1714_v25 }
 0x2a7   : > { %v1735_v42 = vmul.f32 1.442695, %v1718_v41  ;;  %v1688_v35 = vpop.xlane.xlu0 %1687 }
 0x2a8   : > { %2844 = vpow2.f32 %v1727_v27  ;;  %v1716_v51 = vsub.f32 %v1666_v59, %v1688_v35  ;;  %v1691_v2 = vpop.xlane.xlu1 %1690 }
 0x2a9   : > { %2846 = vpow2.f32 %v1735_v42  ;;  %v1717_v43 = vsub.f32 %v1667_v61, %v1691_v2 }
 0x2aa   : > { %v1731_v1 = vmul.f32 1.442695, %v1716_v51 }
 0x2ab   : > { %v1733_v44 = vmul.f32 1.442695, %v1717_v43 }
 0x2ac   : > { %2848 = vpow2.f32 %v1731_v1 }
 0x2ad   : > { %2850 = vpow2.f32 %v1733_v44 }
 0x2ae   : > { %v3312_v45 = vpop.eup %2840 }
 0x2af   : > { %v3314_v46 = vpop.eup %2842  ;;  %v1703_v40 = vpop.xlane.xlu0 %1702  ;;  %v1755_v48 = vsel %vm1682_vm1, %v3312_v45, 0.0 }
 0x2b0   : > { %v1721_v49 = vsub.f32 %v1671_v3, %v1703_v40  ;;  %1756 = vadd.xlane.f32.xlu0 %v1755_v48  ;;  %v1749_v47 = vsel %vm1675_vm2, %v3314_v46, 0.0 }
 0x2b1   : > { %1750 = vadd.xlane.f32.xlu1 %v1749_v47  ;;  %v1712_v52 = vpop.xlane.xlu1 %1711 }
 0x2b2   : > { %v3320_v39 = vpop.eup %2844  ;;  %v1741_v50 = vmul.f32 1.442695, %v1721_v49  ;;  %v1724_v0 = vsub.f32 %v3290_v5, %v1712_v52 }
 0x2b3   : > { %v3322_v53 = vpop.eup %2846  ;;  %v1697_v55 = vpop.xlane.xlu0 %1696  ;;  %v1752_v57 = vsel %vm1675_vm2, %v3320_v39, 0.0 }
 0x2b4   : > { %2852 = vpow2.f32 %v1741_v50  ;;  %v1719_v59 = vsub.f32 %v3287_v8, %v1697_v55  ;;  %1753 = vadd.xlane.f32.xlu0 %v1752_v57  ;;  %v1764_v61 = vsel %vm1682_vm1, %v3322_v53, 0.0  ;;  %v1747_v62 = vmul.f32 1.442695, %v1724_v0 }
 0x2b5   : > { %1765 = vadd.xlane.f32.xlu1 %v1764_v61  ;;  %v1700_v21 = vpop.xlane.xlu1 %1699 }
 0x2b6   : > { %v3330_v63 = vpop.eup %2848  ;;  %v1737_v13 = vmul.f32 1.442695, %v1719_v59  ;;  %2854 = vpow2.f32 %v1747_v62  ;;  %v1720_v7 = vsub.f32 %v3292_v12, %v1700_v21 }
 0x2b7   : > { %v2851_v3 = vpop.eup %2850  ;;  %v1706_v54 = vpop.xlane.xlu0 %1705  ;;  %v1758_v14 = vsel %vm1675_vm2, %v3330_v63, 0.0 }
 0x2b8   : > { %2856 = vpow2.f32 %v1737_v13  ;;  %v1722_v8 = vsub.f32 %v3296_v9, %v1706_v54  ;;  %1759 = vadd.xlane.f32.xlu0 %v1758_v14  ;;  %v1761_v58 = vsel %vm1675_vm2, %v2851_v3, 0.0  ;;  %v1739_v60 = vmul.f32 1.442695, %v1720_v7 }
 0x2b9   : > { %1762 = vadd.xlane.f32.xlu1 %v1761_v58  ;;  %v1709_v11 = vpop.xlane.xlu1 %1708  ;;  %v1831_v14 = vsel %vm1829_vm3, 65535, %v2903_v30 }
 0x2ba   : > { %v1743_v5 = vmul.f32 1.442695, %v1722_v8  ;;  %2858 = vpow2.f32 %v1739_v60  ;;  %v1723_v4 = vsub.f32 %v3300_v26, %v1709_v11 }
 0x2bb   : > { %v999_v38 = vpop.permute.xlu0 %998 }
 0x2bc   : > { %2860 = vpow2.f32 %v1743_v5  ;;  %v1745_v16 = vmul.f32 1.442695, %v1723_v4 }
 0x2bd   : > { %v1005_v36 = vpop.permute.xlu1 %1004 }
 0x2be   : > { %v3338_v12 = vpop.eup %2852  ;;  %2862 = vpow2.f32 %v1745_v16 }
 0x2bf   : > { %v1773_v17 = vsel %vm1682_vm1, %v3338_v12, 0.0 }
 0x2c0   : > { %1774 = vadd.xlane.f32.xlu0 %v1773_v17  ;;  %v3342_v9 = vpop.eup %2854 }
 0x2c1   : > { %v1782_v22 = vsel %vm1682_vm1, %v3342_v9, 0.0 }
 0x2c2   : > { %v3344_v29 = vpop.eup %2856  ;;  %1783 = vadd.xlane.f32.xlu1 %v1782_v22 }
 0x2c3   : > { %v1767_v26 = vsel %vm1675_vm2, %v3344_v29, 0.0 }
 0x2c4   : > { %1768 = vadd.xlane.f32.xlu0 %v1767_v26  ;;  %v3350_v20 = vpop.eup %2858 }
 0x2c5   : > { %v1770_v33 = vsel %vm1675_vm2, %v3350_v20, 0.0 }
 0x2c6   : > { %v3352_v28 = vpop.eup %2860  ;;  %1771 = vadd.xlane.f32.xlu1 %v1770_v33 }
 0x2c7   : > { %v1776_v31 = vsel %vm1675_vm2, %v3352_v28, 0.0 }
 0x2c8   : > { %1777 = vadd.xlane.f32.xlu0 %v1776_v31  ;;  %v3358_v32 = vpop.eup %2862 }
 0x2c9   : > { %v1779_v37 = vsel %vm1675_vm2, %v3358_v32, 0.0 }
 0x2ca   : > { %1780 = vadd.xlane.f32.xlu1 %v1779_v37 }
 0x2db   : > { %1010 = vrot.lane.b32.xlu1 %v3043_v56, %s2904_s25 }
 0x2de   : > { %1016 = vrot.lane.b32.xlu0 %v3056_v23, %s2904_s25 }
 0x33d   : > { %v1757_v18 = vpop.xlane.xlu0 %1756 }
 0x33e   : > { %v1751_v19 = vpop.xlane.xlu1 %1750 }
 0x33f   : > { %2864 = vrcp.f32 %v1751_v19 }
 0x341   : > { %v1754_v25 = vpop.xlane.xlu0 %1753 }
 0x342   : > { %2866 = vrcp.f32 %v1754_v25  ;;  %v1766_v6 = vpop.xlane.xlu1 %1765 }
 0x345   : > { %v1760_v41 = vpop.xlane.xlu0 %1759 }
 0x346   : > { %2868 = vrcp.f32 %v1760_v41  ;;  %v1763_v27 = vpop.xlane.xlu1 %1762 }
 0x347   : > { %2870 = vrcp.f32 %v1763_v27 }
 0x348   : > { %2872 = vrcp.f32 %v1757_v18 }
 0x349   : > { %v2865_v42 = vpop.eup %2864  ;;  %2874 = vrcp.f32 %v1766_v6 }
 0x34a   : > { %v1797_v56 = vmul.f32 %v2865_v42, %v3314_v46 }
 0x34c   : > { %v2867_v35 = vpop.eup %2866 }
 0x34d   : > { %v1775_v51 = vpop.xlane.xlu0 %1774  ;;  %v1798_v2 = vmul.f32 %v2867_v35, %v3320_v39 }
 0x34f   : > { %v1809_v23 = vpack.c.bf16 %v1798_v2, %v1797_v56  ;;  %v1784_v1 = vpop.xlane.xlu1 %1783 }
 0x350   : > { %v2869_v43 = vpop.eup %2868 }
 0x351   : > { %v2871_v44 = vpop.eup %2870  ;;  %v1769_v40 = vpop.xlane.xlu0 %1768  ;;  %2758 = vmatprep.mubr.msk.bf16.mxu0 %vm1675_vm2, %v1809_v23  ;;  %v1800_v48 = vmul.f32 %v2869_v43, %v3330_v63 }
 0x352   : > { %v1801_v49 = vmul.f32 %v2871_v44, %v2851_v3  ;;  %v2873_v13 = vpop.eup %2872 }
 0x353   : > { %v1772_v47 = vpop.xlane.xlu1 %1771  ;;  %v2875_v54 = vpop.eup %2874  ;;  %v1799_v17 = vmul.f32 %v2873_v13, %v3312_v45 }
 0x354   : > { %v1811_v50 = vpack.c.bf16 %v1801_v49, %v1800_v48  ;;  %2876 = vrcp.f32 %v1772_v47 }
 0x355   : > { %v1778_v52 = vpop.xlane.xlu0 %1777  ;;  %2878 = vrcp.f32 %v1769_v40  ;;  %v1810_v45 = vpack.c.bf16 %v1799_v17, %v1799_v17 }
 0x356   : > { %2766 = vmatprep.mubr.msk.bf16.mxu1 %vm1675_vm2, %v1811_v50 }
 0x357   : > { %v1781_v0 = vpop.xlane.xlu1 %1780 }
 0x358   : > { %2880 = vrcp.f32 %v1781_v0 }
 0x359   : > { %v1017_v55 = vpop.permute.xlu0 %1016  ;;  %2882 = vrcp.f32 %v1778_v52 }
 0x35a   : > { %v1166_v46 = vcombine.low %v1005_v36, %v1017_v55  ;;  %2884 = vrcp.f32 %v1775_v51 }
 0x35b   : > { %v1011_v39 = vpop.permute.xlu1 %1010  ;;  %2886 = vrcp.f32 %v1784_v1 }
 0x35c   : > { %v1156_v57 = vcombine.low %v999_v38, %v1011_v39  ;;  %v1173_v59 = vrot.slane %v1166_v46, %v2980_v15  ;;  %v1802_v38 = vmul.f32 %v2875_v54, %v3322_v53 }
 0x35e   : > { %v1163_v61 = vrot.slane %v1156_v57, %v2980_v15  ;;  %v2877_v8 = vpop.eup %2876  ;;  %v1812_v53 = vpack.c.bf16 %v1802_v38, %v1802_v38 }
 0x35f   : > { %v2879_v4 = vpop.eup %2878  ;;  %v1804_v31 = vmul.f32 %v2877_v8, %v3350_v20 }
 0x360   : > { %v1240_v62 = vpack.i.b16 %v1173_v59, %v1163_v61  ;;  %v1803_v19 = vmul.f32 %v2879_v4, %v3344_v29 }
 0x362   : > { %v1348_v63 = vrot.slane %v1240_v62, %v2980_v15  ;;  %v2881_v16 = vpop.eup %2880 }
 0x363   : > { %v2883_v37 = vpop.eup %2882  ;;  %v1807_v25 = vmul.f32 %v2881_v16, %v3358_v32 }
 0x364   : > { %v1375_v21 = vpack.i.b16 %v2903_v30, %v1348_v63  ;;  %v1376_v3 = vshrl.u32 %v1348_v63, 16  ;;  %v1349_v7 = vcombine.high %v1348_v63, %v2903_v30  ;;  %v2885_v41 = vpop.eup %2884  ;;  %v1806_v20 = vmul.f32 %v2883_v37, %v3352_v28 }
 0x365   : > { %v2887_v42 = vpop.eup %2886  ;;  %v1805_v32 = vmul.f32 %v2885_v41, %v3338_v12 }
 0x366   : > { %v2650_v58 = vcombine.low %v1375_v21, %v1375_v21  ;;  %v1377_v60 = vpack.i.b16 %v2903_v30, %v1376_v3  ;;  %v1379_v5 = vpack.i.b16 %v2903_v30, %v1349_v7  ;;  %v1380_v11 = vshrl.u32 %v1349_v7, 16 }
 0x367   : > { %v1815_v29 = vpack.c.bf16 %v1807_v25, %v1806_v20  ;;  %v1808_v28 = vmul.f32 %v2887_v42, %v3342_v9  ;;  %v1814_v51 = vpack.c.bf16 %v1805_v32, %v1805_v32 }
 0x368   : > { %v1833_v22 = vand.u32 %v2650_v58, %v1831_v14  ;;  %v2654_v26 = vcombine.low %v1377_v60, %v1377_v60  ;;  %v1381_v33 = vpack.i.b16 %v2903_v30, %v1380_v11  ;;  %v2658_v18 = vcombine.low %v1379_v5, %v1379_v5 }
 0x369   : > { %v1813_v30 = vpack.c.bf16 %v1804_v31, %v1803_v19 }
 0x36a   : > { %2756 = vmatprep.subr.bf16.mxu0 %v1833_v22  ;;  %v1896_v36 = vand.u32 %v2654_v26, %v1831_v14  ;;  %v2662_v6 = vcombine.low %v1381_v33, %v1381_v33  ;;  %v1959_v27 = vand.u32 %v2658_v18, %v1831_v14 }
 0x36b   : > { %2757 = vmatpush3.bf16.msra.mxu0 %v1833_v22 }
 0x36c   : > { %2764 = vmatprep.subr.bf16.mxu1 %v1896_v36  ;;  %2770 = vmatprep.subr.bf16.mxu0 %v3268_v34  ;;  %v2022_v35 = vand.u32 %v2662_v6, %v1831_v14 }
 0x36d   : > { %2765 = vmatpush3.bf16.msra.mxu1 %v1896_v36 }
 0x36e   : > { %2759 = vmatmul.mubr.msk.bf16.vlgmr.msra.gmra.mrb[8].mxu0 %vm1675_vm2, %v1810_v45  ;;  %2778 = vmatprep.subr.bf16.mxu1 %v3273_v24 }
 0x36f   : > { %2771 = vmatpush3.bf16.msra.mxu0 %v3268_v34  ;;  %2774 = vmatprep.mubr.msk.bf16.mxu0 %vm1675_vm2, %v1813_v30  ;;  %v1816_v34 = vpack.c.bf16 %v1808_v28, %v1808_v28 }
 0x370   : > { %2767 = vmatmul.mubr.msk.bf16.vlgmr.msra.gmra.mrb[8].mxu1 %vm1675_vm2, %v1812_v53  ;;  %2772 = vmatprep.subr.bf16.mxu0 %v1959_v27 }
 0x371   : > { %2779 = vmatpush3.bf16.msra.mxu1 %v3273_v24  ;;  %2782 = vmatprep.mubr.msk.bf16.mxu1 %vm1675_vm2, %v1815_v29 }
 0x372   : > { %2780 = vmatprep.subr.bf16.mxu1 %v2022_v35 }
 0x373   : > { %2773 = vmatpush3.bf16.msra.mxu0 %v1959_v27 }
 0x375   : > { %2781 = vmatpush3.bf16.msra.mxu1 %v2022_v35 }
 0x376   : > { %2775 = vmatmul.mubr.msk.bf16.vlgmr.msra.gmra.mrb[12].mxu0 %vm1675_vm2, %v1814_v51 }
 0x378   : > { %2783 = vmatmul.mubr.msk.bf16.vlgmr.msra.gmra.mrb[12].mxu1 %vm1675_vm2, %v1816_v34 }
 0x441   : > { %v2760_v12 = vpop.f32.mrb[8].mxu0 }
 0x442   : > { %v1869_v56 = vpop.f32.mrb[9].mxu0 }
 0x443   : > { %v2761_v2 = vpop.f32.mrb[10].mxu0  ;;  %v2768_v23 = vpop.f32.mrb[8].mxu1 }
 0x444   : > { %v1872_v43 = vpop.f32.mrb[11].mxu0  ;;  %v1932_v1 = vpop.f32.mrb[9].mxu1 }
 0x445   : > { %v2769_v24 = vpop.f32.mrb[10].mxu1 }
 0x446   : > { %v1935_v44 = vpop.f32.mrb[11].mxu1 }
 0x449   : > { %v2776_v40 = vpop.f32.mrb[12].mxu0 }
 0x44a   : > { %v2208_v48 = vcombine.low %v2760_v12, %v2776_v40  ;;  %v1995_v9 = vpop.f32.mrb[13].mxu0 }
 0x44b   : > { %v2072_v49 = vcombine.low %v1869_v56, %v1995_v9  ;;  %v2073_v47 = vcombine.high %v1869_v56, %v1995_v9  ;;  %v2777_v50 = vpop.f32.mrb[14].mxu0  ;;  %v2784_v52 = vpop.f32.mrb[12].mxu1  ;;  %v2905_v9 = vmov 0.0  }
 0x44c   : > { %v2216_v0 = vcombine.low %v2768_v23, %v2784_v52  ;;  %v1998_v55 = vpop.f32.mrb[15].mxu0  ;;  %v2058_v46 = vpop.f32.mrb[13].mxu1  ;;  %v2215_v61 = vrot.slane %v2208_v48, %v2972_v10 }
 0x44d   : > { %v2140_v39 = vcombine.low %v1872_v43, %v1998_v55  ;;  %v2141_v57 = vcombine.high %v1872_v43, %v1998_v55  ;;  %v2785_v59 = vpop.f32.mrb[14].mxu1  ;;  %v2088_v63 = vcombine.low %v1932_v1, %v2058_v46  ;;  %v2089_v13 = vcombine.high %v1932_v1, %v2058_v46 }
 0x44e   : > { %v2223_v62 = vrot.slane %v2216_v0, %v2972_v10  ;;  %v2061_v21 = vpop.f32.mrb[15].mxu1  ;;  %v2080_v3 = vrot.slane %v2072_v49, %v2972_v10  ;;  %v2087_v14 = vrot.slane %v2073_v47, %v2972_v10 }
 0x44f   : > { %v2156_v7 = vcombine.low %v1935_v44, %v2061_v21  ;;  %v2157_v54 = vcombine.high %v1935_v44, %v2061_v21  ;;  %v2096_v58 = vrot.slane %v2088_v63, %v2972_v10  ;;  %v2103_v60 = vrot.slane %v2089_v13, %v2972_v10 }
 0x450   : > { %v2224_v8 = vcombine.low %v2215_v61, %v2223_v62  ;;  %v2148_v5 = vrot.slane %v2140_v39, %v2972_v10  ;;  %v2155_v11 = vrot.slane %v2141_v57, %v2972_v10 }
 0x451   : > { %v2164_v4 = vrot.slane %v2156_v7, %v2972_v10  ;;  %v2171_v16 = vrot.slane %v2157_v54, %v2972_v10  ;;  %v2104_v22 = vcombine.low %v2080_v3, %v2096_v58  ;;  %v2105_v26 = vcombine.high %v2080_v3, %v2096_v58 }
 0x452   : > { %v2367_v17 = vrot.slane %v2224_v8, %v2980_v15  ;;  %v2120_v33 = vcombine.low %v2087_v14, %v2103_v60  ;;  %v2121_v31 = vcombine.high %v2087_v14, %v2103_v60 }
 0x453   : > { %v2172_v37 = vcombine.low %v2148_v5, %v2164_v4  ;;  %v2173_v38 = vcombine.high %v2148_v5, %v2164_v4  ;;  %v2188_v36 = vcombine.low %v2155_v11, %v2171_v16  ;;  %v2112_v18 = vrot.slane %v2104_v22, %v2980_v15 }
 0x454   : > { %v2119_v19 = vrot.slane %v2105_v26, %v2980_v15  ;;  %v2128_v25 = vrot.slane %v2120_v33, %v2980_v15  ;;  %v2189_v45 = vcombine.high %v2155_v11, %v2171_v16  ;;  %v2135_v6 = vrot.slane %v2121_v31, %v2980_v15 }
 0x455   : > { %v2180_v41 = vrot.slane %v2172_v37, %v2980_v15  ;;  %v2187_v30 = vrot.slane %v2173_v38, %v2980_v15  ;;  %v2196_v20 = vrot.slane %v2188_v36, %v2980_v15  ;;  %v2374_v29 = vrot.slane %v2367_v17, %v2972_v10  ;;  %v2839_v17 = vld [vmem:[%s3464_s2 + $0x8] sm:$0xff]  }
 0x456   : > { %v2225_v53 = vcombine.low %v2112_v18, %v2119_v19  ;;  %v2665_v27 = vcombine.high %v2112_v18, %v2119_v19  ;;  %v2203_v42 = vrot.slane %v2189_v45, %v2980_v15  ;;  %v2241_v32 = vcombine.low %v2128_v25, %v2135_v6 }
 0x457   : > { %v2666_v35 = vcombine.high %v2128_v25, %v2135_v6  ;;  %v2293_v28 = vcombine.low %v2180_v41, %v2187_v30  ;;  %v2667_v51 = vcombine.high %v2180_v41, %v2187_v30  ;;  %v2382_v48 = vrot.slane %v2374_v29, %v2980_v15 }
 0x458   : > { %v2232_v34 = vrot.slane %v2225_v53, %v2972_v10  ;;  %v2240_v12 = vrot.slane %v2665_v27, %v2972_v10  ;;  %v2309_v56 = vcombine.low %v2196_v20, %v2203_v42  ;;  %v2668_v2 = vcombine.high %v2196_v20, %v2203_v42 }
 0x459   : > { %v2248_v23 = vrot.slane %v2241_v32, %v2972_v10  ;;  %v2256_v43 = vrot.slane %v2666_v35, %v2972_v10  ;;  %v2300_v1 = vrot.slane %v2293_v28, %v2972_v10  ;;  %v2308_v24 = vrot.slane %v2667_v51, %v2972_v10 }
 0x45a   : > { %v2316_v44 = vrot.slane %v2309_v56, %v2972_v10  ;;  %v2324_v40 = vrot.slane %v2668_v2, %v2972_v10  ;;  %v2375_v49 = vcombine.high %v2374_v29, %v2905_v9  ;;  %v2257_v47 = vcombine.low %v2232_v34, %v2240_v12  ;;  %v2838_v10 = vld [vmem:[%s3464_s2] sm:$0xff]  }
 0x45b   : > { %v2273_v50 = vcombine.low %v2248_v23, %v2256_v43  ;;  %v2325_v52 = vcombine.low %v2300_v1, %v2308_v24  ;;  %v2258_v0 = vcombine.high %v2232_v34, %v2240_v12  ;;  %v2390_v55 = vcombine.high %v2382_v48, %v2905_v9  ;;  %2786 = vmatprep.subr.bf16.mxu0 %v2838_v10 }
 0x45c   : > { %v2341_v46 = vcombine.low %v2316_v44, %v2324_v40  ;;  %v2274_v39 = vcombine.high %v2248_v23, %v2256_v43  ;;  %v2265_v57 = vrot.slane %v2257_v47, %v2980_v15  ;;  %v2326_v21 = vcombine.high %v2300_v1, %v2308_v24  ;;  %2787 = vmatpush3.bf16.msra.mxu0 %v2838_v10  ;;  %v2521_v23 = vld [vmem:[%s212_s9 + $0x8] sm:$0x1]  ;;  %v2683_v43 = vld [vmem:[%s212_s9] sm:$0xff]  }
 0x45d   : > { %v2281_v59 = vrot.slane %v2273_v50, %v2980_v15  ;;  %v2333_v61 = vrot.slane %v2325_v52, %v2980_v15  ;;  %v2272_v62 = vrot.slane %v2258_v0, %v2980_v15  ;;  %2399 = vrot.lane.b32.xlu0 %v2390_v55, %s2906_s28  ;;  %v2389_v3 = vrot.slane %v2375_v49, %v2980_v15  ;;  %v2669_v1 = vld [vmem:[%s3465_s3] ss:$0 sm:$0xff]  ;;  %v2547_v55 = vld [vmem:[%s217_s14 + $0x8] sm:$0x1] }
 0x45e   : > { %v2349_v63 = vrot.slane %v2341_v46, %v2980_v15  ;;  %v2288_v13 = vrot.slane %v2274_v39, %v2980_v15  ;;  %v2342_v14 = vcombine.high %v2316_v44, %v2324_v40  ;;  %v2340_v5 = vrot.slane %v2326_v21, %v2980_v15  ;;  %2788 = vmatprep.subr.bf16.mxu0 %v2839_v17 }
 0x45f   : > { %v2289_v7 = vcombine.low %v2265_v57, %v2281_v59  ;;  %v2290_v54 = vcombine.high %v2265_v57, %v2281_v59  ;;  %v2391_v33 = vcombine.high %v2389_v3, %v2905_v9  ;;  %v2524_v24 = vunpack.c.l.bf16 %v2521_v23 }
 0x460   : > { %v2358_v8 = vcombine.high %v2333_v61, %v2349_v63  ;;  %v2357_v58 = vcombine.low %v2333_v61, %v2349_v63  ;;  %v2291_v60 = vcombine.low %v2272_v62, %v2288_v13  ;;  %v2356_v11 = vrot.slane %v2342_v14, %v2980_v15  ;;  %2789 = vmatpush3.bf16.msra.mxu0 %v2839_v17 }
 0x461   : > { %v2292_v4 = vcombine.high %v2272_v62, %v2288_v13  ;;  %2411 = vrot.lane.b32.xlu0 %v2389_v3, %s2907_s29  ;;  %v2684_v40 = vunpack.c.l.bf16 %v2683_v43  ;;  %v2685_v50 = vunpack.c.h.bf16 %v2683_v43 }
 0x462   : > { %v2823_v16 = vpack.i.bf16 %v2358_v8, %v2290_v54  ;;  %v2359_v22 = vcombine.low %v2340_v5, %v2356_v11  ;;  %v2360_v26 = vcombine.high %v2340_v5, %v2356_v11 }
 0x464   : > { %2824 = vrot.lane.b32.xlu1 %v2823_v16, %s2906_s28  ;;  %v2828_v31 = vpack.i.bf16 %v2359_v22, %v2291_v60  ;;  %v2833_v37 = vpack.i.bf16 %v2360_v26, %v2292_v4 }
 0x465   : > { %2423 = vrot.lane.b32.xlu0 %v2391_v33, %s2908_s6 }
 0x468   : > { %2829 = vrot.lane.b32.xlu1 %v2828_v31, %s2907_s29 }
 0x46c   : > { %2834 = vrot.lane.b32.xlu1 %v2833_v37, %s2908_s6 }
 0x4cf   : > { %v2400_v15 = vpop.permute.xlu0 %2399 }
 0x4d0   : > { %v2430_v41 = vsel %vm1392_vm0, %v2382_v48, %v2400_v15 }
 0x4d3   : > { %v2412_v36 = vpop.permute.xlu0 %2411 }
 0x4d4   : > { %v2434_v20 = vsel %vm2431_vm4, %v2430_v41, %v2412_v36 }
 0x4d6   : > { %v2825_v38 = vpop.permute.xlu1 %2824 }
 0x4d7   : > { %v2827_v19 = vunpack.i.h.bf16 %v2825_v38  ;;  %v2826_v25 = vunpack.i.l.bf16 %v2825_v38  ;;  %v2424_v30 = vpop.permute.xlu0 %2423 }
 0x4d8   : > { %v2438_v35 = vsel %vm2435_vm5, %v2434_v20, %v2424_v30 }
 0x4d9   : > { %v2428_v27 = vsel %vm1392_vm0, %v2289_v7, %v2826_v25  ;;  %v2429_v42 = vsel %vm1392_vm0, %v2357_v58, %v2827_v19  ;;  %v2440_v2 = vpack.c.bf16 %v2438_v35, %v2438_v35 }
 0x4da   : > { %v2830_v18 = vpop.permute.xlu1 %2829 }
 0x4db   : > { %v2832_v45 = vunpack.i.h.bf16 %v2830_v18  ;;  %v2831_v6 = vunpack.i.l.bf16 %v2830_v18 }
 0x4dd   : > { %v2432_v28 = vsel %vm2431_vm4, %v2428_v27, %v2831_v6  ;;  %v2433_v51 = vsel %vm2431_vm4, %v2429_v42, %v2832_v45 }
 0x4de   : > { %v2835_v53 = vpop.permute.xlu1 %2834 }
 0x4df   : > { %v2837_v29 = vunpack.i.h.bf16 %v2835_v53  ;;  %v2836_v32 = vunpack.i.l.bf16 %v2835_v53 }
 0x4e1   : > { %v2436_v34 = vsel %vm2435_vm5, %v2432_v28, %v2836_v32  ;;  %v2437_v12 = vsel %vm2435_vm5, %v2433_v51, %v2837_v29 }
 0x4e2   : > { %v2439_v56 = vpack.c.bf16 %v2437_v12, %v2436_v34 }
 0x4e4   : > { %2790 = vmatprep.mubr.msk.bf16.mxu0 %vm2464_vm6, %v2439_v56 }
 0x4e5   : > { %2791 = vmatmul.mubr.msk.bf16.vlgmr.msra.gmra.mrb[16].mxu0 %vm2464_vm6, %v2440_v2 }
 0x5b8   : > { %v2792_v44 = vpop.f32.mrb[16].mxu0 }
 0x5b9   : > { %v2514_v48 = vadd.f32 %v2792_v44, %v2669_v1  ;;  %v2505_v9 = vpop.f32.mrb[17].mxu0 }
 0x5ba   : > { %v2506_v49 = vadd.f32 %v2669_v1, %v2505_v9  ;;  %v2793_v47 = vpop.f32.mrb[18].mxu0 }
 0x5bb   : > { %v2527_v52 = vadd.f32 %v2524_v24, %v2514_v48  ;;  %v2508_v0 = vpop.f32.mrb[19].mxu0 }
 0x5bc   : > { %v2525_v46 = vadd.f32 %v2684_v40, %v2506_v49  ;;  %v2509_v39 = vadd.f32 %v2669_v1, %v2508_v0 }
 0x5bd   : > { %v2681_v57 = vpack.c.bf16 %v2527_v52, %v2527_v52 }
 0x5be   : > { %v2679_v59 = vpack.c.bf16 %v2525_v46, %v2525_v46  ;;  %v2526_v61 = vadd.f32 %v2685_v50, %v2509_v39 }
 0x5bf   : > { %v2548_v62 = vsel %vm2546_vm9, %v2681_v57, %v2547_v55 }
 0x5c0   : > { %2549 = vst [vmem:[%s217_s14 + $0x8] sm:$0x1] %v2548_v62  ;;  %2542 = vst.msk [vmem:[%s217_s14] sm:$0xf] %vm2541_vm10, %v2679_v59  ;;  %v2680_v10 = vpack.c.bf16 %v2526_v61, %v2526_v61 }
 0x5c2   : > { %2543 = vst.msk [vmem:[%s217_s14 + $0x4] sm:$0xf] %vm2541_vm10, %v2680_v10 }
 0x5c3 PF: > { %s14_s15 = sadd.s32 1, %s2895_s15  }
 0x5c4   : > { %p11_p4 = scmp.ge.s32.totalorder %s14_s15, 4  }
 0x5c6   :  { %13 = sbr.rel (!%p11_p4) target bundleno = 1 (0x1), region = 69 }

// kernel: vit_model_forward.19
= control target key start
LH: loop header
LB: loop body
LE: loop exit
PB: predicated region body
PF: predicated region fallthrough
CT: control target
= control target key end

     0   :  { %v107_v0 = vmov 0.0   ;;  %vm108_vm0 = vmmov 0   ;;  %vm39_vm1 = vcmask 261120   ;;  %s144_s1 = inlined_call_operand.vmem [shape: bf16[32,128], index: 1, kind: input, shape index: {}]   ;;  %s145_s0 = inlined_call_operand.vmem [shape: bf16[2,32], index: 0, kind: input, shape index: {}]   ;;  %s146_s2 = inlined_call_operand.vmem [shape: f32[1,128], index: 2, kind: input, shape index: {}]   ;;  %s147_s3 = inlined_call_operand.vmem [shape: f32[2,128], index: 3, kind: output, shape index: {}]  }
   0x1   :  { %95 = vmatprep.subr.bf16.mxu0 %v107_v0  ;;  %v105_v1 = vld [vmem:[%s144_s1] sm:$0xff]   ;;  %99 = vmatprep.mubr.msk.bf16.mxu0 %vm108_vm0, %v107_v0  ;;  %v106_v2 = vld [vmem:[%s144_s1 + $0x8] sm:$0xff]  }
   0x2   :  { %96 = vmatpush3.bf16.msra.mxu0 %v105_v1  ;;  %v15_v3 = vld [vmem:[%s145_s0] sm:$0x1] }
   0x3   :  { %97 = vmatprep.subr.bf16.mxu0 %v107_v0  ;;  %v88_v4 = vld [vmem:[%s146_s2] ss:$0 sm:$0xff] }
   0x6   :  { %98 = vmatpush3.bf16.msra.mxu0 %v106_v2 }
   0x9   :  { %100 = vmatmul.mubr.msk.bf16.vlgmr.msra.gmra.mrb[0].mxu0 %vm39_vm1, %v15_v3 }
  0xdc   :  { %v77_v5 = vpop.f32.mrb[0].mxu0 }
  0xdd   :  { %v78_v6 = vadd.f32 %v88_v4, %v77_v5  ;;  %v101_v7 = vpop.f32.mrb[1].mxu0 }
  0xde   :  { %v80_v8 = vpop.f32.mrb[2].mxu0 }
  0xdf   :  { %83 = vst [vmem:[%s147_s3] sm:$0x3] %v78_v6  ;;  %v102_v9 = vpop.f32.mrb[3].mxu0 }

// kernel: vit_model_forward.17
= control target key start
LH: loop header
LB: loop body
LE: loop exit
PB: predicated region body
PF: predicated region fallthrough
CT: control target
= control target key end

     0   :  { %vm26_vm0 = vcmask 261120   ;;  %vm39_vm1 = vcmask 254976   ;;  %vm137_vm2 = vcmask 257024   ;;  %vm142_vm3 = vcmask 253952   ;;  %s243_s0 = inlined_call_operand.vmem [shape: bf16[34,32], index: 0, kind: input, shape index: {}]   ;;  %s244_s1 = inlined_call_operand.vmem [shape: f32[1,32], index: 1, kind: input, shape index: {}]   ;;  %s245_s2 = inlined_call_operand.vmem [shape: f32[1,32], index: 2, kind: input, shape index: {}]   ;;  %s246_s3 = inlined_call_operand.vmem [shape: bf16[34,32], index: 3, kind: output, shape index: {}]  }
   0x1   :  { %v161_v0 = vld [vmem:[%s243_s0] sm:$0xff]   ;;  %v168_v1 = vld [vmem:[%s243_s0 + $0x8] sm:$0xff]   ;;  %v18_v6 = vld [vmem:[%s243_s0 + $0x10] sm:$0x1] }
   0x2   :  { %v162_v2 = vunpack.c.l.bf16 %v161_v0  ;;  %v166_v3 = vunpack.c.l.bf16 %v168_v1  ;;  %v163_v4 = vunpack.c.h.bf16 %v161_v0  ;;  %v167_v5 = vunpack.c.h.bf16 %v168_v1  ;;  %v148_v54 = vld [vmem:[%s244_s1] ss:$0 sm:$0xff] }
   0x3   :  { %v23_v11 = vunpack.c.l.bf16 %v18_v6  ;;  %v149_v56 = vld [vmem:[%s245_s2] ss:$0 sm:$0xff] }
   0x4   :  { %v27_v7 = vsel %vm26_vm0, %v162_v2, 0.0  ;;  %v33_v8 = vsel %vm26_vm0, %v166_v3, 0.0  ;;  %v30_v9 = vsel %vm26_vm0, %v163_v4, 0.0  ;;  %v36_v10 = vsel %vm26_vm0, %v167_v5, 0.0 }
   0x5   :  { %28 = vadd.xlane.f32.xlu0 %v27_v7  ;;  %34 = vadd.xlane.f32.xlu1 %v33_v8  ;;  %v40_v12 = vsel %vm39_vm1, %v23_v11, 0.0 }
   0x9   :  { %31 = vadd.xlane.f32.xlu0 %v30_v9  ;;  %37 = vadd.xlane.f32.xlu1 %v36_v10 }
   0xd   :  { %41 = vadd.xlane.f32.xlu0 %v40_v12 }
  0x92   :  { %v29_v13 = vpop.xlane.xlu0 %28  ;;  %v35_v14 = vpop.xlane.xlu1 %34 }
  0x93   :  { %v44_v15 = vmul.f32 0.03125, %v29_v13  ;;  %v46_v16 = vmul.f32 0.03125, %v35_v14 }
  0x95   :  { %v49_v17 = vsub.f32 %v162_v2, %v44_v15  ;;  %v51_v18 = vsub.f32 %v166_v3, %v46_v16 }
  0x96   :  { %v32_v19 = vpop.xlane.xlu0 %31  ;;  %v38_v20 = vpop.xlane.xlu1 %37 }
  0x97   :  { %v45_v21 = vmul.f32 0.03125, %v32_v19  ;;  %v47_v22 = vmul.f32 0.03125, %v38_v20  ;;  %v54_v23 = vmul.f32 %v49_v17, %v49_v17  ;;  %v56_v24 = vmul.f32 %v51_v18, %v51_v18 }
  0x99   :  { %v50_v25 = vsub.f32 %v163_v4, %v45_v21  ;;  %v52_v26 = vsub.f32 %v167_v5, %v47_v22  ;;  %v59_v27 = vsel %vm26_vm0, %v54_v23, 0.0  ;;  %v65_v30 = vsel %vm26_vm0, %v56_v24, 0.0 }
  0x9a   :  { %60 = vadd.xlane.f32.xlu1 %v59_v27  ;;  %v42_v28 = vpop.xlane.xlu0 %41 }
  0x9b   :  { %v48_v29 = vmul.f32 0.03125, %v42_v28  ;;  %v55_v31 = vmul.f32 %v50_v25, %v50_v25  ;;  %v57_v32 = vmul.f32 %v52_v26, %v52_v26 }
  0x9d   :  { %v53_v33 = vsub.f32 %v23_v11, %v48_v29  ;;  %v62_v34 = vsel %vm26_vm0, %v55_v31, 0.0  ;;  %v68_v35 = vsel %vm26_vm0, %v57_v32, 0.0 }
  0x9e   :  { %66 = vadd.xlane.f32.xlu1 %v65_v30  ;;  %63 = vadd.xlane.f32.xlu0 %v62_v34 }
  0x9f   :  { %v58_v36 = vmul.f32 %v53_v33, %v53_v33 }
  0xa1   :  { %v71_v37 = vsel %vm39_vm1, %v58_v36, 0.0 }
  0xa2   :  { %69 = vadd.xlane.f32.xlu0 %v68_v35  ;;  %72 = vadd.xlane.f32.xlu1 %v71_v37 }
 0x127   :  { %v61_v38 = vpop.xlane.xlu1 %60 }
 0x128   :  { %v74_v39 = vmul.f32 0.03125, %v61_v38 }
 0x12a   :  { %v79_v40 = vadd.f32 1e-12, %v74_v39 }
 0x12b   :  { %v67_v41 = vpop.xlane.xlu1 %66  ;;  %v64_v42 = vpop.xlane.xlu0 %63 }
 0x12c   :  { %169 = vrsqrt.f32 %v79_v40  ;;  %v76_v43 = vmul.f32 0.03125, %v67_v41  ;;  %v75_v44 = vmul.f32 0.03125, %v64_v42 }
 0x12e   :  { %v81_v45 = vadd.f32 1e-12, %v76_v43  ;;  %v80_v46 = vadd.f32 1e-12, %v75_v44 }
 0x12f   :  { %v73_v47 = vpop.xlane.xlu1 %72  ;;  %v70_v48 = vpop.xlane.xlu0 %69 }
 0x130   :  { %171 = vrsqrt.f32 %v81_v45  ;;  %v78_v49 = vmul.f32 0.03125, %v73_v47  ;;  %v77_v50 = vmul.f32 0.03125, %v70_v48 }
 0x131   :  { %173 = vrsqrt.f32 %v80_v46 }
 0x132   :  { %v83_v51 = vadd.f32 1e-12, %v78_v49  ;;  %v82_v52 = vadd.f32 1e-12, %v77_v50 }
 0x134   :  { %175 = vrsqrt.f32 %v83_v51 }
 0x135   :  { %177 = vrsqrt.f32 %v82_v52 }
 0x136   :  { %v170_v53 = vpop.eup %169 }
 0x137   :  { %v89_v55 = vmul.f32 %v170_v53, %v49_v17 }
 0x139   :  { %v100_v57 = vmul.f32 %v148_v54, %v89_v55 }
 0x13a   :  { %v172_v58 = vpop.eup %171 }
 0x13b   :  { %v174_v59 = vpop.eup %173  ;;  %v111_v60 = vadd.f32 %v149_v56, %v100_v57  ;;  %v91_v61 = vmul.f32 %v172_v58, %v51_v18 }
 0x13c   :  { %v90_v62 = vmul.f32 %v174_v59, %v50_v25 }
 0x13d   :  { %v155_v63 = vpack.c.bf16 %v111_v60, %v111_v60  ;;  %v102_v0 = vmul.f32 %v148_v54, %v91_v61 }
 0x13e   :  { %v176_v1 = vpop.eup %175  ;;  %v101_v2 = vmul.f32 %v148_v54, %v90_v62 }
 0x13f   :  { %v178_v3 = vpop.eup %177  ;;  %138 = vst.msk [vmem:[%s246_s3] sm:$0xf] %vm137_vm2, %v155_v63  ;;  %v113_v4 = vadd.f32 %v149_v56, %v102_v0  ;;  %v93_v5 = vmul.f32 %v176_v1, %v53_v33 }
 0x140   :  { %v112_v6 = vadd.f32 %v149_v56, %v101_v2  ;;  %v92_v7 = vmul.f32 %v178_v3, %v52_v26 }
 0x141   :  { %v157_v8 = vpack.c.bf16 %v113_v4, %v113_v4  ;;  %v104_v9 = vmul.f32 %v148_v54, %v93_v5 }
 0x142   :  { %v156_v10 = vpack.c.bf16 %v112_v6, %v112_v6  ;;  %v103_v11 = vmul.f32 %v148_v54, %v92_v7 }
 0x143   :  { %140 = vst.msk [vmem:[%s246_s3 + $0x8] sm:$0xf] %vm137_vm2, %v157_v8  ;;  %v115_v12 = vadd.f32 %v149_v56, %v104_v9 }
 0x144   :  { %139 = vst.msk [vmem:[%s246_s3 + $0x4] sm:$0xf] %vm137_vm2, %v156_v10  ;;  %v114_v13 = vadd.f32 %v149_v56, %v103_v11 }
 0x145   :  { %v159_v14 = vpack.c.bf16 %v115_v12, %v115_v12 }
 0x146   :  { %v158_v15 = vpack.c.bf16 %v114_v13, %v114_v13 }
 0x147   :  { %143 = vst.msk [vmem:[%s246_s3 + $0x10] sm:$0x1] %vm142_vm3, %v159_v14 }
 0x148   :  { %141 = vst.msk [vmem:[%s246_s3 + $0xc] sm:$0xf] %vm137_vm2, %v158_v15 }

// kernel: vit_model_forward.18
= control target key start
LH: loop header
LB: loop body
LE: loop exit
PB: predicated region body
PF: predicated region fallthrough
CT: control target
= control target key end

     0   :  { %vm52_vm0 = vcmask 261120   ;;  %s186_s1 = inlined_call_operand.vmem [shape: bf16[32,128], index: 1, kind: input, shape index: {}]   ;;  %s187_s0 = inlined_call_operand.vmem [shape: bf16[32,32], index: 0, kind: input, shape index: {}]   ;;  %s188_s2 = inlined_call_operand.vmem [shape: f32[1,128], index: 2, kind: input, shape index: {}]   ;;  %s189_s3 = inlined_call_operand.vmem [shape: f32[32,128], index: 3, kind: output, shape index: {}]  }
   0x1   :  { %v135_v0 = vld [vmem:[%s186_s1] sm:$0xff]   ;;  %v136_v1 = vld [vmem:[%s186_s1 + $0x8] sm:$0xff]  }
   0x2   :  { %127 = vmatprep.subr.bf16.mxu0 %v135_v0  ;;  %v137_v2 = vld [vmem:[%s187_s0] sm:$0xff]   ;;  %v138_v3 = vld [vmem:[%s187_s0 + $0x8] sm:$0xff]  }
   0x3   :  { %128 = vmatpush3.bf16.msra.mxu0 %v135_v0  ;;  %131 = vmatprep.mubr.msk.bf16.mxu0 %vm52_vm0, %v137_v2  ;;  %v116_v4 = vld [vmem:[%s188_s2] ss:$0 sm:$0xff] }
   0x4   :  { %129 = vmatprep.subr.bf16.mxu0 %v136_v1 }
   0x7   :  { %130 = vmatpush3.bf16.msra.mxu0 %v136_v1 }
   0xa   :  { %132 = vmatmul.mubr.msk.bf16.vlgmr.msra.gmra.mrb[0].mxu0 %vm52_vm0, %v138_v3 }
  0xdd   :  { %v133_v5 = vpop.f32.mrb[0].mxu0 }
  0xde   :  { %v102_v6 = vadd.f32 %v133_v5, %v116_v4  ;;  %v93_v7 = vpop.f32.mrb[1].mxu0 }
  0xdf   :  { %v94_v8 = vadd.f32 %v116_v4, %v93_v7  ;;  %v134_v9 = vpop.f32.mrb[2].mxu0 }
  0xe0   :  { %110 = vst [vmem:[%s189_s3 + $0x10] sm:$0xff] %v102_v6  ;;  %v105_v10 = vadd.f32 %v134_v9, %v116_v4  ;;  %v96_v11 = vpop.f32.mrb[3].mxu0 }
  0xe1   :  { %108 = vst [vmem:[%s189_s3] sm:$0xff] %v94_v8  ;;  %v97_v12 = vadd.f32 %v116_v4, %v96_v11 }
  0xe2   :  { %111 = vst [vmem:[%s189_s3 + $0x18] sm:$0xff] %v105_v10 }
  0xe3   :  { %109 = vst [vmem:[%s189_s3 + $0x8] sm:$0xff] %v97_v12 }

</bundles_post_ra>
